<compile_context>
chip_gen: v7x
topology: tpu7x:2x2x1
jax: 0.10.0
libtpu: 0.0.40
codegen_flags: <defaults>
</compile_context>

<pallas_src>
import functools

import jax
import jax.numpy as jnp
from jax.experimental import pallas as pl
from jax.experimental.pallas import tpu as pltpu


# ---------------------------------------------------------------------------
# Kernel 1: fused multimodal embeddings -> full LayerNormed encoder input
# ---------------------------------------------------------------------------
def _embeddings_kernel(poster_ref, video_ref, meta_ref,
                       wv_ref, bv_ref, wm_ref, bm_ref,
                       mod_add_ref, txt_ref, gamma_ref, beta_ref,
                       out_ref, *, eps):
    gamma = gamma_ref[...]                                   # (1, H)
    beta = beta_ref[...]                                     # (1, H)

    def ln(x):                                               # LayerNorm over H
        mu = jnp.mean(x, axis=-1, keepdims=True)
        var = jnp.mean((x - mu) ** 2, axis=-1, keepdims=True)
        return (x - mu) * jax.lax.rsqrt(var + eps)

    # Modality Linear projections on the MXU.  video is frame-averaged here so
    # no (B, Dv) intermediate ever hits HBM.
    vid_mean = jnp.mean(video_ref[...], axis=1)                              # (B, Dv)
    proj_p = jnp.dot(poster_ref[...], wv_ref[...],
                     preferred_element_type=jnp.float32) + bv_ref[...]       # (B, H)
    proj_v = jnp.dot(vid_mean, wv_ref[...],
                     preferred_element_type=jnp.float32) + bv_ref[...]       # (B, H)
    proj_m = jnp.dot(meta_ref[...], wm_ref[...],
                     preferred_element_type=jnp.float32) + bm_ref[...]       # (B, H)

    batch, hidden = proj_p.shape
    proj_rows = {1: proj_p, 3: proj_v, 5: proj_m}

    # Rows 0..6 of the encoder input: [CLS, poster, SEP, vid, SEP, meta, SEP].
    # Direct static-row writes (review item: no one-hot scatter).
    for r in range(7):
        base = mod_add_ref[r:r + 1, :]                                       # (1, H)
        if r in proj_rows:
            row = ln(base + proj_rows[r]) * gamma + beta                     # (B, H)
            out_ref[:, r:r + 1, :] = row[:, None, :]
        else:
            row = ln(base) * gamma + beta                                    # (1, H)
            out_ref[:, r:r + 1, :] = jnp.broadcast_to(
                row[:, None, :], (batch, 1, hidden))

    # Rows 7.. : text embeddings (word + pos + type already summed) -> LN.
    txt = txt_ref[...]                                                       # (B, L, H)
    out_ref[:, 7:, :] = ln(txt) * gamma[:, None, :] + beta[:, None, :]


# ---------------------------------------------------------------------------
# Kernel 2: BERT encoder (grid over layers) + fused pooler on the last step
# ---------------------------------------------------------------------------
def _encoder_kernel(emb_ref, bias_ref,
                    wq_ref, bq_ref, wk_ref, bk_ref, wv_ref, bv_ref,
                    wo_ref, bo_ref, g1_ref, b1_ref,
                    wi_ref, bi_ref, wf_ref, bf_ref, g2_ref, b2_ref,
                    wp_ref, bp_ref,
                    pooled_ref, hid_ref,
                    *, batch, seq, n_heads, eps):
    layer = pl.program_id(0)

    @pl.when(layer == 0)
    def _():
        hid_ref[...] = emb_ref[...]          # load embeddings into resident state

    def ln(x, g, b):
        mu = jnp.mean(x, axis=-1, keepdims=True)
        var = jnp.mean((x - mu) ** 2, axis=-1, keepdims=True)
        return (x - mu) * jax.lax.rsqrt(var + eps) * g + b

    x = hid_ref[...]                          # (B*T, H)  lane-dense 2-D slab
    hidden = x.shape[-1]
    dh = hidden // n_heads
    scale = 1.0 / float(dh) ** 0.5

    q = jnp.dot(x, wq_ref[...], preferred_element_type=jnp.float32) + bq_ref[...]
    k = jnp.dot(x, wk_ref[...], preferred_element_type=jnp.float32) + bk_ref[...]
    v = jnp.dot(x, wv_ref[...], preferred_element_type=jnp.float32) + bv_ref[...]

    ctx_rows = []
    for b in range(batch):                    # static loops: tiny B / n_heads
        rows = slice(b * seq, (b + 1) * seq)
        qb, kb, vb = q[rows, :], k[rows, :], v[rows, :]
        bias = bias_ref[b:b + 1, :]           # (1, T) additive mask over keys
        heads = []
        for h in range(n_heads):
            cols = slice(h * dh, (h + 1) * dh)
            s = jnp.einsum("qd,kd->qk", qb[:, cols], kb[:, cols],
                           preferred_element_type=jnp.float32) * scale + bias
            s = s - jnp.max(s, axis=-1, keepdims=True)
            p = jnp.exp(s)
            p = p / jnp.sum(p, axis=-1, keepdims=True)
            heads.append(jnp.dot(p, vb[:, cols],
                                 preferred_element_type=jnp.float32))
        ctx_rows.append(jnp.concatenate(heads, axis=-1))                    # (T, H)
    ctx = jnp.concatenate(ctx_rows, axis=0)                                 # (B*T, H)

    attn = jnp.dot(ctx, wo_ref[...], preferred_element_type=jnp.float32) + bo_ref[...]
    x1 = ln(x + attn, g1_ref[...], b1_ref[...])

    mid = jax.nn.gelu(
        jnp.dot(x1, wi_ref[...], preferred_element_type=jnp.float32) + bi_ref[...],
        approximate=True)
    ff = jnp.dot(mid, wf_ref[...], preferred_element_type=jnp.float32) + bf_ref[...]
    x2 = ln(x1 + ff, g2_ref[...], b2_ref[...])
    hid_ref[...] = x2

    # Fused BertPooler on the final layer: first token -> Linear -> tanh.
    @pl.when(layer == pl.num_programs(0) - 1)
    def _():
        first = jnp.concatenate(
            [x2[b * seq:b * seq + 1, :] for b in range(batch)], axis=0)     # (B, H)
        pooled_ref[...] = jnp.tanh(
            jnp.dot(first, wp_ref[...], preferred_element_type=jnp.float32)
            + bp_ref[...])


# ---------------------------------------------------------------------------
# Wrapper: full MultimodalBertEncoder4M.forward (eval mode)
# ---------------------------------------------------------------------------
def multimodal_bert_encoder_4m(input_txt, attention_mask, segment,
                               poster, video, meta, params, *,
                               n_heads=4, cls_id=101, sep_id=102, eps=1e-12):
    B, L = input_txt.shape
    H = params["word_emb"].shape[1]
    T = 7 + L
    Dv = params["vis_w"].shape[0]
    Dm = params["meta_w"].shape[0]
    Fr = video.shape[1]
    n_layers = params["wq"].shape[0]
    FF = params["wi"].shape[-1]
    f32 = jnp.float32

    we, pe, te = params["word_emb"], params["pos_emb"], params["type_emb"]

    # Batch-independent additive rows for the 7 modality tokens
    # [CLS, poster, SEP, video, SEP, meta, SEP]; positions restart per modality
    # and token-type ids are 2/3/4.  Tiny (7,H) -> no (B,S,H) HBM temporaries.
    mod_add = jnp.stack([
        we[cls_id] + pe[0] + te[2],     # poster [CLS]
        pe[1] + te[2],                  # poster projection slot
        we[sep_id] + pe[2] + te[2],     # poster [SEP]
        pe[0] + te[3],                  # video projection slot
        we[sep_id] + pe[1] + te[3],     # video [SEP]
        pe[0] + te[4],                  # meta projection slot
        we[sep_id] + pe[1] + te[4],     # meta [SEP]
    ], axis=0).astype(f32)                                              # (7, H)

    # Data-dependent text gathers (plain-JAX glue, summed once).
    txt_sum = (we[input_txt] + pe[:L][None, :, :] + te[segment]).astype(f32)

    # attention_mask -> additive bias; the 7 modality tokens are always visible.
    mask_full = jnp.concatenate(
        [jnp.ones((B, 7), attention_mask.dtype), attention_mask], axis=1)
    mask_bias = (1.0 - mask_full.astype(f32)) * -10000.0                # (B, T)

    gamma = params["emb_ln_g"].reshape(1, H).astype(f32)
    beta = params["emb_ln_b"].reshape(1, H).astype(f32)

    emb_kernel = functools.partial(_embeddings_kernel, eps=eps)
    enc_in = pl.pallas_call(
        emb_kernel,
        out_shape=jax.ShapeDtypeStruct((B, T, H), f32),
        grid=(1,),
        in_specs=[
            pl.BlockSpec((B, Dv), lambda i: (0, 0)),         # poster
            pl.BlockSpec((B, Fr, Dv), lambda i: (0, 0, 0)),  # video
            pl.BlockSpec((B, Dm), lambda i: (0, 0)),         # meta
            pl.BlockSpec((Dv, H), lambda i: (0, 0)),         # vis_w
            pl.BlockSpec((1, H), lambda i: (0, 0)),          # vis_b
            pl.BlockSpec((Dm, H), lambda i: (0, 0)),         # meta_w
            pl.BlockSpec((1, H), lambda i: (0, 0)),          # meta_b
            pl.BlockSpec((7, H), lambda i: (0, 0)),          # mod_add
            pl.BlockSpec((B, L, H), lambda i: (0, 0, 0)),    # txt_sum
            pl.BlockSpec((1, H), lambda i: (0, 0)),          # gamma
            pl.BlockSpec((1, H), lambda i: (0, 0)),          # beta
        ],
        out_specs=pl.BlockSpec((B, T, H), lambda i: (0, 0, 0)),
        compiler_params=pltpu.CompilerParams(
            dimension_semantics=("arbitrary",)),
    )(poster.astype(f32), video.astype(f32), meta.astype(f32),
      params["vis_w"].astype(f32), params["vis_b"].reshape(1, H).astype(f32),
      params["meta_w"].astype(f32), params["meta_b"].reshape(1, H).astype(f32),
      mod_add, txt_sum, gamma, beta)

    # Lane-dense 2-D view for the encoder (free row-major bitcast).
    enc_in_2d = enc_in.reshape(B * T, H)

    def layer_spec(shape):        # stacked per-layer tensor; layer dim squeezed
        return pl.BlockSpec((None,) + tuple(shape),
                            lambda l: (l,) + (0,) * len(shape))

    def const_spec(shape):        # same block every layer
        return pl.BlockSpec(tuple(shape), lambda l: (0,) * len(shape))

    def stack_bias(x, width):
        return x.reshape(n_layers, 1, width).astype(f32)

    enc_kernel = functools.partial(_encoder_kernel, batch=B, seq=T,
                                   n_heads=n_heads, eps=eps)
    pooled = pl.pallas_call(
        enc_kernel,
        out_shape=jax.ShapeDtypeStruct((B, H), f32),
        grid=(n_layers,),
        in_specs=[
            const_spec((B * T, H)),                    # encoder input
            const_spec((B, T)),                        # attention-mask bias
            layer_spec((H, H)), layer_spec((1, H)),    # Wq, bq
            layer_spec((H, H)), layer_spec((1, H)),    # Wk, bk
            layer_spec((H, H)), layer_spec((1, H)),    # Wv, bv
            layer_spec((H, H)), layer_spec((1, H)),    # Wo, bo
            layer_spec((1, H)), layer_spec((1, H)),    # LN1 gamma, beta
            layer_spec((H, FF)), layer_spec((1, FF)),  # Wi, bi
            layer_spec((FF, H)), layer_spec((1, H)),   # Wf, bf
            layer_spec((1, H)), layer_spec((1, H)),    # LN2 gamma, beta
            const_spec((H, H)), const_spec((1, H)),    # pooler W, b
        ],
        out_specs=pl.BlockSpec((B, H), lambda l: (0, 0)),
        scratch_shapes=[pltpu.VMEM((B * T, H), f32)],  # resident hidden state
        compiler_params=pltpu.CompilerParams(
            dimension_semantics=("arbitrary",)),       # sequential layer dep
    )(enc_in_2d, mask_bias,
      params["wq"].astype(f32), stack_bias(params["bq"], H),
      params["wk"].astype(f32), stack_bias(params["bk"], H),
      params["wv"].astype(f32), stack_bias(params["bv"], H),
      params["wo"].astype(f32), stack_bias(params["bo"], H),
      stack_bias(params["ln1_g"], H), stack_bias(params["ln1_b"], H),
      params["wi"].astype(f32), stack_bias(params["bi"], FF),
      params["wf"].astype(f32), stack_bias(params["bf"], H),
      stack_bias(params["ln2_g"], H), stack_bias(params["ln2_b"], H),
      params["pool_w"].astype(f32), params["pool_b"].reshape(1, H).astype(f32))

    return pooled


# ---------------------------------------------------------------------------
# Pure-JAX reference (mirror of the PyTorch forward, eval mode)
# ---------------------------------------------------------------------------
def _reference_forward(input_txt, attention_mask, segment, poster, video, meta,
                       params, *, n_heads=4, cls_id=101, sep_id=102, eps=1e-12):
    B, L = input_txt.shape
    H = params["word_emb"].shape[1]
    we, pe, te = params["word_emb"], params["pos_emb"], params["type_emb"]
    g, b = params["emb_ln_g"], params["emb_ln_b"]

    def ln(x, gg, bb):
        mu = x.mean(-1, keepdims=True)
        var = ((x - mu) ** 2).mean(-1, keepdims=True)
        return (x - mu) / jnp.sqrt(var + eps) * gg + bb

    def mod_embed(feats, type_id, w, bias, cls_token):
        proj = feats @ w + bias
        rows = []
        if cls_token:
            rows.append(jnp.broadcast_to(we[cls_id][None, None, :], (B, 1, H)))
        rows.append(proj[:, None, :])
        rows.append(jnp.broadcast_to(we[sep_id][None, None, :], (B, 1, H)))
        tok = jnp.concatenate(rows, axis=1)
        S = tok.shape[1]
        emb = tok + pe[:S][None, :, :] + te[type_id][None, None, :]
        return ln(emb, g, b)

    poster_out = mod_embed(poster, 2, params["vis_w"], params["vis_b"], True)
    vid_out = mod_embed(video.mean(axis=1), 3, params["vis_w"], params["vis_b"], False)
    meta_out = mod_embed(meta, 4, params["meta_w"], params["meta_b"], False)
    txt_out = ln(we[input_txt] + pe[:L][None, :, :] + te[segment], g, b)

    x = jnp.concatenate([poster_out, vid_out, meta_out, txt_out], axis=1)
    T = x.shape[1]

    mask_full = jnp.concatenate(
        [jnp.ones((B, 7), attention_mask.dtype), attention_mask], axis=1)
    bias_mask = (1.0 - mask_full.astype(jnp.float32)) * -10000.0

    dh = H // n_heads
    for l in range(params["wq"].shape[0]):
        q = x @ params["wq"][l] + params["bq"][l]
        k = x @ params["wk"][l] + params["bk"][l]
        v = x @ params["wv"][l] + params["bv"][l]
        qh = q.reshape(B, T, n_heads, dh).transpose(0, 2, 1, 3)
        kh = k.reshape(B, T, n_heads, dh).transpose(0, 2, 1, 3)
        vh = v.reshape(B, T, n_heads, dh).transpose(0, 2, 1, 3)
        s = jnp.einsum("bhqd,bhkd->bhqk", qh, kh) / float(dh) ** 0.5
        s = s + bias_mask[:, None, None, :]
        s = s - s.max(-1, keepdims=True)
        p = jnp.exp(s)
        p = p / p.sum(-1, keepdims=True)
        ctx = jnp.einsum("bhqk,bhkd->bhqd", p, vh)
        ctx = ctx.transpose(0, 2, 1, 3).reshape(B, T, H)
        attn = ctx @ params["wo"][l] + params["bo"][l]
        x1 = ln(x + attn, params["ln1_g"][l], params["ln1_b"][l])
        mid = jax.nn.gelu(x1 @ params["wi"][l] + params["bi"][l], approximate=True)
        ff = mid @ params["wf"][l] + params["bf"][l]
        x = ln(x1 + ff, params["ln2_g"][l], params["ln2_b"][l])

    return jnp.tanh(x[:, 0, :] @ params["pool_w"] + params["pool_b"])


if __name__ == "__main__":
    key = jax.random.PRNGKey(0)
    B, L, H = 2, 9, 128          # lane-dense hidden (multiple of 128)
    Dv, Dm, Fr = 64, 312, 8      # orig_d_v, meta width (fixed at 312), frames
    vocab, max_pos, n_types = 120, 32, 5
    n_layers, n_heads, FF = 2, 4, 256

    ks = jax.random.split(key, 26)
    s = 0.02
    params = {
        "vis_w": s * jax.random.normal(ks[0], (Dv, H), jnp.float32),
        "vis_b": s * jax.random.normal(ks[1], (H,), jnp.float32),
        "meta_w": s * jax.random.normal(ks[2], (Dm, H), jnp.float32),
        "meta_b": s * jax.random.normal(ks[3], (H,), jnp.float32),
        "word_emb": s * jax.random.normal(ks[4], (vocab, H), jnp.float32),
        "pos_emb": s * jax.random.normal(ks[5], (max_pos, H), jnp.float32),
        "type_emb": s * jax.random.normal(ks[6], (n_types, H), jnp.float32),
        "emb_ln_g": jnp.ones((H,), jnp.float32),
        "emb_ln_b": jnp.zeros((H,), jnp.float32),
        "wq": s * jax.random.normal(ks[7], (n_layers, H, H), jnp.float32),
        "bq": s * jax.random.normal(ks[8], (n_layers, H), jnp.float32),
        "wk": s * jax.random.normal(ks[9], (n_layers, H, H), jnp.float32),
        "bk": s * jax.random.normal(ks[10], (n_layers, H), jnp.float32),
        "wv": s * jax.random.normal(ks[11], (n_layers, H, H), jnp.float32),
        "bv": s * jax.random.normal(ks[12], (n_layers, H), jnp.float32),
        "wo": s * jax.random.normal(ks[13], (n_layers, H, H), jnp.float32),
        "bo": s * jax.random.normal(ks[14], (n_layers, H), jnp.float32),
        "ln1_g": jnp.ones((n_layers, H), jnp.float32),
        "ln1_b": jnp.zeros((n_layers, H), jnp.float32),
        "wi": s * jax.random.normal(ks[15], (n_layers, H, FF), jnp.float32),
        "bi": s * jax.random.normal(ks[16], (n_layers, FF), jnp.float32),
        "wf": s * jax.random.normal(ks[17], (n_layers, FF, H), jnp.float32),
        "bf": s * jax.random.normal(ks[18], (n_layers, H), jnp.float32),
        "ln2_g": jnp.ones((n_layers, H), jnp.float32),
        "ln2_b": jnp.zeros((n_layers, H), jnp.float32),
        "pool_w": s * jax.random.normal(ks[19], (H, H), jnp.float32),
        "pool_b": s * jax.random.normal(ks[20], (H,), jnp.float32),
    }

    input_txt = jax.random.randint(ks[21], (B, L), 0, vocab, dtype=jnp.int32)
    segment = jnp.concatenate(
        [jnp.zeros((B, 5), jnp.int32), jnp.ones((B, L - 5), jnp.int32)], axis=1)
    attention_mask = jnp.ones((B, L), jnp.int32).at[1, L - 2:].set(0)
    poster = jax.random.normal(ks[22], (B, Dv), jnp.float32)
    video = jax.random.normal(ks[23], (B, Fr, Dv), jnp.float32)
    meta = jax.random.normal(ks[24], (B, Dm), jnp.float32)

    fwd = jax.jit(lambda *a: multimodal_bert_encoder_4m(*a, n_heads=n_heads))
    out = fwd(input_txt, attention_mask, segment, poster, video, meta, params)
    out = jax.block_until_ready(out)

    with jax.default_matmul_precision("float32"):
        ref = _reference_forward(input_txt, attention_mask, segment,
                                 poster, video, meta, params, n_heads=n_heads)
    ref = jax.block_until_ready(ref)

    assert out.shape == ref.shape == (B, H)
    # Tolerance allows for MXU default-precision differences between the Pallas
    # kernel matmuls and the XLA reference matmuls.
    assert jnp.allclose(out, ref, atol=1e-2, rtol=1e-2), "mismatch vs reference"

    print("KERNEL_OK")
</pallas_src>

<mosaic_0001>
module attributes {stable_mosaic.version = 11 : i64} {
  func.func @_embeddings_kernel(%arg0: i32, %arg1: memref<2x64xf32, #tpu.memory_space<vmem>>, %arg2: memref<2x8x64xf32, #tpu.memory_space<vmem>>, %arg3: memref<2x312xf32, #tpu.memory_space<vmem>>, %arg4: memref<64x128xf32, #tpu.memory_space<vmem>>, %arg5: memref<1x128xf32, #tpu.memory_space<vmem>>, %arg6: memref<312x128xf32, #tpu.memory_space<vmem>>, %arg7: memref<1x128xf32, #tpu.memory_space<vmem>>, %arg8: memref<7x128xf32, #tpu.memory_space<vmem>>, %arg9: memref<2x9x128xf32, #tpu.memory_space<vmem>>, %arg10: memref<1x128xf32, #tpu.memory_space<vmem>>, %arg11: memref<1x128xf32, #tpu.memory_space<vmem>>, %arg12: memref<2x16x128xf32, #tpu.memory_space<vmem>>) attributes {dimension_semantics = [#tpu.dimension_semantics<arbitrary>], iteration_bounds = array<i64: 1>, scalar_prefetch = 0 : i64, scratch_operands = 0 : i64, tpu.core_type = #tpu.core_type<tc>, window_params = [{pipeline_mode = #tpu.pipeline_mode<synchronous>, transform_indices = @transform_0, window_bounds = array<i64: 2, 64>}, {pipeline_mode = #tpu.pipeline_mode<synchronous>, transform_indices = @transform_1, window_bounds = array<i64: 2, 8, 64>}, {pipeline_mode = #tpu.pipeline_mode<synchronous>, transform_indices = @transform_2, window_bounds = array<i64: 2, 312>}, {pipeline_mode = #tpu.pipeline_mode<synchronous>, transform_indices = @transform_3, window_bounds = array<i64: 64, 128>}, {pipeline_mode = #tpu.pipeline_mode<synchronous>, transform_indices = @transform_4, window_bounds = array<i64: 1, 128>}, {pipeline_mode = #tpu.pipeline_mode<synchronous>, transform_indices = @transform_5, window_bounds = array<i64: 312, 128>}, {pipeline_mode = #tpu.pipeline_mode<synchronous>, transform_indices = @transform_6, window_bounds = array<i64: 1, 128>}, {pipeline_mode = #tpu.pipeline_mode<synchronous>, transform_indices = @transform_7, window_bounds = array<i64: 7, 128>}, {pipeline_mode = #tpu.pipeline_mode<synchronous>, transform_indices = @transform_8, window_bounds = array<i64: 2, 9, 128>}, {pipeline_mode = #tpu.pipeline_mode<synchronous>, transform_indices = @transform_9, window_bounds = array<i64: 1, 128>}, {pipeline_mode = #tpu.pipeline_mode<synchronous>, transform_indices = @transform_10, window_bounds = array<i64: 1, 128>}, {pipeline_mode = #tpu.pipeline_mode<synchronous>, transform_indices = @transform_11, window_bounds = array<i64: 2, 16, 128>}]} {
    %c0 = arith.constant 0 : index
    %c0_0 = arith.constant 0 : index
    %0 = vector.load %arg10[%c0, %c0_0] : memref<1x128xf32, #tpu.memory_space<vmem>>, vector<1x128xf32>
    %c0_1 = arith.constant 0 : index
    %c0_2 = arith.constant 0 : index
    %1 = vector.load %arg11[%c0_1, %c0_2] : memref<1x128xf32, #tpu.memory_space<vmem>>, vector<1x128xf32>
    %c0_3 = arith.constant 0 : index
    %c0_4 = arith.constant 0 : index
    %c0_5 = arith.constant 0 : index
    %2 = vector.load %arg2[%c0_3, %c0_4, %c0_5] : memref<2x8x64xf32, #tpu.memory_space<vmem>>, vector<2x8x64xf32>
    %cst = arith.constant dense<0.000000e+00> : vector<2x64xf32>
    %3 = vector.multi_reduction <add>, %2, %cst [1] : vector<2x8x64xf32> to vector<2x64xf32>
    %cst_6 = arith.constant 8.000000e+00 : f32
    %4 = vector.broadcast %cst_6 : f32 to vector<2x64xf32>
    %5 = arith.divf %3, %4 : vector<2x64xf32>
    %c0_7 = arith.constant 0 : index
    %c0_8 = arith.constant 0 : index
    %6 = vector.load %arg1[%c0_7, %c0_8] : memref<2x64xf32, #tpu.memory_space<vmem>>, vector<2x64xf32>
    %c0_9 = arith.constant 0 : index
    %c0_10 = arith.constant 0 : index
    %7 = vector.load %arg4[%c0_9, %c0_10] : memref<64x128xf32, #tpu.memory_space<vmem>>, vector<64x128xf32>
    %cst_11 = arith.constant dense<0.000000e+00> : vector<2x128xf32>
    %8 = tpu.matmul %6, %7, %cst_11 {dimension_numbers = #tpu.dot_dimension_numbers<[1], [0], [0], [1], [0, 0, 1, 1], [], []>} : vector<2x64xf32>, vector<64x128xf32>, vector<2x128xf32> -> vector<2x128xf32>
    %c0_12 = arith.constant 0 : index
    %c0_13 = arith.constant 0 : index
    %9 = vector.load %arg5[%c0_12, %c0_13] : memref<1x128xf32, #tpu.memory_space<vmem>>, vector<1x128xf32>
    %10 = vector.broadcast %9 : vector<1x128xf32> to vector<2x128xf32>
    %11 = arith.addf %8, %10 : vector<2x128xf32>
    %c0_14 = arith.constant 0 : index
    %c0_15 = arith.constant 0 : index
    %12 = vector.load %arg4[%c0_14, %c0_15] : memref<64x128xf32, #tpu.memory_space<vmem>>, vector<64x128xf32>
    %cst_16 = arith.constant dense<0.000000e+00> : vector<2x128xf32>
    %13 = tpu.matmul %5, %12, %cst_16 {dimension_numbers = #tpu.dot_dimension_numbers<[1], [0], [0], [1], [0, 0, 1, 1], [], []>} : vector<2x64xf32>, vector<64x128xf32>, vector<2x128xf32> -> vector<2x128xf32>
    %c0_17 = arith.constant 0 : index
    %c0_18 = arith.constant 0 : index
    %14 = vector.load %arg5[%c0_17, %c0_18] : memref<1x128xf32, #tpu.memory_space<vmem>>, vector<1x128xf32>
    %15 = vector.broadcast %14 : vector<1x128xf32> to vector<2x128xf32>
    %16 = arith.addf %13, %15 : vector<2x128xf32>
    %c0_19 = arith.constant 0 : index
    %c0_20 = arith.constant 0 : index
    %17 = vector.load %arg3[%c0_19, %c0_20] : memref<2x312xf32, #tpu.memory_space<vmem>>, vector<2x312xf32>
    %c0_21 = arith.constant 0 : index
    %c0_22 = arith.constant 0 : index
    %18 = vector.load %arg6[%c0_21, %c0_22] : memref<312x128xf32, #tpu.memory_space<vmem>>, vector<312x128xf32>
    %cst_23 = arith.constant dense<0.000000e+00> : vector<2x128xf32>
    %19 = tpu.matmul %17, %18, %cst_23 {dimension_numbers = #tpu.dot_dimension_numbers<[1], [0], [0], [1], [0, 0, 1, 1], [], []>} : vector<2x312xf32>, vector<312x128xf32>, vector<2x128xf32> -> vector<2x128xf32>
    %c0_24 = arith.constant 0 : index
    %c0_25 = arith.constant 0 : index
    %20 = vector.load %arg7[%c0_24, %c0_25] : memref<1x128xf32, #tpu.memory_space<vmem>>, vector<1x128xf32>
    %21 = vector.broadcast %20 : vector<1x128xf32> to vector<2x128xf32>
    %22 = arith.addf %19, %21 : vector<2x128xf32>
    %c0_26 = arith.constant 0 : index
    %c0_27 = arith.constant 0 : index
    %23 = vector.load %arg8[%c0_26, %c0_27] : memref<7x128xf32, #tpu.memory_space<vmem>>, vector<1x128xf32>
    %cst_28 = arith.constant dense<0.000000e+00> : vector<1xf32>
    %24 = vector.multi_reduction <add>, %23, %cst_28 [1] : vector<1x128xf32> to vector<1xf32>
    %25 = vector.shape_cast %24 : vector<1xf32> to vector<1x1xf32>
    %cst_29 = arith.constant 1.280000e+02 : f32
    %26 = vector.broadcast %cst_29 : f32 to vector<1x1xf32>
    %27 = arith.divf %25, %26 : vector<1x1xf32>
    %28 = vector.broadcast %27 : vector<1x1xf32> to vector<1x128xf32>
    %29 = arith.subf %23, %28 : vector<1x128xf32>
    %30 = arith.mulf %29, %29 : vector<1x128xf32>
    %cst_30 = arith.constant dense<0.000000e+00> : vector<1xf32>
    %31 = vector.multi_reduction <add>, %30, %cst_30 [1] : vector<1x128xf32> to vector<1xf32>
    %32 = vector.shape_cast %31 : vector<1xf32> to vector<1x1xf32>
    %cst_31 = arith.constant 1.280000e+02 : f32
    %33 = vector.broadcast %cst_31 : f32 to vector<1x1xf32>
    %34 = arith.divf %32, %33 : vector<1x1xf32>
    %35 = vector.broadcast %27 : vector<1x1xf32> to vector<1x128xf32>
    %36 = arith.subf %23, %35 : vector<1x128xf32>
    %cst_32 = arith.constant 9.99999996E-13 : f32
    %37 = vector.broadcast %cst_32 : f32 to vector<1x1xf32>
    %38 = arith.addf %34, %37 : vector<1x1xf32>
    %39 = math.rsqrt %38 : vector<1x1xf32>
    %40 = vector.broadcast %39 : vector<1x1xf32> to vector<1x128xf32>
    %41 = arith.mulf %36, %40 : vector<1x128xf32>
    %42 = arith.mulf %41, %0 : vector<1x128xf32>
    %43 = arith.addf %42, %1 : vector<1x128xf32>
    %44 = vector.shape_cast %43 : vector<1x128xf32> to vector<1x1x128xf32>
    %45 = vector.shape_cast %44 : vector<1x1x128xf32> to vector<1x1x128xf32>
    %46 = vector.broadcast %45 : vector<1x1x128xf32> to vector<2x1x128xf32>
    %c0_33 = arith.constant 0 : index
    %c0_34 = arith.constant 0 : index
    %c0_35 = arith.constant 0 : index
    %47 = vector.load %arg12[%c0_33, %c0_34, %c0_35] : memref<2x16x128xf32, #tpu.memory_space<vmem>>, vector<2x1x128xf32>
    tpu.vector_store %arg12[%c0_33, %c0_34, %c0_35], %46 {strides = array<i32>} : memref<2x16x128xf32, #tpu.memory_space<vmem>>, vector<2x1x128xf32>,
    %c1 = arith.constant 1 : index
    %c0_36 = arith.constant 0 : index
    %48 = vector.load %arg8[%c1, %c0_36] : memref<7x128xf32, #tpu.memory_space<vmem>>, vector<1x128xf32>
    %49 = vector.broadcast %48 : vector<1x128xf32> to vector<2x128xf32>
    %50 = arith.addf %49, %11 : vector<2x128xf32>
    %cst_37 = arith.constant dense<0.000000e+00> : vector<2xf32>
    %51 = vector.multi_reduction <add>, %50, %cst_37 [1] : vector<2x128xf32> to vector<2xf32>
    %52 = vector.shape_cast %51 : vector<2xf32> to vector<2x1xf32>
    %cst_38 = arith.constant 1.280000e+02 : f32
    %53 = vector.broadcast %cst_38 : f32 to vector<2x1xf32>
    %54 = arith.divf %52, %53 : vector<2x1xf32>
    %55 = vector.broadcast %54 : vector<2x1xf32> to vector<2x128xf32>
    %56 = arith.subf %50, %55 : vector<2x128xf32>
    %57 = arith.mulf %56, %56 : vector<2x128xf32>
    %cst_39 = arith.constant dense<0.000000e+00> : vector<2xf32>
    %58 = vector.multi_reduction <add>, %57, %cst_39 [1] : vector<2x128xf32> to vector<2xf32>
    %59 = vector.shape_cast %58 : vector<2xf32> to vector<2x1xf32>
    %cst_40 = arith.constant 1.280000e+02 : f32
    %60 = vector.broadcast %cst_40 : f32 to vector<2x1xf32>
    %61 = arith.divf %59, %60 : vector<2x1xf32>
    %62 = vector.broadcast %54 : vector<2x1xf32> to vector<2x128xf32>
    %63 = arith.subf %50, %62 : vector<2x128xf32>
    %cst_41 = arith.constant 9.99999996E-13 : f32
    %64 = vector.broadcast %cst_41 : f32 to vector<2x1xf32>
    %65 = arith.addf %61, %64 : vector<2x1xf32>
    %66 = math.rsqrt %65 : vector<2x1xf32>
    %67 = vector.broadcast %66 : vector<2x1xf32> to vector<2x128xf32>
    %68 = arith.mulf %63, %67 : vector<2x128xf32>
    %69 = vector.broadcast %0 : vector<1x128xf32> to vector<2x128xf32>
    %70 = arith.mulf %68, %69 : vector<2x128xf32>
    %71 = vector.broadcast %1 : vector<1x128xf32> to vector<2x128xf32>
    %72 = arith.addf %70, %71 : vector<2x128xf32>
    %73 = vector.shape_cast %72 : vector<2x128xf32> to vector<2x1x128xf32>
    %c0_42 = arith.constant 0 : index
    %c1_43 = arith.constant 1 : index
    %c0_44 = arith.constant 0 : index
    %74 = vector.load %arg12[%c0_42, %c1_43, %c0_44] : memref<2x16x128xf32, #tpu.memory_space<vmem>>, vector<2x1x128xf32>
    tpu.vector_store %arg12[%c0_42, %c1_43, %c0_44], %73 {strides = array<i32>} : memref<2x16x128xf32, #tpu.memory_space<vmem>>, vector<2x1x128xf32>,
    %c2 = arith.constant 2 : index
    %c0_45 = arith.constant 0 : index
    %75 = vector.load %arg8[%c2, %c0_45] : memref<7x128xf32, #tpu.memory_space<vmem>>, vector<1x128xf32>
    %cst_46 = arith.constant dense<0.000000e+00> : vector<1xf32>
    %76 = vector.multi_reduction <add>, %75, %cst_46 [1] : vector<1x128xf32> to vector<1xf32>
    %77 = vector.shape_cast %76 : vector<1xf32> to vector<1x1xf32>
    %cst_47 = arith.constant 1.280000e+02 : f32
    %78 = vector.broadcast %cst_47 : f32 to vector<1x1xf32>
    %79 = arith.divf %77, %78 : vector<1x1xf32>
    %80 = vector.broadcast %79 : vector<1x1xf32> to vector<1x128xf32>
    %81 = arith.subf %75, %80 : vector<1x128xf32>
    %82 = arith.mulf %81, %81 : vector<1x128xf32>
    %cst_48 = arith.constant dense<0.000000e+00> : vector<1xf32>
    %83 = vector.multi_reduction <add>, %82, %cst_48 [1] : vector<1x128xf32> to vector<1xf32>
    %84 = vector.shape_cast %83 : vector<1xf32> to vector<1x1xf32>
    %cst_49 = arith.constant 1.280000e+02 : f32
    %85 = vector.broadcast %cst_49 : f32 to vector<1x1xf32>
    %86 = arith.divf %84, %85 : vector<1x1xf32>
    %87 = vector.broadcast %79 : vector<1x1xf32> to vector<1x128xf32>
    %88 = arith.subf %75, %87 : vector<1x128xf32>
    %cst_50 = arith.constant 9.99999996E-13 : f32
    %89 = vector.broadcast %cst_50 : f32 to vector<1x1xf32>
    %90 = arith.addf %86, %89 : vector<1x1xf32>
    %91 = math.rsqrt %90 : vector<1x1xf32>
    %92 = vector.broadcast %91 : vector<1x1xf32> to vector<1x128xf32>
    %93 = arith.mulf %88, %92 : vector<1x128xf32>
    %94 = arith.mulf %93, %0 : vector<1x128xf32>
    %95 = arith.addf %94, %1 : vector<1x128xf32>
    %96 = vector.shape_cast %95 : vector<1x128xf32> to vector<1x1x128xf32>
    %97 = vector.shape_cast %96 : vector<1x1x128xf32> to vector<1x1x128xf32>
    %98 = vector.broadcast %97 : vector<1x1x128xf32> to vector<2x1x128xf32>
    %c0_51 = arith.constant 0 : index
    %c2_52 = arith.constant 2 : index
    %c0_53 = arith.constant 0 : index
    %99 = vector.load %arg12[%c0_51, %c2_52, %c0_53] : memref<2x16x128xf32, #tpu.memory_space<vmem>>, vector<2x1x128xf32>
    tpu.vector_store %arg12[%c0_51, %c2_52, %c0_53], %98 {strides = array<i32>} : memref<2x16x128xf32, #tpu.memory_space<vmem>>, vector<2x1x128xf32>,
    %c3 = arith.constant 3 : index
    %c0_54 = arith.constant 0 : index
    %100 = vector.load %arg8[%c3, %c0_54] : memref<7x128xf32, #tpu.memory_space<vmem>>, vector<1x128xf32>
    %101 = vector.broadcast %100 : vector<1x128xf32> to vector<2x128xf32>
    %102 = arith.addf %101, %16 : vector<2x128xf32>
    %cst_55 = arith.constant dense<0.000000e+00> : vector<2xf32>
    %103 = vector.multi_reduction <add>, %102, %cst_55 [1] : vector<2x128xf32> to vector<2xf32>
    %104 = vector.shape_cast %103 : vector<2xf32> to vector<2x1xf32>
    %cst_56 = arith.constant 1.280000e+02 : f32
    %105 = vector.broadcast %cst_56 : f32 to vector<2x1xf32>
    %106 = arith.divf %104, %105 : vector<2x1xf32>
    %107 = vector.broadcast %106 : vector<2x1xf32> to vector<2x128xf32>
    %108 = arith.subf %102, %107 : vector<2x128xf32>
    %109 = arith.mulf %108, %108 : vector<2x128xf32>
    %cst_57 = arith.constant dense<0.000000e+00> : vector<2xf32>
    %110 = vector.multi_reduction <add>, %109, %cst_57 [1] : vector<2x128xf32> to vector<2xf32>
    %111 = vector.shape_cast %110 : vector<2xf32> to vector<2x1xf32>
    %cst_58 = arith.constant 1.280000e+02 : f32
    %112 = vector.broadcast %cst_58 : f32 to vector<2x1xf32>
    %113 = arith.divf %111, %112 : vector<2x1xf32>
    %114 = vector.broadcast %106 : vector<2x1xf32> to vector<2x128xf32>
    %115 = arith.subf %102, %114 : vector<2x128xf32>
    %cst_59 = arith.constant 9.99999996E-13 : f32
    %116 = vector.broadcast %cst_59 : f32 to vector<2x1xf32>
    %117 = arith.addf %113, %116 : vector<2x1xf32>
    %118 = math.rsqrt %117 : vector<2x1xf32>
    %119 = vector.broadcast %118 : vector<2x1xf32> to vector<2x128xf32>
    %120 = arith.mulf %115, %119 : vector<2x128xf32>
    %121 = vector.broadcast %0 : vector<1x128xf32> to vector<2x128xf32>
    %122 = arith.mulf %120, %121 : vector<2x128xf32>
    %123 = vector.broadcast %1 : vector<1x128xf32> to vector<2x128xf32>
    %124 = arith.addf %122, %123 : vector<2x128xf32>
    %125 = vector.shape_cast %124 : vector<2x128xf32> to vector<2x1x128xf32>
    %c0_60 = arith.constant 0 : index
    %c3_61 = arith.constant 3 : index
    %c0_62 = arith.constant 0 : index
    %126 = vector.load %arg12[%c0_60, %c3_61, %c0_62] : memref<2x16x128xf32, #tpu.memory_space<vmem>>, vector<2x1x128xf32>
    tpu.vector_store %arg12[%c0_60, %c3_61, %c0_62], %125 {strides = array<i32>} : memref<2x16x128xf32, #tpu.memory_space<vmem>>, vector<2x1x128xf32>,
    %c4 = arith.constant 4 : index
    %c0_63 = arith.constant 0 : index
    %127 = vector.load %arg8[%c4, %c0_63] : memref<7x128xf32, #tpu.memory_space<vmem>>, vector<1x128xf32>
    %cst_64 = arith.constant dense<0.000000e+00> : vector<1xf32>
    %128 = vector.multi_reduction <add>, %127, %cst_64 [1] : vector<1x128xf32> to vector<1xf32>
    %129 = vector.shape_cast %128 : vector<1xf32> to vector<1x1xf32>
    %cst_65 = arith.constant 1.280000e+02 : f32
    %130 = vector.broadcast %cst_65 : f32 to vector<1x1xf32>
    %131 = arith.divf %129, %130 : vector<1x1xf32>
    %132 = vector.broadcast %131 : vector<1x1xf32> to vector<1x128xf32>
    %133 = arith.subf %127, %132 : vector<1x128xf32>
    %134 = arith.mulf %133, %133 : vector<1x128xf32>
    %cst_66 = arith.constant dense<0.000000e+00> : vector<1xf32>
    %135 = vector.multi_reduction <add>, %134, %cst_66 [1] : vector<1x128xf32> to vector<1xf32>
    %136 = vector.shape_cast %135 : vector<1xf32> to vector<1x1xf32>
    %cst_67 = arith.constant 1.280000e+02 : f32
    %137 = vector.broadcast %cst_67 : f32 to vector<1x1xf32>
    %138 = arith.divf %136, %137 : vector<1x1xf32>
    %139 = vector.broadcast %131 : vector<1x1xf32> to vector<1x128xf32>
    %140 = arith.subf %127, %139 : vector<1x128xf32>
    %cst_68 = arith.constant 9.99999996E-13 : f32
    %141 = vector.broadcast %cst_68 : f32 to vector<1x1xf32>
    %142 = arith.addf %138, %141 : vector<1x1xf32>
    %143 = math.rsqrt %142 : vector<1x1xf32>
    %144 = vector.broadcast %143 : vector<1x1xf32> to vector<1x128xf32>
    %145 = arith.mulf %140, %144 : vector<1x128xf32>
    %146 = arith.mulf %145, %0 : vector<1x128xf32>
    %147 = arith.addf %146, %1 : vector<1x128xf32>
    %148 = vector.shape_cast %147 : vector<1x128xf32> to vector<1x1x128xf32>
    %149 = vector.shape_cast %148 : vector<1x1x128xf32> to vector<1x1x128xf32>
    %150 = vector.broadcast %149 : vector<1x1x128xf32> to vector<2x1x128xf32>
    %c0_69 = arith.constant 0 : index
    %c4_70 = arith.constant 4 : index
    %c0_71 = arith.constant 0 : index
    %151 = vector.load %arg12[%c0_69, %c4_70, %c0_71] : memref<2x16x128xf32, #tpu.memory_space<vmem>>, vector<2x1x128xf32>
    tpu.vector_store %arg12[%c0_69, %c4_70, %c0_71], %150 {strides = array<i32>} : memref<2x16x128xf32, #tpu.memory_space<vmem>>, vector<2x1x128xf32>,
    %c5 = arith.constant 5 : index
    %c0_72 = arith.constant 0 : index
    %152 = vector.load %arg8[%c5, %c0_72] : memref<7x128xf32, #tpu.memory_space<vmem>>, vector<1x128xf32>
    %153 = vector.broadcast %152 : vector<1x128xf32> to vector<2x128xf32>
    %154 = arith.addf %153, %22 : vector<2x128xf32>
    %cst_73 = arith.constant dense<0.000000e+00> : vector<2xf32>
    %155 = vector.multi_reduction <add>, %154, %cst_73 [1] : vector<2x128xf32> to vector<2xf32>
    %156 = vector.shape_cast %155 : vector<2xf32> to vector<2x1xf32>
    %cst_74 = arith.constant 1.280000e+02 : f32
    %157 = vector.broadcast %cst_74 : f32 to vector<2x1xf32>
    %158 = arith.divf %156, %157 : vector<2x1xf32>
    %159 = vector.broadcast %158 : vector<2x1xf32> to vector<2x128xf32>
    %160 = arith.subf %154, %159 : vector<2x128xf32>
    %161 = arith.mulf %160, %160 : vector<2x128xf32>
    %cst_75 = arith.constant dense<0.000000e+00> : vector<2xf32>
    %162 = vector.multi_reduction <add>, %161, %cst_75 [1] : vector<2x128xf32> to vector<2xf32>
    %163 = vector.shape_cast %162 : vector<2xf32> to vector<2x1xf32>
    %cst_76 = arith.constant 1.280000e+02 : f32
    %164 = vector.broadcast %cst_76 : f32 to vector<2x1xf32>
    %165 = arith.divf %163, %164 : vector<2x1xf32>
    %166 = vector.broadcast %158 : vector<2x1xf32> to vector<2x128xf32>
    %167 = arith.subf %154, %166 : vector<2x128xf32>
    %cst_77 = arith.constant 9.99999996E-13 : f32
    %168 = vector.broadcast %cst_77 : f32 to vector<2x1xf32>
    %169 = arith.addf %165, %168 : vector<2x1xf32>
    %170 = math.rsqrt %169 : vector<2x1xf32>
    %171 = vector.broadcast %170 : vector<2x1xf32> to vector<2x128xf32>
    %172 = arith.mulf %167, %171 : vector<2x128xf32>
    %173 = vector.broadcast %0 : vector<1x128xf32> to vector<2x128xf32>
    %174 = arith.mulf %172, %173 : vector<2x128xf32>
    %175 = vector.broadcast %1 : vector<1x128xf32> to vector<2x128xf32>
    %176 = arith.addf %174, %175 : vector<2x128xf32>
    %177 = vector.shape_cast %176 : vector<2x128xf32> to vector<2x1x128xf32>
    %c0_78 = arith.constant 0 : index
    %c5_79 = arith.constant 5 : index
    %c0_80 = arith.constant 0 : index
    %178 = vector.load %arg12[%c0_78, %c5_79, %c0_80] : memref<2x16x128xf32, #tpu.memory_space<vmem>>, vector<2x1x128xf32>
    tpu.vector_store %arg12[%c0_78, %c5_79, %c0_80], %177 {strides = array<i32>} : memref<2x16x128xf32, #tpu.memory_space<vmem>>, vector<2x1x128xf32>,
    %c6 = arith.constant 6 : index
    %c0_81 = arith.constant 0 : index
    %179 = vector.load %arg8[%c6, %c0_81] : memref<7x128xf32, #tpu.memory_space<vmem>>, vector<1x128xf32>
    %cst_82 = arith.constant dense<0.000000e+00> : vector<1xf32>
    %180 = vector.multi_reduction <add>, %179, %cst_82 [1] : vector<1x128xf32> to vector<1xf32>
    %181 = vector.shape_cast %180 : vector<1xf32> to vector<1x1xf32>
    %cst_83 = arith.constant 1.280000e+02 : f32
    %182 = vector.broadcast %cst_83 : f32 to vector<1x1xf32>
    %183 = arith.divf %181, %182 : vector<1x1xf32>
    %184 = vector.broadcast %183 : vector<1x1xf32> to vector<1x128xf32>
    %185 = arith.subf %179, %184 : vector<1x128xf32>
    %186 = arith.mulf %185, %185 : vector<1x128xf32>
    %cst_84 = arith.constant dense<0.000000e+00> : vector<1xf32>
    %187 = vector.multi_reduction <add>, %186, %cst_84 [1] : vector<1x128xf32> to vector<1xf32>
    %188 = vector.shape_cast %187 : vector<1xf32> to vector<1x1xf32>
    %cst_85 = arith.constant 1.280000e+02 : f32
    %189 = vector.broadcast %cst_85 : f32 to vector<1x1xf32>
    %190 = arith.divf %188, %189 : vector<1x1xf32>
    %191 = vector.broadcast %183 : vector<1x1xf32> to vector<1x128xf32>
    %192 = arith.subf %179, %191 : vector<1x128xf32>
    %cst_86 = arith.constant 9.99999996E-13 : f32
    %193 = vector.broadcast %cst_86 : f32 to vector<1x1xf32>
    %194 = arith.addf %190, %193 : vector<1x1xf32>
    %195 = math.rsqrt %194 : vector<1x1xf32>
    %196 = vector.broadcast %195 : vector<1x1xf32> to vector<1x128xf32>
    %197 = arith.mulf %192, %196 : vector<1x128xf32>
    %198 = arith.mulf %197, %0 : vector<1x128xf32>
    %199 = arith.addf %198, %1 : vector<1x128xf32>
    %200 = vector.shape_cast %199 : vector<1x128xf32> to vector<1x1x128xf32>
    %201 = vector.shape_cast %200 : vector<1x1x128xf32> to vector<1x1x128xf32>
    %202 = vector.broadcast %201 : vector<1x1x128xf32> to vector<2x1x128xf32>
    %c0_87 = arith.constant 0 : index
    %c6_88 = arith.constant 6 : index
    %c0_89 = arith.constant 0 : index
    %203 = vector.load %arg12[%c0_87, %c6_88, %c0_89] : memref<2x16x128xf32, #tpu.memory_space<vmem>>, vector<2x1x128xf32>
    tpu.vector_store %arg12[%c0_87, %c6_88, %c0_89], %202 {strides = array<i32>} : memref<2x16x128xf32, #tpu.memory_space<vmem>>, vector<2x1x128xf32>,
    %c0_90 = arith.constant 0 : index
    %c0_91 = arith.constant 0 : index
    %c0_92 = arith.constant 0 : index
    %204 = vector.load %arg9[%c0_90, %c0_91, %c0_92] : memref<2x9x128xf32, #tpu.memory_space<vmem>>, vector<2x9x128xf32>
    %cst_93 = arith.constant dense<0.000000e+00> : vector<2x9xf32>
    %205 = vector.multi_reduction <add>, %204, %cst_93 [2] : vector<2x9x128xf32> to vector<2x9xf32>
    %206 = vector.shape_cast %205 : vector<2x9xf32> to vector<2x9x1xf32>
    %cst_94 = arith.constant 1.280000e+02 : f32
    %207 = vector.broadcast %cst_94 : f32 to vector<2x9x1xf32>
    %208 = arith.divf %206, %207 : vector<2x9x1xf32>
    %209 = vector.broadcast %208 : vector<2x9x1xf32> to vector<2x9x128xf32>
    %210 = arith.subf %204, %209 : vector<2x9x128xf32>
    %211 = arith.mulf %210, %210 : vector<2x9x128xf32>
    %cst_95 = arith.constant dense<0.000000e+00> : vector<2x9xf32>
    %212 = vector.multi_reduction <add>, %211, %cst_95 [2] : vector<2x9x128xf32> to vector<2x9xf32>
    %213 = vector.shape_cast %212 : vector<2x9xf32> to vector<2x9x1xf32>
    %cst_96 = arith.constant 1.280000e+02 : f32
    %214 = vector.broadcast %cst_96 : f32 to vector<2x9x1xf32>
    %215 = arith.divf %213, %214 : vector<2x9x1xf32>
    %216 = vector.broadcast %208 : vector<2x9x1xf32> to vector<2x9x128xf32>
    %217 = arith.subf %204, %216 : vector<2x9x128xf32>
    %cst_97 = arith.constant 9.99999996E-13 : f32
    %218 = vector.broadcast %cst_97 : f32 to vector<2x9x1xf32>
    %219 = arith.addf %215, %218 : vector<2x9x1xf32>
    %220 = math.rsqrt %219 : vector<2x9x1xf32>
    %221 = vector.broadcast %220 : vector<2x9x1xf32> to vector<2x9x128xf32>
    %222 = arith.mulf %217, %221 : vector<2x9x128xf32>
    %223 = vector.shape_cast %0 : vector<1x128xf32> to vector<1x1x128xf32>
    %224 = vector.broadcast %223 : vector<1x1x128xf32> to vector<2x9x128xf32>
    %225 = arith.mulf %222, %224 : vector<2x9x128xf32>
    %226 = vector.shape_cast %1 : vector<1x128xf32> to vector<1x1x128xf32>
    %227 = vector.broadcast %226 : vector<1x1x128xf32> to vector<2x9x128xf32>
    %228 = arith.addf %225, %227 : vector<2x9x128xf32>
    %c0_98 = arith.constant 0 : index
    %c7 = arith.constant 7 : index
    %c0_99 = arith.constant 0 : index
    %229 = vector.load %arg12[%c0_98, %c7, %c0_99] : memref<2x16x128xf32, #tpu.memory_space<vmem>>, vector<2x9x128xf32>
    tpu.vector_store %arg12[%c0_98, %c7, %c0_99], %228 {strides = array<i32>} : memref<2x16x128xf32, #tpu.memory_space<vmem>>, vector<2x9x128xf32>,
    return
  }
  func.func @transform_0(%arg0: i32) -> (i32, i32) {
    %c0_i32 = arith.constant 0 : i32
    %c0_i32_0 = arith.constant 0 : i32
    %c0_i32_1 = arith.constant 0 : i32
    return %c0_i32, %c0_i32_0 : i32, i32
  }
  func.func @transform_1(%arg0: i32) -> (i32, i32, i32) {
    %c0_i32 = arith.constant 0 : i32
    %c0_i32_0 = arith.constant 0 : i32
    %c0_i32_1 = arith.constant 0 : i32
    %c0_i32_2 = arith.constant 0 : i32
    return %c0_i32, %c0_i32_0, %c0_i32_1 : i32, i32, i32
  }
  func.func @transform_2(%arg0: i32) -> (i32, i32) {
    %c0_i32 = arith.constant 0 : i32
    %c0_i32_0 = arith.constant 0 : i32
    %c0_i32_1 = arith.constant 0 : i32
    return %c0_i32, %c0_i32_0 : i32, i32
  }
  func.func @transform_3(%arg0: i32) -> (i32, i32) {
    %c0_i32 = arith.constant 0 : i32
    %c0_i32_0 = arith.constant 0 : i32
    %c0_i32_1 = arith.constant 0 : i32
    return %c0_i32, %c0_i32_0 : i32, i32
  }
  func.func @transform_4(%arg0: i32) -> (i32, i32) {
    %c0_i32 = arith.constant 0 : i32
    %c0_i32_0 = arith.constant 0 : i32
    %c0_i32_1 = arith.constant 0 : i32
    return %c0_i32, %c0_i32_0 : i32, i32
  }
  func.func @transform_5(%arg0: i32) -> (i32, i32) {
    %c0_i32 = arith.constant 0 : i32
    %c0_i32_0 = arith.constant 0 : i32
    %c0_i32_1 = arith.constant 0 : i32
    return %c0_i32, %c0_i32_0 : i32, i32
  }
  func.func @transform_6(%arg0: i32) -> (i32, i32) {
    %c0_i32 = arith.constant 0 : i32
    %c0_i32_0 = arith.constant 0 : i32
    %c0_i32_1 = arith.constant 0 : i32
    return %c0_i32, %c0_i32_0 : i32, i32
  }
  func.func @transform_7(%arg0: i32) -> (i32, i32) {
    %c0_i32 = arith.constant 0 : i32
    %c0_i32_0 = arith.constant 0 : i32
    %c0_i32_1 = arith.constant 0 : i32
    return %c0_i32, %c0_i32_0 : i32, i32
  }
  func.func @transform_8(%arg0: i32) -> (i32, i32, i32) {
    %c0_i32 = arith.constant 0 : i32
    %c0_i32_0 = arith.constant 0 : i32
    %c0_i32_1 = arith.constant 0 : i32
    %c0_i32_2 = arith.constant 0 : i32
    return %c0_i32, %c0_i32_0, %c0_i32_1 : i32, i32, i32
  }
  func.func @transform_9(%arg0: i32) -> (i32, i32) {
    %c0_i32 = arith.constant 0 : i32
    %c0_i32_0 = arith.constant 0 : i32
    %c0_i32_1 = arith.constant 0 : i32
    return %c0_i32, %c0_i32_0 : i32, i32
  }
  func.func @transform_10(%arg0: i32) -> (i32, i32) {
    %c0_i32 = arith.constant 0 : i32
    %c0_i32_0 = arith.constant 0 : i32
    %c0_i32_1 = arith.constant 0 : i32
    return %c0_i32, %c0_i32_0 : i32, i32
  }
  func.func @transform_11(%arg0: i32) -> (i32, i32, i32) {
    %c0_i32 = arith.constant 0 : i32
    %c0_i32_0 = arith.constant 0 : i32
    %c0_i32_1 = arith.constant 0 : i32
    %c0_i32_2 = arith.constant 0 : i32
    return %c0_i32, %c0_i32_0, %c0_i32_1 : i32, i32, i32
  }
}

module attributes {stable_mosaic.version = 11 : i64} {
  func.func @_encoder_kernel(%arg0: i32, %arg1: memref<32x128xf32, #tpu.memory_space<vmem>>, %arg2: memref<2x16xf32, #tpu.memory_space<vmem>>, %arg3: memref<1x128x128xf32, #tpu.memory_space<vmem>>, %arg4: memref<1x1x128xf32, #tpu.memory_space<vmem>>, %arg5: memref<1x128x128xf32, #tpu.memory_space<vmem>>, %arg6: memref<1x1x128xf32, #tpu.memory_space<vmem>>, %arg7: memref<1x128x128xf32, #tpu.memory_space<vmem>>, %arg8: memref<1x1x128xf32, #tpu.memory_space<vmem>>, %arg9: memref<1x128x128xf32, #tpu.memory_space<vmem>>, %arg10: memref<1x1x128xf32, #tpu.memory_space<vmem>>, %arg11: memref<1x1x128xf32, #tpu.memory_space<vmem>>, %arg12: memref<1x1x128xf32, #tpu.memory_space<vmem>>, %arg13: memref<1x128x256xf32, #tpu.memory_space<vmem>>, %arg14: memref<1x1x256xf32, #tpu.memory_space<vmem>>, %arg15: memref<1x256x128xf32, #tpu.memory_space<vmem>>, %arg16: memref<1x1x128xf32, #tpu.memory_space<vmem>>, %arg17: memref<1x1x128xf32, #tpu.memory_space<vmem>>, %arg18: memref<1x1x128xf32, #tpu.memory_space<vmem>>, %arg19: memref<128x128xf32, #tpu.memory_space<vmem>>, %arg20: memref<1x128xf32, #tpu.memory_space<vmem>>, %arg21: memref<2x128xf32, #tpu.memory_space<vmem>>, %arg22: memref<32x128xf32, #tpu.memory_space<vmem>>) attributes {dimension_semantics = [#tpu.dimension_semantics<arbitrary>], iteration_bounds = array<i64: 2>, scalar_prefetch = 0 : i64, scratch_operands = 1 : i64, tpu.core_type = #tpu.core_type<tc>, window_params = [{pipeline_mode = #tpu.pipeline_mode<synchronous>, transform_indices = @transform_0, window_bounds = array<i64: 32, 128>}, {pipeline_mode = #tpu.pipeline_mode<synchronous>, transform_indices = @transform_1, window_bounds = array<i64: 2, 16>}, {transform_indices = @transform_2, window_bounds = array<i64: 1, 128, 128>}, {transform_indices = @transform_3, window_bounds = array<i64: 1, 1, 128>}, {transform_indices = @transform_4, window_bounds = array<i64: 1, 128, 128>}, {transform_indices = @transform_5, window_bounds = array<i64: 1, 1, 128>}, {transform_indices = @transform_6, window_bounds = array<i64: 1, 128, 128>}, {transform_indices = @transform_7, window_bounds = array<i64: 1, 1, 128>}, {transform_indices = @transform_8, window_bounds = array<i64: 1, 128, 128>}, {transform_indices = @transform_9, window_bounds = array<i64: 1, 1, 128>}, {transform_indices = @transform_10, window_bounds = array<i64: 1, 1, 128>}, {transform_indices = @transform_11, window_bounds = array<i64: 1, 1, 128>}, {transform_indices = @transform_12, window_bounds = array<i64: 1, 128, 256>}, {transform_indices = @transform_13, window_bounds = array<i64: 1, 1, 256>}, {transform_indices = @transform_14, window_bounds = array<i64: 1, 256, 128>}, {transform_indices = @transform_15, window_bounds = array<i64: 1, 1, 128>}, {transform_indices = @transform_16, window_bounds = array<i64: 1, 1, 128>}, {transform_indices = @transform_17, window_bounds = array<i64: 1, 1, 128>}, {pipeline_mode = #tpu.pipeline_mode<synchronous>, transform_indices = @transform_18, window_bounds = array<i64: 128, 128>}, {pipeline_mode = #tpu.pipeline_mode<synchronous>, transform_indices = @transform_19, window_bounds = array<i64: 1, 128>}, {pipeline_mode = #tpu.pipeline_mode<synchronous>, transform_indices = @transform_20, window_bounds = array<i64: 2, 128>}]} {
    %c0_i32 = arith.constant 0 : i32
    %0 = arith.cmpi eq, %arg0, %c0_i32 : i32
    %1 = arith.extui %0 : i1 to i32
    %c0_i32_0 = arith.constant 0 : i32
    %2 = arith.cmpi ne, %1, %c0_i32_0 : i32
    scf.if %2 {
      %c0_115 = arith.constant 0 : index
      %c0_116 = arith.constant 0 : index
      %272 = vector.load %arg1[%c0_115, %c0_116] : memref<32x128xf32, #tpu.memory_space<vmem>>, vector<32x128xf32>
      %c0_117 = arith.constant 0 : index
      %c0_118 = arith.constant 0 : index
      %273 = vector.load %arg22[%c0_117, %c0_118] : memref<32x128xf32, #tpu.memory_space<vmem>>, vector<32x128xf32>
      tpu.vector_store %arg22[%c0_117, %c0_118], %272 {strides = array<i32>} : memref<32x128xf32, #tpu.memory_space<vmem>>, vector<32x128xf32>,
    } else {
    }
    %c0 = arith.constant 0 : index
    %c0_1 = arith.constant 0 : index
    %3 = vector.load %arg22[%c0, %c0_1] : memref<32x128xf32, #tpu.memory_space<vmem>>, vector<32x128xf32>
    %c0_2 = arith.constant 0 : index
    %c0_3 = arith.constant 0 : index
    %c0_4 = arith.constant 0 : index
    %4 = vector.load %arg3[%c0_2, %c0_3, %c0_4] : memref<1x128x128xf32, #tpu.memory_space<vmem>>, vector<1x128x128xf32>
    %5 = vector.shape_cast %4 : vector<1x128x128xf32> to vector<128x128xf32>
    %cst = arith.constant dense<0.000000e+00> : vector<32x128xf32>
    %6 = tpu.matmul %3, %5, %cst {dimension_numbers = #tpu.dot_dimension_numbers<[1], [0], [0], [1], [0, 0, 1, 1], [], []>} : vector<32x128xf32>, vector<128x128xf32>, vector<32x128xf32> -> vector<32x128xf32>
    %c0_5 = arith.constant 0 : index
    %c0_6 = arith.constant 0 : index
    %c0_7 = arith.constant 0 : index
    %7 = vector.load %arg4[%c0_5, %c0_6, %c0_7] : memref<1x1x128xf32, #tpu.memory_space<vmem>>, vector<1x1x128xf32>
    %8 = vector.shape_cast %7 : vector<1x1x128xf32> to vector<1x128xf32>
    %9 = vector.broadcast %8 : vector<1x128xf32> to vector<32x128xf32>
    %10 = arith.addf %6, %9 : vector<32x128xf32>
    %c0_8 = arith.constant 0 : index
    %c0_9 = arith.constant 0 : index
    %c0_10 = arith.constant 0 : index
    %11 = vector.load %arg5[%c0_8, %c0_9, %c0_10] : memref<1x128x128xf32, #tpu.memory_space<vmem>>, vector<1x128x128xf32>
    %12 = vector.shape_cast %11 : vector<1x128x128xf32> to vector<128x128xf32>
    %cst_11 = arith.constant dense<0.000000e+00> : vector<32x128xf32>
    %13 = tpu.matmul %3, %12, %cst_11 {dimension_numbers = #tpu.dot_dimension_numbers<[1], [0], [0], [1], [0, 0, 1, 1], [], []>} : vector<32x128xf32>, vector<128x128xf32>, vector<32x128xf32> -> vector<32x128xf32>
    %c0_12 = arith.constant 0 : index
    %c0_13 = arith.constant 0 : index
    %c0_14 = arith.constant 0 : index
    %14 = vector.load %arg6[%c0_12, %c0_13, %c0_14] : memref<1x1x128xf32, #tpu.memory_space<vmem>>, vector<1x1x128xf32>
    %15 = vector.shape_cast %14 : vector<1x1x128xf32> to vector<1x128xf32>
    %16 = vector.broadcast %15 : vector<1x128xf32> to vector<32x128xf32>
    %17 = arith.addf %13, %16 : vector<32x128xf32>
    %c0_15 = arith.constant 0 : index
    %c0_16 = arith.constant 0 : index
    %c0_17 = arith.constant 0 : index
    %18 = vector.load %arg7[%c0_15, %c0_16, %c0_17] : memref<1x128x128xf32, #tpu.memory_space<vmem>>, vector<1x128x128xf32>
    %19 = vector.shape_cast %18 : vector<1x128x128xf32> to vector<128x128xf32>
    %cst_18 = arith.constant dense<0.000000e+00> : vector<32x128xf32>
    %20 = tpu.matmul %3, %19, %cst_18 {dimension_numbers = #tpu.dot_dimension_numbers<[1], [0], [0], [1], [0, 0, 1, 1], [], []>} : vector<32x128xf32>, vector<128x128xf32>, vector<32x128xf32> -> vector<32x128xf32>
    %c0_19 = arith.constant 0 : index
    %c0_20 = arith.constant 0 : index
    %c0_21 = arith.constant 0 : index
    %21 = vector.load %arg8[%c0_19, %c0_20, %c0_21] : memref<1x1x128xf32, #tpu.memory_space<vmem>>, vector<1x1x128xf32>
    %22 = vector.shape_cast %21 : vector<1x1x128xf32> to vector<1x128xf32>
    %23 = vector.broadcast %22 : vector<1x128xf32> to vector<32x128xf32>
    %24 = arith.addf %20, %23 : vector<32x128xf32>
    %25 = vector.extract_strided_slice %10 {offsets = [0, 0], sizes = [16, 128], strides = [1, 1]} : vector<32x128xf32> to vector<16x128xf32>
    %26 = vector.extract_strided_slice %17 {offsets = [0, 0], sizes = [16, 128], strides = [1, 1]} : vector<32x128xf32> to vector<16x128xf32>
    %27 = vector.extract_strided_slice %24 {offsets = [0, 0], sizes = [16, 128], strides = [1, 1]} : vector<32x128xf32> to vector<16x128xf32>
    %c0_22 = arith.constant 0 : index
    %c0_23 = arith.constant 0 : index
    %28 = vector.load %arg2[%c0_22, %c0_23] : memref<2x16xf32, #tpu.memory_space<vmem>>, vector<1x16xf32>
    %29 = vector.extract_strided_slice %25 {offsets = [0, 0], sizes = [16, 32], strides = [1, 1]} : vector<16x128xf32> to vector<16x32xf32>
    %30 = vector.extract_strided_slice %26 {offsets = [0, 0], sizes = [16, 32], strides = [1, 1]} : vector<16x128xf32> to vector<16x32xf32>
    "tpu.trace_start"() <{level = 10 : i32, message = "qd,kd->qk"}> : () -> ()
    %cst_24 = arith.constant dense<0.000000e+00> : vector<16x16xf32>
    %31 = tpu.matmul %29, %30, %cst_24 {dimension_numbers = #tpu.dot_dimension_numbers<[1], [1], [0], [0], [0, 0, 1, 0], [], []>} : vector<16x32xf32>, vector<16x32xf32>, vector<16x16xf32> -> vector<16x16xf32>
    "tpu.trace_stop"() : () -> ()
    %cst_25 = arith.constant 0.176776692 : f32
    %32 = vector.broadcast %cst_25 : f32 to vector<16x16xf32>
    %33 = arith.mulf %31, %32 : vector<16x16xf32>
    %34 = vector.broadcast %28 : vector<1x16xf32> to vector<16x16xf32>
    %35 = arith.addf %33, %34 : vector<16x16xf32>
    %cst_26 = arith.constant dense<0xFF800000> : vector<16xf32>
    %36 = vector.multi_reduction <maximumf>, %35, %cst_26 [1] : vector<16x16xf32> to vector<16xf32>
    %37 = vector.shape_cast %36 : vector<16xf32> to vector<16x1xf32>
    %38 = vector.broadcast %37 : vector<16x1xf32> to vector<16x16xf32>
    %39 = arith.subf %35, %38 : vector<16x16xf32>
    %40 = math.exp %39 : vector<16x16xf32>
    %cst_27 = arith.constant dense<0.000000e+00> : vector<16xf32>
    %41 = vector.multi_reduction <add>, %40, %cst_27 [1] : vector<16x16xf32> to vector<16xf32>
    %42 = vector.shape_cast %41 : vector<16xf32> to vector<16x1xf32>
    %43 = vector.broadcast %42 : vector<16x1xf32> to vector<16x16xf32>
    %44 = arith.divf %40, %43 : vector<16x16xf32>
    %45 = vector.extract_strided_slice %27 {offsets = [0, 0], sizes = [16, 32], strides = [1, 1]} : vector<16x128xf32> to vector<16x32xf32>
    %cst_28 = arith.constant dense<0.000000e+00> : vector<16x32xf32>
    %46 = tpu.matmul %44, %45, %cst_28 {dimension_numbers = #tpu.dot_dimension_numbers<[1], [0], [0], [1], [0, 0, 1, 1], [], []>} : vector<16x16xf32>, vector<16x32xf32>, vector<16x32xf32> -> vector<16x32xf32>
    %47 = vector.extract_strided_slice %25 {offsets = [0, 32], sizes = [16, 32], strides = [1, 1]} : vector<16x128xf32> to vector<16x32xf32>
    %48 = vector.extract_strided_slice %26 {offsets = [0, 32], sizes = [16, 32], strides = [1, 1]} : vector<16x128xf32> to vector<16x32xf32>
    "tpu.trace_start"() <{level = 10 : i32, message = "qd,kd->qk"}> : () -> ()
    %cst_29 = arith.constant dense<0.000000e+00> : vector<16x16xf32>
    %49 = tpu.matmul %47, %48, %cst_29 {dimension_numbers = #tpu.dot_dimension_numbers<[1], [1], [0], [0], [0, 0, 1, 0], [], []>} : vector<16x32xf32>, vector<16x32xf32>, vector<16x16xf32> -> vector<16x16xf32>
    "tpu.trace_stop"() : () -> ()
    %cst_30 = arith.constant 0.176776692 : f32
    %50 = vector.broadcast %cst_30 : f32 to vector<16x16xf32>
    %51 = arith.mulf %49, %50 : vector<16x16xf32>
    %52 = vector.broadcast %28 : vector<1x16xf32> to vector<16x16xf32>
    %53 = arith.addf %51, %52 : vector<16x16xf32>
    %cst_31 = arith.constant dense<0xFF800000> : vector<16xf32>
    %54 = vector.multi_reduction <maximumf>, %53, %cst_31 [1] : vector<16x16xf32> to vector<16xf32>
    %55 = vector.shape_cast %54 : vector<16xf32> to vector<16x1xf32>
    %56 = vector.broadcast %55 : vector<16x1xf32> to vector<16x16xf32>
    %57 = arith.subf %53, %56 : vector<16x16xf32>
    %58 = math.exp %57 : vector<16x16xf32>
    %cst_32 = arith.constant dense<0.000000e+00> : vector<16xf32>
    %59 = vector.multi_reduction <add>, %58, %cst_32 [1] : vector<16x16xf32> to vector<16xf32>
    %60 = vector.shape_cast %59 : vector<16xf32> to vector<16x1xf32>
    %61 = vector.broadcast %60 : vector<16x1xf32> to vector<16x16xf32>
    %62 = arith.divf %58, %61 : vector<16x16xf32>
    %63 = vector.extract_strided_slice %27 {offsets = [0, 32], sizes = [16, 32], strides = [1, 1]} : vector<16x128xf32> to vector<16x32xf32>
    %cst_33 = arith.constant dense<0.000000e+00> : vector<16x32xf32>
    %64 = tpu.matmul %62, %63, %cst_33 {dimension_numbers = #tpu.dot_dimension_numbers<[1], [0], [0], [1], [0, 0, 1, 1], [], []>} : vector<16x16xf32>, vector<16x32xf32>, vector<16x32xf32> -> vector<16x32xf32>
    %65 = vector.extract_strided_slice %25 {offsets = [0, 64], sizes = [16, 32], strides = [1, 1]} : vector<16x128xf32> to vector<16x32xf32>
    %66 = vector.extract_strided_slice %26 {offsets = [0, 64], sizes = [16, 32], strides = [1, 1]} : vector<16x128xf32> to vector<16x32xf32>
    "tpu.trace_start"() <{level = 10 : i32, message = "qd,kd->qk"}> : () -> ()
    %cst_34 = arith.constant dense<0.000000e+00> : vector<16x16xf32>
    %67 = tpu.matmul %65, %66, %cst_34 {dimension_numbers = #tpu.dot_dimension_numbers<[1], [1], [0], [0], [0, 0, 1, 0], [], []>} : vector<16x32xf32>, vector<16x32xf32>, vector<16x16xf32> -> vector<16x16xf32>
    "tpu.trace_stop"() : () -> ()
    %cst_35 = arith.constant 0.176776692 : f32
    %68 = vector.broadcast %cst_35 : f32 to vector<16x16xf32>
    %69 = arith.mulf %67, %68 : vector<16x16xf32>
    %70 = vector.broadcast %28 : vector<1x16xf32> to vector<16x16xf32>
    %71 = arith.addf %69, %70 : vector<16x16xf32>
    %cst_36 = arith.constant dense<0xFF800000> : vector<16xf32>
    %72 = vector.multi_reduction <maximumf>, %71, %cst_36 [1] : vector<16x16xf32> to vector<16xf32>
    %73 = vector.shape_cast %72 : vector<16xf32> to vector<16x1xf32>
    %74 = vector.broadcast %73 : vector<16x1xf32> to vector<16x16xf32>
    %75 = arith.subf %71, %74 : vector<16x16xf32>
    %76 = math.exp %75 : vector<16x16xf32>
    %cst_37 = arith.constant dense<0.000000e+00> : vector<16xf32>
    %77 = vector.multi_reduction <add>, %76, %cst_37 [1] : vector<16x16xf32> to vector<16xf32>
    %78 = vector.shape_cast %77 : vector<16xf32> to vector<16x1xf32>
    %79 = vector.broadcast %78 : vector<16x1xf32> to vector<16x16xf32>
    %80 = arith.divf %76, %79 : vector<16x16xf32>
    %81 = vector.extract_strided_slice %27 {offsets = [0, 64], sizes = [16, 32], strides = [1, 1]} : vector<16x128xf32> to vector<16x32xf32>
    %cst_38 = arith.constant dense<0.000000e+00> : vector<16x32xf32>
    %82 = tpu.matmul %80, %81, %cst_38 {dimension_numbers = #tpu.dot_dimension_numbers<[1], [0], [0], [1], [0, 0, 1, 1], [], []>} : vector<16x16xf32>, vector<16x32xf32>, vector<16x32xf32> -> vector<16x32xf32>
    %83 = vector.extract_strided_slice %25 {offsets = [0, 96], sizes = [16, 32], strides = [1, 1]} : vector<16x128xf32> to vector<16x32xf32>
    %84 = vector.extract_strided_slice %26 {offsets = [0, 96], sizes = [16, 32], strides = [1, 1]} : vector<16x128xf32> to vector<16x32xf32>
    "tpu.trace_start"() <{level = 10 : i32, message = "qd,kd->qk"}> : () -> ()
    %cst_39 = arith.constant dense<0.000000e+00> : vector<16x16xf32>
    %85 = tpu.matmul %83, %84, %cst_39 {dimension_numbers = #tpu.dot_dimension_numbers<[1], [1], [0], [0], [0, 0, 1, 0], [], []>} : vector<16x32xf32>, vector<16x32xf32>, vector<16x16xf32> -> vector<16x16xf32>
    "tpu.trace_stop"() : () -> ()
    %cst_40 = arith.constant 0.176776692 : f32
    %86 = vector.broadcast %cst_40 : f32 to vector<16x16xf32>
    %87 = arith.mulf %85, %86 : vector<16x16xf32>
    %88 = vector.broadcast %28 : vector<1x16xf32> to vector<16x16xf32>
    %89 = arith.addf %87, %88 : vector<16x16xf32>
    %cst_41 = arith.constant dense<0xFF800000> : vector<16xf32>
    %90 = vector.multi_reduction <maximumf>, %89, %cst_41 [1] : vector<16x16xf32> to vector<16xf32>
    %91 = vector.shape_cast %90 : vector<16xf32> to vector<16x1xf32>
    %92 = vector.broadcast %91 : vector<16x1xf32> to vector<16x16xf32>
    %93 = arith.subf %89, %92 : vector<16x16xf32>
    %94 = math.exp %93 : vector<16x16xf32>
    %cst_42 = arith.constant dense<0.000000e+00> : vector<16xf32>
    %95 = vector.multi_reduction <add>, %94, %cst_42 [1] : vector<16x16xf32> to vector<16xf32>
    %96 = vector.shape_cast %95 : vector<16xf32> to vector<16x1xf32>
    %97 = vector.broadcast %96 : vector<16x1xf32> to vector<16x16xf32>
    %98 = arith.divf %94, %97 : vector<16x16xf32>
    %99 = vector.extract_strided_slice %27 {offsets = [0, 96], sizes = [16, 32], strides = [1, 1]} : vector<16x128xf32> to vector<16x32xf32>
    %cst_43 = arith.constant dense<0.000000e+00> : vector<16x32xf32>
    %100 = tpu.matmul %98, %99, %cst_43 {dimension_numbers = #tpu.dot_dimension_numbers<[1], [0], [0], [1], [0, 0, 1, 1], [], []>} : vector<16x16xf32>, vector<16x32xf32>, vector<16x32xf32> -> vector<16x32xf32>
    %101 = tpu.concatenate %46, %64, %82, %100 in 1 : vector<16x32xf32>, vector<16x32xf32>, vector<16x32xf32>, vector<16x32xf32> -> vector<16x128xf32>
    %102 = vector.extract_strided_slice %10 {offsets = [16, 0], sizes = [16, 128], strides = [1, 1]} : vector<32x128xf32> to vector<16x128xf32>
    %103 = vector.extract_strided_slice %17 {offsets = [16, 0], sizes = [16, 128], strides = [1, 1]} : vector<32x128xf32> to vector<16x128xf32>
    %104 = vector.extract_strided_slice %24 {offsets = [16, 0], sizes = [16, 128], strides = [1, 1]} : vector<32x128xf32> to vector<16x128xf32>
    %c1 = arith.constant 1 : index
    %c0_44 = arith.constant 0 : index
    %105 = vector.load %arg2[%c1, %c0_44] : memref<2x16xf32, #tpu.memory_space<vmem>>, vector<1x16xf32>
    %106 = vector.extract_strided_slice %102 {offsets = [0, 0], sizes = [16, 32], strides = [1, 1]} : vector<16x128xf32> to vector<16x32xf32>
    %107 = vector.extract_strided_slice %103 {offsets = [0, 0], sizes = [16, 32], strides = [1, 1]} : vector<16x128xf32> to vector<16x32xf32>
    "tpu.trace_start"() <{level = 10 : i32, message = "qd,kd->qk"}> : () -> ()
    %cst_45 = arith.constant dense<0.000000e+00> : vector<16x16xf32>
    %108 = tpu.matmul %106, %107, %cst_45 {dimension_numbers = #tpu.dot_dimension_numbers<[1], [1], [0], [0], [0, 0, 1, 0], [], []>} : vector<16x32xf32>, vector<16x32xf32>, vector<16x16xf32> -> vector<16x16xf32>
    "tpu.trace_stop"() : () -> ()
    %cst_46 = arith.constant 0.176776692 : f32
    %109 = vector.broadcast %cst_46 : f32 to vector<16x16xf32>
    %110 = arith.mulf %108, %109 : vector<16x16xf32>
    %111 = vector.broadcast %105 : vector<1x16xf32> to vector<16x16xf32>
    %112 = arith.addf %110, %111 : vector<16x16xf32>
    %cst_47 = arith.constant dense<0xFF800000> : vector<16xf32>
    %113 = vector.multi_reduction <maximumf>, %112, %cst_47 [1] : vector<16x16xf32> to vector<16xf32>
    %114 = vector.shape_cast %113 : vector<16xf32> to vector<16x1xf32>
    %115 = vector.broadcast %114 : vector<16x1xf32> to vector<16x16xf32>
    %116 = arith.subf %112, %115 : vector<16x16xf32>
    %117 = math.exp %116 : vector<16x16xf32>
    %cst_48 = arith.constant dense<0.000000e+00> : vector<16xf32>
    %118 = vector.multi_reduction <add>, %117, %cst_48 [1] : vector<16x16xf32> to vector<16xf32>
    %119 = vector.shape_cast %118 : vector<16xf32> to vector<16x1xf32>
    %120 = vector.broadcast %119 : vector<16x1xf32> to vector<16x16xf32>
    %121 = arith.divf %117, %120 : vector<16x16xf32>
    %122 = vector.extract_strided_slice %104 {offsets = [0, 0], sizes = [16, 32], strides = [1, 1]} : vector<16x128xf32> to vector<16x32xf32>
    %cst_49 = arith.constant dense<0.000000e+00> : vector<16x32xf32>
    %123 = tpu.matmul %121, %122, %cst_49 {dimension_numbers = #tpu.dot_dimension_numbers<[1], [0], [0], [1], [0, 0, 1, 1], [], []>} : vector<16x16xf32>, vector<16x32xf32>, vector<16x32xf32> -> vector<16x32xf32>
    %124 = vector.extract_strided_slice %102 {offsets = [0, 32], sizes = [16, 32], strides = [1, 1]} : vector<16x128xf32> to vector<16x32xf32>
    %125 = vector.extract_strided_slice %103 {offsets = [0, 32], sizes = [16, 32], strides = [1, 1]} : vector<16x128xf32> to vector<16x32xf32>
    "tpu.trace_start"() <{level = 10 : i32, message = "qd,kd->qk"}> : () -> ()
    %cst_50 = arith.constant dense<0.000000e+00> : vector<16x16xf32>
    %126 = tpu.matmul %124, %125, %cst_50 {dimension_numbers = #tpu.dot_dimension_numbers<[1], [1], [0], [0], [0, 0, 1, 0], [], []>} : vector<16x32xf32>, vector<16x32xf32>, vector<16x16xf32> -> vector<16x16xf32>
    "tpu.trace_stop"() : () -> ()
    %cst_51 = arith.constant 0.176776692 : f32
    %127 = vector.broadcast %cst_51 : f32 to vector<16x16xf32>
    %128 = arith.mulf %126, %127 : vector<16x16xf32>
    %129 = vector.broadcast %105 : vector<1x16xf32> to vector<16x16xf32>
    %130 = arith.addf %128, %129 : vector<16x16xf32>
    %cst_52 = arith.constant dense<0xFF800000> : vector<16xf32>
    %131 = vector.multi_reduction <maximumf>, %130, %cst_52 [1] : vector<16x16xf32> to vector<16xf32>
    %132 = vector.shape_cast %131 : vector<16xf32> to vector<16x1xf32>
    %133 = vector.broadcast %132 : vector<16x1xf32> to vector<16x16xf32>
    %134 = arith.subf %130, %133 : vector<16x16xf32>
    %135 = math.exp %134 : vector<16x16xf32>
    %cst_53 = arith.constant dense<0.000000e+00> : vector<16xf32>
    %136 = vector.multi_reduction <add>, %135, %cst_53 [1] : vector<16x16xf32> to vector<16xf32>
    %137 = vector.shape_cast %136 : vector<16xf32> to vector<16x1xf32>
    %138 = vector.broadcast %137 : vector<16x1xf32> to vector<16x16xf32>
    %139 = arith.divf %135, %138 : vector<16x16xf32>
    %140 = vector.extract_strided_slice %104 {offsets = [0, 32], sizes = [16, 32], strides = [1, 1]} : vector<16x128xf32> to vector<16x32xf32>
    %cst_54 = arith.constant dense<0.000000e+00> : vector<16x32xf32>
    %141 = tpu.matmul %139, %140, %cst_54 {dimension_numbers = #tpu.dot_dimension_numbers<[1], [0], [0], [1], [0, 0, 1, 1], [], []>} : vector<16x16xf32>, vector<16x32xf32>, vector<16x32xf32> -> vector<16x32xf32>
    %142 = vector.extract_strided_slice %102 {offsets = [0, 64], sizes = [16, 32], strides = [1, 1]} : vector<16x128xf32> to vector<16x32xf32>
    %143 = vector.extract_strided_slice %103 {offsets = [0, 64], sizes = [16, 32], strides = [1, 1]} : vector<16x128xf32> to vector<16x32xf32>
    "tpu.trace_start"() <{level = 10 : i32, message = "qd,kd->qk"}> : () -> ()
    %cst_55 = arith.constant dense<0.000000e+00> : vector<16x16xf32>
    %144 = tpu.matmul %142, %143, %cst_55 {dimension_numbers = #tpu.dot_dimension_numbers<[1], [1], [0], [0], [0, 0, 1, 0], [], []>} : vector<16x32xf32>, vector<16x32xf32>, vector<16x16xf32> -> vector<16x16xf32>
    "tpu.trace_stop"() : () -> ()
    %cst_56 = arith.constant 0.176776692 : f32
    %145 = vector.broadcast %cst_56 : f32 to vector<16x16xf32>
    %146 = arith.mulf %144, %145 : vector<16x16xf32>
    %147 = vector.broadcast %105 : vector<1x16xf32> to vector<16x16xf32>
    %148 = arith.addf %146, %147 : vector<16x16xf32>
    %cst_57 = arith.constant dense<0xFF800000> : vector<16xf32>
    %149 = vector.multi_reduction <maximumf>, %148, %cst_57 [1] : vector<16x16xf32> to vector<16xf32>
    %150 = vector.shape_cast %149 : vector<16xf32> to vector<16x1xf32>
    %151 = vector.broadcast %150 : vector<16x1xf32> to vector<16x16xf32>
    %152 = arith.subf %148, %151 : vector<16x16xf32>
    %153 = math.exp %152 : vector<16x16xf32>
    %cst_58 = arith.constant dense<0.000000e+00> : vector<16xf32>
    %154 = vector.multi_reduction <add>, %153, %cst_58 [1] : vector<16x16xf32> to vector<16xf32>
    %155 = vector.shape_cast %154 : vector<16xf32> to vector<16x1xf32>
    %156 = vector.broadcast %155 : vector<16x1xf32> to vector<16x16xf32>
    %157 = arith.divf %153, %156 : vector<16x16xf32>
    %158 = vector.extract_strided_slice %104 {offsets = [0, 64], sizes = [16, 32], strides = [1, 1]} : vector<16x128xf32> to vector<16x32xf32>
    %cst_59 = arith.constant dense<0.000000e+00> : vector<16x32xf32>
    %159 = tpu.matmul %157, %158, %cst_59 {dimension_numbers = #tpu.dot_dimension_numbers<[1], [0], [0], [1], [0, 0, 1, 1], [], []>} : vector<16x16xf32>, vector<16x32xf32>, vector<16x32xf32> -> vector<16x32xf32>
    %160 = vector.extract_strided_slice %102 {offsets = [0, 96], sizes = [16, 32], strides = [1, 1]} : vector<16x128xf32> to vector<16x32xf32>
    %161 = vector.extract_strided_slice %103 {offsets = [0, 96], sizes = [16, 32], strides = [1, 1]} : vector<16x128xf32> to vector<16x32xf32>
    "tpu.trace_start"() <{level = 10 : i32, message = "qd,kd->qk"}> : () -> ()
    %cst_60 = arith.constant dense<0.000000e+00> : vector<16x16xf32>
    %162 = tpu.matmul %160, %161, %cst_60 {dimension_numbers = #tpu.dot_dimension_numbers<[1], [1], [0], [0], [0, 0, 1, 0], [], []>} : vector<16x32xf32>, vector<16x32xf32>, vector<16x16xf32> -> vector<16x16xf32>
    "tpu.trace_stop"() : () -> ()
    %cst_61 = arith.constant 0.176776692 : f32
    %163 = vector.broadcast %cst_61 : f32 to vector<16x16xf32>
    %164 = arith.mulf %162, %163 : vector<16x16xf32>
    %165 = vector.broadcast %105 : vector<1x16xf32> to vector<16x16xf32>
    %166 = arith.addf %164, %165 : vector<16x16xf32>
    %cst_62 = arith.constant dense<0xFF800000> : vector<16xf32>
    %167 = vector.multi_reduction <maximumf>, %166, %cst_62 [1] : vector<16x16xf32> to vector<16xf32>
    %168 = vector.shape_cast %167 : vector<16xf32> to vector<16x1xf32>
    %169 = vector.broadcast %168 : vector<16x1xf32> to vector<16x16xf32>
    %170 = arith.subf %166, %169 : vector<16x16xf32>
    %171 = math.exp %170 : vector<16x16xf32>
    %cst_63 = arith.constant dense<0.000000e+00> : vector<16xf32>
    %172 = vector.multi_reduction <add>, %171, %cst_63 [1] : vector<16x16xf32> to vector<16xf32>
    %173 = vector.shape_cast %172 : vector<16xf32> to vector<16x1xf32>
    %174 = vector.broadcast %173 : vector<16x1xf32> to vector<16x16xf32>
    %175 = arith.divf %171, %174 : vector<16x16xf32>
    %176 = vector.extract_strided_slice %104 {offsets = [0, 96], sizes = [16, 32], strides = [1, 1]} : vector<16x128xf32> to vector<16x32xf32>
    %cst_64 = arith.constant dense<0.000000e+00> : vector<16x32xf32>
    %177 = tpu.matmul %175, %176, %cst_64 {dimension_numbers = #tpu.dot_dimension_numbers<[1], [0], [0], [1], [0, 0, 1, 1], [], []>} : vector<16x16xf32>, vector<16x32xf32>, vector<16x32xf32> -> vector<16x32xf32>
    %178 = tpu.concatenate %123, %141, %159, %177 in 1 : vector<16x32xf32>, vector<16x32xf32>, vector<16x32xf32>, vector<16x32xf32> -> vector<16x128xf32>
    %179 = tpu.concatenate %101, %178 in 0 : vector<16x128xf32>, vector<16x128xf32> -> vector<32x128xf32>
    %c0_65 = arith.constant 0 : index
    %c0_66 = arith.constant 0 : index
    %c0_67 = arith.constant 0 : index
    %180 = vector.load %arg9[%c0_65, %c0_66, %c0_67] : memref<1x128x128xf32, #tpu.memory_space<vmem>>, vector<1x128x128xf32>
    %181 = vector.shape_cast %180 : vector<1x128x128xf32> to vector<128x128xf32>
    %cst_68 = arith.constant dense<0.000000e+00> : vector<32x128xf32>
    %182 = tpu.matmul %179, %181, %cst_68 {dimension_numbers = #tpu.dot_dimension_numbers<[1], [0], [0], [1], [0, 0, 1, 1], [], []>} : vector<32x128xf32>, vector<128x128xf32>, vector<32x128xf32> -> vector<32x128xf32>
    %c0_69 = arith.constant 0 : index
    %c0_70 = arith.constant 0 : index
    %c0_71 = arith.constant 0 : index
    %183 = vector.load %arg10[%c0_69, %c0_70, %c0_71] : memref<1x1x128xf32, #tpu.memory_space<vmem>>, vector<1x1x128xf32>
    %184 = vector.shape_cast %183 : vector<1x1x128xf32> to vector<1x128xf32>
    %185 = vector.broadcast %184 : vector<1x128xf32> to vector<32x128xf32>
    %186 = arith.addf %182, %185 : vector<32x128xf32>
    %187 = arith.addf %3, %186 : vector<32x128xf32>
    %c0_72 = arith.constant 0 : index
    %c0_73 = arith.constant 0 : index
    %c0_74 = arith.constant 0 : index
    %188 = vector.load %arg11[%c0_72, %c0_73, %c0_74] : memref<1x1x128xf32, #tpu.memory_space<vmem>>, vector<1x1x128xf32>
    %189 = vector.shape_cast %188 : vector<1x1x128xf32> to vector<1x128xf32>
    %c0_75 = arith.constant 0 : index
    %c0_76 = arith.constant 0 : index
    %c0_77 = arith.constant 0 : index
    %190 = vector.load %arg12[%c0_75, %c0_76, %c0_77] : memref<1x1x128xf32, #tpu.memory_space<vmem>>, vector<1x1x128xf32>
    %191 = vector.shape_cast %190 : vector<1x1x128xf32> to vector<1x128xf32>
    %cst_78 = arith.constant dense<0.000000e+00> : vector<32xf32>
    %192 = vector.multi_reduction <add>, %187, %cst_78 [1] : vector<32x128xf32> to vector<32xf32>
    %193 = vector.shape_cast %192 : vector<32xf32> to vector<32x1xf32>
    %cst_79 = arith.constant 1.280000e+02 : f32
    %194 = vector.broadcast %cst_79 : f32 to vector<32x1xf32>
    %195 = arith.divf %193, %194 : vector<32x1xf32>
    %196 = vector.broadcast %195 : vector<32x1xf32> to vector<32x128xf32>
    %197 = arith.subf %187, %196 : vector<32x128xf32>
    %198 = arith.mulf %197, %197 : vector<32x128xf32>
    %cst_80 = arith.constant dense<0.000000e+00> : vector<32xf32>
    %199 = vector.multi_reduction <add>, %198, %cst_80 [1] : vector<32x128xf32> to vector<32xf32>
    %200 = vector.shape_cast %199 : vector<32xf32> to vector<32x1xf32>
    %cst_81 = arith.constant 1.280000e+02 : f32
    %201 = vector.broadcast %cst_81 : f32 to vector<32x1xf32>
    %202 = arith.divf %200, %201 : vector<32x1xf32>
    %203 = vector.broadcast %195 : vector<32x1xf32> to vector<32x128xf32>
    %204 = arith.subf %187, %203 : vector<32x128xf32>
    %cst_82 = arith.constant 9.99999996E-13 : f32
    %205 = vector.broadcast %cst_82 : f32 to vector<32x1xf32>
    %206 = arith.addf %202, %205 : vector<32x1xf32>
    %207 = math.rsqrt %206 : vector<32x1xf32>
    %208 = vector.broadcast %207 : vector<32x1xf32> to vector<32x128xf32>
    %209 = arith.mulf %204, %208 : vector<32x128xf32>
    %210 = vector.broadcast %189 : vector<1x128xf32> to vector<32x128xf32>
    %211 = arith.mulf %209, %210 : vector<32x128xf32>
    %212 = vector.broadcast %191 : vector<1x128xf32> to vector<32x128xf32>
    %213 = arith.addf %211, %212 : vector<32x128xf32>
    %c0_83 = arith.constant 0 : index
    %c0_84 = arith.constant 0 : index
    %c0_85 = arith.constant 0 : index
    %214 = vector.load %arg13[%c0_83, %c0_84, %c0_85] : memref<1x128x256xf32, #tpu.memory_space<vmem>>, vector<1x128x256xf32>
    %215 = vector.shape_cast %214 : vector<1x128x256xf32> to vector<128x256xf32>
    %cst_86 = arith.constant dense<0.000000e+00> : vector<32x256xf32>
    %216 = tpu.matmul %213, %215, %cst_86 {dimension_numbers = #tpu.dot_dimension_numbers<[1], [0], [0], [1], [0, 0, 1, 1], [], []>} : vector<32x128xf32>, vector<128x256xf32>, vector<32x256xf32> -> vector<32x256xf32>
    %c0_87 = arith.constant 0 : index
    %c0_88 = arith.constant 0 : index
    %c0_89 = arith.constant 0 : index
    %217 = vector.load %arg14[%c0_87, %c0_88, %c0_89] : memref<1x1x256xf32, #tpu.memory_space<vmem>>, vector<1x1x256xf32>
    %218 = vector.shape_cast %217 : vector<1x1x256xf32> to vector<1x256xf32>
    %219 = vector.broadcast %218 : vector<1x256xf32> to vector<32x256xf32>
    %220 = arith.addf %216, %219 : vector<32x256xf32>
    %221 = arith.mulf %220, %220 : vector<32x256xf32>
    %222 = arith.mulf %220, %221 : vector<32x256xf32>
    %cst_90 = arith.constant 4.471500e-02 : f32
    %223 = vector.broadcast %cst_90 : f32 to vector<32x256xf32>
    %224 = arith.mulf %223, %222 : vector<32x256xf32>
    %225 = arith.addf %220, %224 : vector<32x256xf32>
    %cst_91 = arith.constant 0.797884583 : f32
    %226 = vector.broadcast %cst_91 : f32 to vector<32x256xf32>
    %227 = arith.mulf %226, %225 : vector<32x256xf32>
    %228 = math.tanh %227 : vector<32x256xf32>
    %cst_92 = arith.constant 1.000000e+00 : f32
    %229 = vector.broadcast %cst_92 : f32 to vector<32x256xf32>
    %230 = arith.addf %229, %228 : vector<32x256xf32>
    %cst_93 = arith.constant 5.000000e-01 : f32
    %231 = vector.broadcast %cst_93 : f32 to vector<32x256xf32>
    %232 = arith.mulf %231, %230 : vector<32x256xf32>
    %233 = arith.mulf %220, %232 : vector<32x256xf32>
    %c0_94 = arith.constant 0 : index
    %c0_95 = arith.constant 0 : index
    %c0_96 = arith.constant 0 : index
    %234 = vector.load %arg15[%c0_94, %c0_95, %c0_96] : memref<1x256x128xf32, #tpu.memory_space<vmem>>, vector<1x256x128xf32>
    %235 = vector.shape_cast %234 : vector<1x256x128xf32> to vector<256x128xf32>
    %cst_97 = arith.constant dense<0.000000e+00> : vector<32x128xf32>
    %236 = tpu.matmul %233, %235, %cst_97 {dimension_numbers = #tpu.dot_dimension_numbers<[1], [0], [0], [1], [0, 0, 1, 1], [], []>} : vector<32x256xf32>, vector<256x128xf32>, vector<32x128xf32> -> vector<32x128xf32>
    %c0_98 = arith.constant 0 : index
    %c0_99 = arith.constant 0 : index
    %c0_100 = arith.constant 0 : index
    %237 = vector.load %arg16[%c0_98, %c0_99, %c0_100] : memref<1x1x128xf32, #tpu.memory_space<vmem>>, vector<1x1x128xf32>
    %238 = vector.shape_cast %237 : vector<1x1x128xf32> to vector<1x128xf32>
    %239 = vector.broadcast %238 : vector<1x128xf32> to vector<32x128xf32>
    %240 = arith.addf %236, %239 : vector<32x128xf32>
    %241 = arith.addf %213, %240 : vector<32x128xf32>
    %c0_101 = arith.constant 0 : index
    %c0_102 = arith.constant 0 : index
    %c0_103 = arith.constant 0 : index
    %242 = vector.load %arg17[%c0_101, %c0_102, %c0_103] : memref<1x1x128xf32, #tpu.memory_space<vmem>>, vector<1x1x128xf32>
    %243 = vector.shape_cast %242 : vector<1x1x128xf32> to vector<1x128xf32>
    %c0_104 = arith.constant 0 : index
    %c0_105 = arith.constant 0 : index
    %c0_106 = arith.constant 0 : index
    %244 = vector.load %arg18[%c0_104, %c0_105, %c0_106] : memref<1x1x128xf32, #tpu.memory_space<vmem>>, vector<1x1x128xf32>
    %245 = vector.shape_cast %244 : vector<1x1x128xf32> to vector<1x128xf32>
    %cst_107 = arith.constant dense<0.000000e+00> : vector<32xf32>
    %246 = vector.multi_reduction <add>, %241, %cst_107 [1] : vector<32x128xf32> to vector<32xf32>
    %247 = vector.shape_cast %246 : vector<32xf32> to vector<32x1xf32>
    %cst_108 = arith.constant 1.280000e+02 : f32
    %248 = vector.broadcast %cst_108 : f32 to vector<32x1xf32>
    %249 = arith.divf %247, %248 : vector<32x1xf32>
    %250 = vector.broadcast %249 : vector<32x1xf32> to vector<32x128xf32>
    %251 = arith.subf %241, %250 : vector<32x128xf32>
    %252 = arith.mulf %251, %251 : vector<32x128xf32>
    %cst_109 = arith.constant dense<0.000000e+00> : vector<32xf32>
    %253 = vector.multi_reduction <add>, %252, %cst_109 [1] : vector<32x128xf32> to vector<32xf32>
    %254 = vector.shape_cast %253 : vector<32xf32> to vector<32x1xf32>
    %cst_110 = arith.constant 1.280000e+02 : f32
    %255 = vector.broadcast %cst_110 : f32 to vector<32x1xf32>
    %256 = arith.divf %254, %255 : vector<32x1xf32>
    %257 = vector.broadcast %249 : vector<32x1xf32> to vector<32x128xf32>
    %258 = arith.subf %241, %257 : vector<32x128xf32>
    %cst_111 = arith.constant 9.99999996E-13 : f32
    %259 = vector.broadcast %cst_111 : f32 to vector<32x1xf32>
    %260 = arith.addf %256, %259 : vector<32x1xf32>
    %261 = math.rsqrt %260 : vector<32x1xf32>
    %262 = vector.broadcast %261 : vector<32x1xf32> to vector<32x128xf32>
    %263 = arith.mulf %258, %262 : vector<32x128xf32>
    %264 = vector.broadcast %243 : vector<1x128xf32> to vector<32x128xf32>
    %265 = arith.mulf %263, %264 : vector<32x128xf32>
    %266 = vector.broadcast %245 : vector<1x128xf32> to vector<32x128xf32>
    %267 = arith.addf %265, %266 : vector<32x128xf32>
    %c0_112 = arith.constant 0 : index
    %c0_113 = arith.constant 0 : index
    %268 = vector.load %arg22[%c0_112, %c0_113] : memref<32x128xf32, #tpu.memory_space<vmem>>, vector<32x128xf32>
    tpu.vector_store %arg22[%c0_112, %c0_113], %267 {strides = array<i32>} : memref<32x128xf32, #tpu.memory_space<vmem>>, vector<32x128xf32>,
    %c1_i32 = arith.constant 1 : i32
    %269 = arith.cmpi eq, %arg0, %c1_i32 : i32
    %270 = arith.extui %269 : i1 to i32
    %c0_i32_114 = arith.constant 0 : i32
    %271 = arith.cmpi ne, %270, %c0_i32_114 : i32
    scf.if %271 {
      %272 = vector.extract_strided_slice %267 {offsets = [0, 0], sizes = [1, 128], strides = [1, 1]} : vector<32x128xf32> to vector<1x128xf32>
      %273 = vector.extract_strided_slice %267 {offsets = [16, 0], sizes = [1, 128], strides = [1, 1]} : vector<32x128xf32> to vector<1x128xf32>
      %274 = tpu.concatenate %272, %273 in 0 : vector<1x128xf32>, vector<1x128xf32> -> vector<2x128xf32>
      %c0_115 = arith.constant 0 : index
      %c0_116 = arith.constant 0 : index
      %275 = vector.load %arg19[%c0_115, %c0_116] : memref<128x128xf32, #tpu.memory_space<vmem>>, vector<128x128xf32>
      %cst_117 = arith.constant dense<0.000000e+00> : vector<2x128xf32>
      %276 = tpu.matmul %274, %275, %cst_117 {dimension_numbers = #tpu.dot_dimension_numbers<[1], [0], [0], [1], [0, 0, 1, 1], [], []>} : vector<2x128xf32>, vector<128x128xf32>, vector<2x128xf32> -> vector<2x128xf32>
      %c0_118 = arith.constant 0 : index
      %c0_119 = arith.constant 0 : index
      %277 = vector.load %arg20[%c0_118, %c0_119] : memref<1x128xf32, #tpu.memory_space<vmem>>, vector<1x128xf32>
      %278 = vector.broadcast %277 : vector<1x128xf32> to vector<2x128xf32>
      %279 = arith.addf %276, %278 : vector<2x128xf32>
      %280 = math.tanh %279 : vector<2x128xf32>
      %c0_120 = arith.constant 0 : index
      %c0_121 = arith.constant 0 : index
      %281 = vector.load %arg21[%c0_120, %c0_121] : memref<2x128xf32, #tpu.memory_space<vmem>>, vector<2x128xf32>
      tpu.vector_store %arg21[%c0_120, %c0_121], %280 {strides = array<i32>} : memref<2x128xf32, #tpu.memory_space<vmem>>, vector<2x128xf32>,
    } else {
    }
    return
  }
  func.func @transform_0(%arg0: i32) -> (i32, i32) {
    %c0_i32 = arith.constant 0 : i32
    %c0_i32_0 = arith.constant 0 : i32
    %c0_i32_1 = arith.constant 0 : i32
    return %c0_i32, %c0_i32_0 : i32, i32
  }
  func.func @transform_1(%arg0: i32) -> (i32, i32) {
    %c0_i32 = arith.constant 0 : i32
    %c0_i32_0 = arith.constant 0 : i32
    %c0_i32_1 = arith.constant 0 : i32
    return %c0_i32, %c0_i32_0 : i32, i32
  }
  func.func @transform_2(%arg0: i32) -> (i32, i32, i32) {
    %c0_i32 = arith.constant 0 : i32
    %c0_i32_0 = arith.constant 0 : i32
    %c0_i32_1 = arith.constant 0 : i32
    return %arg0, %c0_i32, %c0_i32_0 : i32, i32, i32
  }
  func.func @transform_3(%arg0: i32) -> (i32, i32, i32) {
    %c0_i32 = arith.constant 0 : i32
    %c0_i32_0 = arith.constant 0 : i32
    %c0_i32_1 = arith.constant 0 : i32
    return %arg0, %c0_i32, %c0_i32_0 : i32, i32, i32
  }
  func.func @transform_4(%arg0: i32) -> (i32, i32, i32) {
    %c0_i32 = arith.constant 0 : i32
    %c0_i32_0 = arith.constant 0 : i32
    %c0_i32_1 = arith.constant 0 : i32
    return %arg0, %c0_i32, %c0_i32_0 : i32, i32, i32
  }
  func.func @transform_5(%arg0: i32) -> (i32, i32, i32) {
    %c0_i32 = arith.constant 0 : i32
    %c0_i32_0 = arith.constant 0 : i32
    %c0_i32_1 = arith.constant 0 : i32
    return %arg0, %c0_i32, %c0_i32_0 : i32, i32, i32
  }
  func.func @transform_6(%arg0: i32) -> (i32, i32, i32) {
    %c0_i32 = arith.constant 0 : i32
    %c0_i32_0 = arith.constant 0 : i32
    %c0_i32_1 = arith.constant 0 : i32
    return %arg0, %c0_i32, %c0_i32_0 : i32, i32, i32
  }
  func.func @transform_7(%arg0: i32) -> (i32, i32, i32) {
    %c0_i32 = arith.constant 0 : i32
    %c0_i32_0 = arith.constant 0 : i32
    %c0_i32_1 = arith.constant 0 : i32
    return %arg0, %c0_i32, %c0_i32_0 : i32, i32, i32
  }
  func.func @transform_8(%arg0: i32) -> (i32, i32, i32) {
    %c0_i32 = arith.constant 0 : i32
    %c0_i32_0 = arith.constant 0 : i32
    %c0_i32_1 = arith.constant 0 : i32
    return %arg0, %c0_i32, %c0_i32_0 : i32, i32, i32
  }
  func.func @transform_9(%arg0: i32) -> (i32, i32, i32) {
    %c0_i32 = arith.constant 0 : i32
    %c0_i32_0 = arith.constant 0 : i32
    %c0_i32_1 = arith.constant 0 : i32
    return %arg0, %c0_i32, %c0_i32_0 : i32, i32, i32
  }
  func.func @transform_10(%arg0: i32) -> (i32, i32, i32) {
    %c0_i32 = arith.constant 0 : i32
    %c0_i32_0 = arith.constant 0 : i32
    %c0_i32_1 = arith.constant 0 : i32
    return %arg0, %c0_i32, %c0_i32_0 : i32, i32, i32
  }
  func.func @transform_11(%arg0: i32) -> (i32, i32, i32) {
    %c0_i32 = arith.constant 0 : i32
    %c0_i32_0 = arith.constant 0 : i32
    %c0_i32_1 = arith.constant 0 : i32
    return %arg0, %c0_i32, %c0_i32_0 : i32, i32, i32
  }
  func.func @transform_12(%arg0: i32) -> (i32, i32, i32) {
    %c0_i32 = arith.constant 0 : i32
    %c0_i32_0 = arith.constant 0 : i32
    %c0_i32_1 = arith.constant 0 : i32
    return %arg0, %c0_i32, %c0_i32_0 : i32, i32, i32
  }
  func.func @transform_13(%arg0: i32) -> (i32, i32, i32) {
    %c0_i32 = arith.constant 0 : i32
    %c0_i32_0 = arith.constant 0 : i32
    %c0_i32_1 = arith.constant 0 : i32
    return %arg0, %c0_i32, %c0_i32_0 : i32, i32, i32
  }
  func.func @transform_14(%arg0: i32) -> (i32, i32, i32) {
    %c0_i32 = arith.constant 0 : i32
    %c0_i32_0 = arith.constant 0 : i32
    %c0_i32_1 = arith.constant 0 : i32
    return %arg0, %c0_i32, %c0_i32_0 : i32, i32, i32
  }
  func.func @transform_15(%arg0: i32) -> (i32, i32, i32) {
    %c0_i32 = arith.constant 0 : i32
    %c0_i32_0 = arith.constant 0 : i32
    %c0_i32_1 = arith.constant 0 : i32
    return %arg0, %c0_i32, %c0_i32_0 : i32, i32, i32
  }
  func.func @transform_16(%arg0: i32) -> (i32, i32, i32) {
    %c0_i32 = arith.constant 0 : i32
    %c0_i32_0 = arith.constant 0 : i32
    %c0_i32_1 = arith.constant 0 : i32
    return %arg0, %c0_i32, %c0_i32_0 : i32, i32, i32
  }
  func.func @transform_17(%arg0: i32) -> (i32, i32, i32) {
    %c0_i32 = arith.constant 0 : i32
    %c0_i32_0 = arith.constant 0 : i32
    %c0_i32_1 = arith.constant 0 : i32
    return %arg0, %c0_i32, %c0_i32_0 : i32, i32, i32
  }
  func.func @transform_18(%arg0: i32) -> (i32, i32) {
    %c0_i32 = arith.constant 0 : i32
    %c0_i32_0 = arith.constant 0 : i32
    %c0_i32_1 = arith.constant 0 : i32
    return %c0_i32, %c0_i32_0 : i32, i32
  }
  func.func @transform_19(%arg0: i32) -> (i32, i32) {
    %c0_i32 = arith.constant 0 : i32
    %c0_i32_0 = arith.constant 0 : i32
    %c0_i32_1 = arith.constant 0 : i32
    return %c0_i32, %c0_i32_0 : i32, i32
  }
  func.func @transform_20(%arg0: i32) -> (i32, i32) {
    %c0_i32 = arith.constant 0 : i32
    %c0_i32_0 = arith.constant 0 : i32
    %c0_i32_1 = arith.constant 0 : i32
    return %c0_i32, %c0_i32_0 : i32, i32
  }
}

</mosaic_0001>

<bundles_post_ra>
// kernel: _lambda_.2
= control target key start
LH: loop header
LB: loop body
LE: loop exit
PB: predicated region body
PF: predicated region fallthrough
CT: control target
= control target key end

     0   :  { %16 = vsyncpa [#allocation3], 0  ;;  %s1666_s0 = inlined_call_operand.vmem [shape: f32[2,64], index: 0, kind: input, shape index: {}]   ;;  %s1667_s1 = inlined_call_operand.vmem [shape: f32[2,8,64], index: 1, kind: input, shape index: {}]   ;;  %s1668_s2 = inlined_call_operand.vmem [shape: f32[2,312], index: 2, kind: input, shape index: {}]   ;;  %s1669_s3 = inlined_call_operand.hbm [shape: f32[64,128], index: 3, kind: input, shape index: {}]   ;;  %s1670_s4 = inlined_call_operand.hbm [shape: f32[1,128], index: 4, kind: input, shape index: {}]   ;;  %s1671_s5 = inlined_call_operand.vmem [shape: f32[312,128], index: 5, kind: input, shape index: {}]   ;;  %s1672_s6 = inlined_call_operand.hbm [shape: f32[1,128], index: 6, kind: input, shape index: {}]   ;;  %s1673_s7 = inlined_call_operand.vmem [shape: f32[7,128], index: 7, kind: input, shape index: {}]   ;;  %s1674_s8 = inlined_call_operand.vmem [shape: f32[2,9,128], index: 8, kind: input, shape index: {}]   ;;  %s1675_s9 = inlined_call_operand.hbm [shape: f32[1,128], index: 9, kind: input, shape index: {}]   ;;  %s1676_s10 = inlined_call_operand.hbm [shape: f32[1,128], index: 10, kind: input, shape index: {}]   ;;  %s1677_s11 = inlined_call_operand.vmem [shape: f32[2,16,128], index: 11, kind: output, shape index: {}]  }
   0x1   :  { %17 = vsyncpa [#allocation5], 0 }
   0x2   :  { %18 = vsyncpa [#allocation8], 0  ;;  %s1142_s17 = smov [#allocation4]   ;;  %s1143_s19 = smov [#allocation7]  }
   0x3   :  { %s43_s18 = sshll.u32 %s1142_s17, 4  ;;  %s69_s20 = sshll.u32 %s1143_s19, 4  ;;  %s44_s18 = int_to_ptr.vmem [resolvable:$true] %s43_s18  ;;  %s70_s20 = int_to_ptr.vmem [resolvable:$true] %s69_s20 }
   0x4   :  { %s1026_s23 = scalar_lea.hbm %s1670_s4, 16 }
   0x5   :  { %p1027_p0 = scmp.ne.s32.totalorder %s1670_s4, %s1026_s23  ;;  %p1030_p1 = scmp.lt.u32.totalorder %s1026_s23, %s1670_s4 }
   0x7   :  { %p1032_p2 = pnand %p1030_p1, %p1027_p0 }
   0x9   :  { %1035 = shalt.err (!%p1032_p2)
}
   0xa   :  { %s1036_s28 = scalar_lea.vmem %s44_s18, 16  ;;  %s1040_s29 = scalar_lea.vmem %s44_s18, 32 }
   0xb   :  { %p1037_p3 = scmp.ne.s32.totalorder %s44_s18, %s1036_s28  ;;  %p1041_p4 = scmp.lt.s32.totalorder %s44_s18, %s44_s18 }
   0xc   :  { %p1042_p5 = scmp.lt.s32.totalorder %s1040_s29, %s1036_s28 }
   0xe   :  { %p1043_p6 = por %p1042_p5, %p1041_p4 }
  0x10   :  { %p1044_p7 = pnand %p1043_p6, %p1037_p3 }
  0x12   :  { %1047 = shalt.err (!%p1044_p7)
}
  0x13   :  { %46 = dma.hbm_to_vmem [thread:$0]  %s1670_s4, 16, %s44_s18, [#allocation5]  }
  0x14   :  { %s1048_s15 = scalar_lea.hbm %s1675_s9, 16 }
  0x15   :  { %p1049_p8 = scmp.ne.s32.totalorder %s1675_s9, %s1048_s15  ;;  %p1052_p9 = scmp.lt.u32.totalorder %s1048_s15, %s1675_s9 }
  0x17   :  { %p1054_p10 = pnand %p1052_p9, %p1049_p8 }
  0x19   :  { %1057 = shalt.err (!%p1054_p10)
}
  0x1a   :  { %s1058_s22 = scalar_lea.vmem %s70_s20, 16  ;;  %s1062_s23 = scalar_lea.vmem %s70_s20, 32 }
  0x1b   :  { %p1059_p11 = scmp.ne.s32.totalorder %s70_s20, %s1058_s22  ;;  %p1063_p12 = scmp.lt.s32.totalorder %s70_s20, %s70_s20 }
  0x1c   :  { %p1064_p13 = scmp.lt.s32.totalorder %s1062_s23, %s1058_s22 }
  0x1e   :  { %p1065_p0 = por %p1064_p13, %p1063_p12 }
  0x20   :  { %p1066_p1 = pnand %p1065_p0, %p1059_p11 }
  0x22   :  { %1069 = shalt.err (!%p1066_p1)
}
  0x23   :  { %72 = dma.hbm_to_vmem [thread:$0]  %s1675_s9, 16, %s70_s20, [#allocation8]  }
  0x24   :  { %s1144_s24 = smov [#allocation2]   ;;  %s1070_s28 = scalar_lea.hbm %s1669_s3, 1024 }
  0x25   :  { %s30_s25 = sshll.u32 %s1144_s24, 4  ;;  %p1071_p2 = scmp.ne.s32.totalorder %s1669_s3, %s1070_s28  ;;  %s31_s25 = int_to_ptr.vmem [resolvable:$true] %s30_s25 }
  0x26   :  { %p1074_p3 = scmp.lt.u32.totalorder %s1070_s28, %s1669_s3 }
  0x28   :  { %p1076_p4 = pnand %p1074_p3, %p1071_p2 }
  0x2a   :  { %1079 = shalt.err (!%p1076_p4)
}
  0x2b   :  { %s1080_s14 = scalar_lea.vmem %s31_s25, 1024  ;;  %p1085_p6 = scmp.lt.s32.totalorder %s31_s25, %s31_s25 }
  0x2c   :  { %p1081_p5 = scmp.ne.s32.totalorder %s31_s25, %s1080_s14  ;;  %p1086_p7 = scmp.lt.s32.totalorder %s1080_s14, %s1080_s14 }
  0x2e   :  { %p1087_p8 = por %p1086_p7, %p1085_p6 }
  0x30   :  { %p1088_p9 = pnand %p1087_p8, %p1081_p5 }
  0x32   :  { %1091 = shalt.err (!%p1088_p9)
}
  0x33   :  { %s1145_s9 = smov 128   ;;  %s1146_s20 = smov 8  }
  0x34   :  { %36 = dma.hbm_to_vmem [thread:$0]  %s1669_s3, 1024, %s31_s25, [#allocation3], %s1145_s9, %s1145_s9, %s1146_s20  }
  0x35   :  { %s1147_s17 = smov [#allocation6]   ;;  %s1148_s21 = smov [#allocation9]  }
  0x36   :  { %s55_s19 = sshll.u32 %s1147_s17, 4  ;;  %s79_s22 = sshll.u32 %s1148_s21, 4  ;;  %s56_s19 = int_to_ptr.vmem [resolvable:$true] %s55_s19  ;;  %s80_s22 = int_to_ptr.vmem [resolvable:$true] %s79_s22 }
  0x37   :  { %s1092_s18 = scalar_lea.hbm %s1672_s6, 16 }
  0x38   :  { %p1093_p10 = scmp.ne.s32.totalorder %s1672_s6, %s1092_s18  ;;  %p1096_p11 = scmp.lt.u32.totalorder %s1092_s18, %s1672_s6 }
  0x3a   :  { %p1098_p12 = pnand %p1096_p11, %p1093_p10 }
  0x3c   :  { %1101 = shalt.err (!%p1098_p12)
}
  0x3d   :  { %s1102_s3 = scalar_lea.vmem %s56_s19, 16  ;;  %s1106_s25 = scalar_lea.vmem %s56_s19, 32 }
  0x3e   :  { %p1103_p13 = scmp.ne.s32.totalorder %s56_s19, %s1102_s3  ;;  %p1107_p0 = scmp.lt.s32.totalorder %s56_s19, %s56_s19 }
  0x3f   :  { %p1108_p1 = scmp.lt.s32.totalorder %s1106_s25, %s1102_s3 }
  0x41   :  { %p1109_p2 = por %p1108_p1, %p1107_p0 }
  0x43   :  { %p1110_p3 = pnand %p1109_p2, %p1103_p13 }
  0x45   :  { %1113 = shalt.err (!%p1110_p3)
}
  0x46   :  { %58 = dma.hbm_to_vmem [thread:$0]  %s1672_s6, 16, %s56_s19, [#allocation5]  }
  0x47   :  { %s1114_s14 = scalar_lea.hbm %s1676_s10, 16 }
  0x48   :  { %p1115_p4 = scmp.ne.s32.totalorder %s1676_s10, %s1114_s14  ;;  %p1118_p5 = scmp.lt.u32.totalorder %s1114_s14, %s1676_s10 }
  0x4a   :  { %p1120_p6 = pnand %p1118_p5, %p1115_p4 }
  0x4c   :  { %1123 = shalt.err (!%p1120_p6)
}
  0x4d   :  { %s1124_s17 = scalar_lea.vmem %s80_s22, 16  ;;  %s1128_s21 = scalar_lea.vmem %s80_s22, 32 }
  0x4e   :  { %p1125_p7 = scmp.ne.s32.totalorder %s80_s22, %s1124_s17  ;;  %p1129_p8 = scmp.lt.s32.totalorder %s80_s22, %s80_s22 }
  0x4f   :  { %p1130_p9 = scmp.lt.s32.totalorder %s1128_s21, %s1124_s17 }
  0x51   :  { %p1131_p10 = por %p1130_p9, %p1129_p8 }
  0x53   :  { %p1132_p11 = pnand %p1131_p10, %p1125_p7 }
  0x55   :  { %1135 = shalt.err (!%p1132_p11)
}
  0x56   :  { %82 = dma.hbm_to_vmem [thread:$0]  %s1676_s10, 16, %s80_s22, [#allocation8]  }
  0x57   :  { %1136 = dma.done.wait [#allocation3], 1024  }
  0x58   :  { %1137 = vsyncadd [#allocation3], 4294966272 }
  0x59   :  { %1138 = dma.done.wait [#allocation5], 32  }
  0x5a   :  { %1139 = vsyncadd [#allocation5], 4294967264 }
  0x5b   :  { %1140 = dma.done.wait [#allocation8], 32  }
  0x5c   :  { %1141 = vsyncadd [#allocation8], 4294967264  ;;  %v1149_v0 = vmov 0.0|0.0   ;;  %vm1150_vm0 = vmmov 0   ;;  %v1151_v1 = vmov 0.0   ;;  %v121_v2 = vld [vmem:[#allocation2] sm:$0xff]  ;;  %v337_v25 = vlaneseq }
  0x5d   :  { %926 = vmatprep.subr.bf16.mxu1 %v1149_v0  ;;  %887 = vmatprep.mubr.msk.f32.mxu1 %vm1150_vm0, %v1151_v1  ;;  %v122_v3 = vld [vmem:[#allocation2 + $0x8] sm:$0xff]  ;;  %v123_v4 = vld [vmem:[#allocation2 + $0x10] sm:$0xff]  ;;  %v124_v6 = vld [vmem:[#allocation2 + $0x18] sm:$0xff]  ;;  %vm102_vm1 = vcmask 523264   ;;  %v1152_v23 = vmov 1983009808  }
  0x5e   :  { %v1277_v5 = vpack.c.bf16 %v122_v3, %v121_v2  ;;  %v302_v7 = vld [vmem:[%s1671_s5 + $0x80] sm:$0xff]  ;;  %v303_v8 = vld [vmem:[%s1671_s5 + $0x88] sm:$0xff]  ;;  %v1289_v11 = vpack.c.bf16 %v124_v6, %v123_v4  ;;  %v304_v13 = vld [vmem:[%s1671_s5 + $0x90] sm:$0xff]  ;;  %v335_v24 = vunpack.c.l.s4 %v1152_v23  ;;  %v1337_v44 = vshrl.u32 %v337_v25, 7 }
  0x5f   :  { %v950_v9 = vpack.c.bf16 %v303_v8, %v302_v7  ;;  %v286_v10 = vld [vmem:[%s1671_s5] sm:$0xff]  ;;  %v287_v12 = vld [vmem:[%s1671_s5 + $0x8] sm:$0xff]  ;;  %v305_v14 = vld [vmem:[%s1671_s5 + $0x98] sm:$0xff]  ;;  %vm495_vm2 = vcmask 1040384   ;;  %vm211_vm3 = vcmask 1041409   ;;  %vm351_vm4 = vcmask 457728  }
  0x60   :  { %928 = vmatpush3.bf16.msra.mxu1 %v1277_v5  ;;  %v125_v15 = vld [vmem:[#allocation2 + $0x20] sm:$0xff]  ;;  %v126_v16 = vld [vmem:[#allocation2 + $0x28] sm:$0xff]  ;;  %v952_v17 = vpack.c.bf16 %v287_v12, %v286_v10  ;;  %v954_v18 = vpack.c.bf16 %v305_v14, %v304_v13  ;;  %v288_v19 = vld [vmem:[%s1671_s5 + $0x10] sm:$0xff]  ;;  %v336_v43 = vunpack.c.0.s8 %v335_v24  ;;  %vm520_vm5 = vcmask 1041408  }
  0x61   :  { %929 = vmatprep.subr.bf16.mxu1 %v1149_v0  ;;  %951 = vmatprep.subr.bf16.mxu0 %v950_v9  ;;  %v289_v20 = vld [vmem:[%s1671_s5 + $0x18] sm:$0xff]  ;;  %v100_v21 = vld [vmem:[%s1667_s1] sm:$0xff]  ;;  %v101_v22 = vld [vmem:[%s1667_s1 + $0x8] sm:$0xff]  ;;  %v1322_v31 = vpack.c.bf16 %v126_v16, %v125_v15 }
  0x62   :  { %953 = vmatpush3.bf16.msra.mxu0 %v952_v17  ;;  %v956_v26 = vpack.c.bf16 %v289_v20, %v288_v19  ;;  %v103_v27 = vsel %vm102_vm1, %v100_v21, 0.0  ;;  %v110_v28 = vsel %vm102_vm1, %v101_v22, 0.0  ;;  %v306_v29 = vld [vmem:[%s1671_s5 + $0xa0] sm:$0xff]  ;;  %v307_v30 = vld [vmem:[%s1671_s5 + $0xa8] sm:$0xff]  ;;  %v127_v32 = vld [vmem:[#allocation2 + $0x30] sm:$0xff]  ;;  %v1356_v54 = vsub.s32 %v336_v43, %v1337_v44 }
  0x63   :  { %955 = vmatprep.subr.bf16.mxu0 %v954_v18  ;;  %v104_v33 = vrot.slane %v103_v27, 4  ;;  %v111_v34 = vrot.slane %v110_v28, 4  ;;  %v958_v35 = vpack.c.bf16 %v307_v30, %v306_v29  ;;  %v290_v36 = vld [vmem:[%s1671_s5 + $0x20] sm:$0xff]  ;;  %v291_v37 = vld [vmem:[%s1671_s5 + $0x28] sm:$0xff]  ;;  %v128_v38 = vld [vmem:[#allocation2 + $0x38] sm:$0xff] }
  0x64   :  { %931 = vmatpush3.bf16.msra.mxu1 %v1289_v11  ;;  %v308_v39 = vld [vmem:[%s1671_s5 + $0xb0] sm:$0xff]  ;;  %v309_v40 = vld [vmem:[%s1671_s5 + $0xb8] sm:$0xff]  ;;  %v960_v45 = vpack.c.bf16 %v291_v37, %v290_v36  ;;  %v1340_v46 = vpack.c.bf16 %v128_v38, %v127_v32  ;;  %v310_v52 = vld [vmem:[%s1671_s5 + $0xc0] sm:$0xff] }
  0x65   :  { %932 = vmatprep.subr.bf16.mxu1 %v1149_v0  ;;  %v105_v41 = vadd.f32 %v104_v33, %v103_v27  ;;  %v112_v42 = vadd.f32 %v111_v34, %v110_v28  ;;  %v962_v49 = vpack.c.bf16 %v309_v40, %v308_v39  ;;  %v292_v50 = vld [vmem:[%s1671_s5 + $0x30] sm:$0xff]  ;;  %v293_v51 = vld [vmem:[%s1671_s5 + $0x38] sm:$0xff]  ;;  %v311_v53 = vld [vmem:[%s1671_s5 + $0xc8] sm:$0xff] }
  0x66   :  { %957 = vmatpush3.bf16.msra.mxu0 %v956_v26  ;;  %v964_v55 = vpack.c.bf16 %v293_v51, %v292_v50  ;;  %v120_v58 = vld [vmem:[%s1666_s0] sm:$0x3]  ;;  %v966_v59 = vpack.c.bf16 %v311_v53, %v310_v52  ;;  %v295_v61 = vld [vmem:[%s1671_s5 + $0x48] sm:$0xff]  ;;  %v312_v62 = vld [vmem:[%s1671_s5 + $0xd0] sm:$0xff] }
  0x67   :  { %v106_v47 = vrot.slane %v105_v41, 2  ;;  %v113_v48 = vrot.slane %v112_v42, 2  ;;  %959 = vmatprep.subr.bf16.mxu0 %v958_v35  ;;  %v294_v60 = vld [vmem:[%s1671_s5 + $0x40] sm:$0xff]  ;;  %v313_v63 = vld [vmem:[%s1671_s5 + $0xd8] sm:$0xff]  ;;  %v296_v13 = vld [vmem:[%s1671_s5 + $0x50] sm:$0xff] }
  0x68   :  { %934 = vmatpush3.bf16.msra.mxu1 %v1322_v31  ;;  %v1378_v2 = vld [vmem:[%s1668_s2] sm:$0x3f]  ;;  %v968_v6 = vpack.c.bf16 %v295_v61, %v294_v60  ;;  %v970_v12 = vpack.c.bf16 %v313_v63, %v312_v62  ;;  %v297_v14 = vld [vmem:[%s1671_s5 + $0x58] sm:$0xff]  ;;  %v315_v17 = vld [vmem:[%s1671_s5 + $0xe8] sm:$0xff] }
  0x69   :  { %935 = vmatprep.subr.bf16.mxu1 %v1149_v0  ;;  %v107_v56 = vadd.f32 %v106_v47, %v105_v41  ;;  %v114_v57 = vadd.f32 %v113_v48, %v112_v42  ;;  %v1382_v3 = vrot.slane %v1378_v2, %v1356_v54  ;;  %v1387_v4 = vld [vmem:[%s1673_s7] sm:$0x1]  ;;  %v1395_v8 = vld [vmem:[%s1673_s7 + $0x2] sm:$0x1]  ;;  %v1409_v16 = vld [vmem:[%s1673_s7 + $0x4] sm:$0x1]  ;;  %v972_v20 = vpack.c.bf16 %v297_v14, %v296_v13 }
  0x6a   :  { %961 = vmatpush3.bf16.msra.mxu0 %v960_v45  ;;  %v496_v7 = vsel %vm495_vm2, %v1387_v4, 0.0  ;;  %v576_v18 = vsel %vm495_vm2, %v1395_v8, 0.0  ;;  %v1425_v19 = vld [vmem:[%s1673_s7 + $0x6] sm:$0x1]  ;;  %v642_v21 = vsel %vm495_vm2, %v1409_v16, 0.0  ;;  %v299_v26 = vld [vmem:[%s1671_s5 + $0x68] sm:$0xff]  ;;  %v333_v47 = vcombine.high %v1378_v2, %v1378_v2 }
  0x6b   :  { %963 = vmatprep.subr.bf16.mxu0 %v962_v49  ;;  %v108_v9 = vrot.slane %v107_v56, 1  ;;  %v115_v10 = vrot.slane %v114_v57, 1  ;;  %v348_v15 = vcombine.high %v1382_v3, %v1382_v3  ;;  %497 = vadd.xlane.f32.xlu1 %v496_v7  ;;  %v298_v25 = vld [vmem:[%s1671_s5 + $0x60] sm:$0xff]  ;;  %v708_v27 = vsel %vm495_vm2, %v1425_v19, 0.0  ;;  %v317_v28 = vld [vmem:[%s1671_s5 + $0xf8] sm:$0xff]  ;;  %v300_v34 = vld [vmem:[%s1671_s5 + $0x70] sm:$0xff] }
  0x6c   :  { %937 = vmatpush3.bf16.msra.mxu1 %v1340_v46  ;;  %577 = vadd.xlane.f32.xlu0 %v576_v18  ;;  %v976_v29 = vpack.c.bf16 %v299_v26, %v298_v25  ;;  %v301_v35 = vld [vmem:[%s1671_s5 + $0x78] sm:$0xff]  ;;  %v318_v36 = vld [vmem:[%s1671_s5 + $0x100] sm:$0xff]  ;;  %v320_v40 = vld [vmem:[%s1671_s5 + $0x110] sm:$0xff]  ;;  %v347_v48 = vrot.slane %v333_v47, %v1356_v54 }
  0x6d   :  { %938 = vmatprep.subr.bf16.mxu1 %v1149_v0  ;;  %418 = vmatprep.mubr.f32.mxu0 %v348_v15  ;;  %v109_v22 = vadd.f32 %v108_v9, %v107_v56  ;;  %v116_v23 = vadd.f32 %v115_v10, %v114_v57  ;;  %v980_v37 = vpack.c.bf16 %v301_v35, %v300_v34  ;;  %v321_v41 = vld [vmem:[%s1671_s5 + $0x118] sm:$0xff]  ;;  %v322_v43 = vld [vmem:[%s1671_s5 + $0x120] sm:$0xff]  ;;  %v323_v45 = vld [vmem:[%s1671_s5 + $0x128] sm:$0xff] }
  0x6e   :  { %965 = vmatpush3.bf16.msra.mxu0 %v964_v55  ;;  %v986_v42 = vpack.c.bf16 %v321_v41, %v320_v40  ;;  %v324_v49 = vld [vmem:[%s1671_s5 + $0x130] sm:$0xff]  ;;  %v796_v50 = vld [vmem:[#allocation4] ss:$0 sm:$0xff]  ;;  %v801_v52 = vld [vmem:[%s1673_s7 + $0x1] ss:$0 sm:$0xff] }
  0x6f   :  { %888 = vmatmul.mubr.msk.f32.vlgmr.msra.gmra.mrb[0].mxu1 %vm102_vm1, %v120_v58  ;;  %967 = vmatprep.subr.bf16.mxu0 %v966_v59  ;;  %v118_v30 = vmul.f32 0.125, %v109_v22  ;;  %v119_v32 = vmul.f32 0.125, %v116_v23  ;;  %v804_v57 = vld [vmem:[%s1673_s7 + $0x3] ss:$0 sm:$0xff]  ;;  %v1501_v2 = vld [vmem:[%s1674_s8 + $0x18] sm:$0x1] }
  0x70   :  { %940 = vmatpush3.bf16.msra.mxu1 %v1277_v5  ;;  %906 = vmatprep.mubr.msk.f32.mxu1 %vm1150_vm0, %v1151_v1  ;;  %v314_v5 = vld [vmem:[%s1671_s5 + $0xe0] sm:$0xff]  ;;  %v736_v10 = vsel %vm495_vm2, %v1501_v2, 0.0  ;;  %v1516_v15 = vld [vmem:[%s1674_s8 + $0x10] sm:$0xff]  ;;  %v726_v26 = vld [vmem:[%s1674_s8 + $0x8] sm:$0x1] }
  0x71   :  { %941 = vmatprep.subr.bf16.mxu1 %v1149_v0  ;;  %v974_v24 = vpack.c.bf16 %v315_v17, %v314_v5  ;;  %643 = vadd.xlane.f32.xlu1 %v642_v21  ;;  %v212_v38 = vsel %vm211_vm3, %v119_v32, %v118_v30  ;;  %v799_v13 = vld [vmem:[#allocation6] ss:$0 sm:$0xff]  ;;  %v731_v30 = vsel %vm495_vm2, %v726_v26, 0.0 }
  0x72   :  { %969 = vmatpush3.bf16.msra.mxu0 %v968_v6  ;;  %709 = vadd.xlane.f32.xlu0 %v708_v27  ;;  %v725_v34 = vld [vmem:[%s1674_s8] sm:$0xff] }
  0x73   :  { %971 = vmatprep.subr.bf16.mxu0 %v970_v12 }
  0x74   :  { %943 = vmatpush3.bf16.msra.mxu1 %v1289_v11  ;;  %v316_v11 = vld [vmem:[%s1671_s5 + $0xf0] sm:$0xff] }
  0x75   :  { %944 = vmatprep.subr.bf16.mxu1 %v1149_v0  ;;  %v978_v33 = vpack.c.bf16 %v317_v28, %v316_v11 }
  0x76   :  { %973 = vmatpush3.bf16.msra.mxu0 %v972_v20  ;;  %v807_v20 = vld [vmem:[%s1673_s7 + $0x5] ss:$0 sm:$0xff] }
  0x77   :  { %975 = vmatprep.subr.bf16.mxu0 %v974_v24 }
  0x78   :  { %946 = vmatpush3.bf16.msra.mxu1 %v1322_v31  ;;  %v319_v31 = vld [vmem:[%s1671_s5 + $0x108] sm:$0xff] }
  0x79   :  { %947 = vmatprep.subr.bf16.mxu1 %v1149_v0  ;;  %v983_v39 = vpack.c.bf16 %v319_v31, %v318_v36 }
  0x7a   :  { %977 = vmatpush3.bf16.msra.mxu0 %v976_v29 }
  0x7b   :  { %979 = vmatprep.subr.bf16.mxu0 %v978_v33 }
  0x7c   :  { %949 = vmatpush3.bf16.msra.mxu1 %v1340_v46  ;;  %v989_v46 = vpack.c.bf16 %v323_v45, %v322_v43 }
  0x7d   :  { %982 = vmatprep.subr.bf16.mxu1 %v1149_v0 }
  0x7e   :  { %981 = vmatpush3.bf16.msra.mxu0 %v980_v37 }
  0x7f   :  { %907 = vmatmul.mubr.msk.f32.vlgmr.msra.gmra.mrb[2].mxu1 %vm102_vm1, %v212_v38 }
  0x80   :  { %984 = vmatpush3.bf16.msra.mxu1 %v983_v39  ;;  %923 = vmatprep.mubr.msk.f32.mxu1 %vm1150_vm0, %v1151_v1 }
  0x81   :  { %985 = vmatprep.subr.bf16.mxu1 %v1149_v0  ;;  %419 = vmatmul.mubr.f32.vlgmr.msra.gmra.mrb[0].mxu0 %v1382_v3 }
  0x84   :  { %987 = vmatpush3.bf16.msra.mxu1 %v986_v42 }
  0x85   :  { %988 = vmatprep.subr.bf16.mxu1 %v1149_v0 }
  0x88   :  { %990 = vmatpush3.bf16.msra.mxu1 %v989_v46 }
  0x89   :  { %921 = vmatprep.subr.mxu1 %v1151_v1 }
  0x8c   :  { %922 = vmatpush3.msra.mxu1 %v324_v49 }
  0x8d   :  { %924 = vmatmul.mubr.msk.f32.vlgmr.msra.gmra.mrb[4].mxu1 %vm351_vm4, %v347_v48 }
  0xf8   :  { %v498_v54 = vpop.xlane.xlu1 %497 }
  0xf9   :  { %v500_v62 = vmul.f32 0.0078125, %v498_v54 }
  0xfb   :  { %v1506_v9 = vsub.f32 %v1387_v4, %v500_v62  ;;  %v578_v4 = vpop.xlane.xlu0 %577 }
  0xfc   :  { %v579_v25 = vmul.f32 0.0078125, %v578_v4 }
  0xfd   :  { %v502_v17 = vmul.f32 %v1506_v9, %v1506_v9 }
  0xfe   :  { %v644_v3 = vpop.xlane.xlu1 %643  ;;  %v1533_v29 = vsub.f32 %v1395_v8, %v579_v25 }
  0xff   :  { %v645_v12 = vmul.f32 0.0078125, %v644_v3  ;;  %v503_v22 = vsel %vm495_vm2, %v502_v17, 0.0  ;;  %v710_v27 = vpop.xlane.xlu0 %709  ;;  %v1573_v17 = vld [vmem:[#allocation9] sm:$0x1] }
 0x100   :  { %v711_v32 = vmul.f32 0.0078125, %v710_v27  ;;  %v581_v35 = vmul.f32 %v1533_v29, %v1533_v29 }
 0x101   :  { %v1511_v14 = vsub.f32 %v1409_v16, %v645_v12 }
 0x102   :  { %v1537_v33 = vsub.f32 %v1425_v19, %v711_v32  ;;  %v582_v36 = vsel %vm495_vm2, %v581_v35, 0.0 }
 0x103   :  { %v647_v23 = vmul.f32 %v1511_v14, %v1511_v14 }
 0x104   :  { %v713_v8 = vmul.f32 %v1537_v33, %v1537_v33 }
 0x105   :  { %v648_v28 = vsel %vm495_vm2, %v647_v23, 0.0 }
 0x106   :  { %v714_v31 = vsel %vm495_vm2, %v713_v8, 0.0 }
 0x142   :  { %v205_v51 = vpop.f32.mrb[0].mxu1 }
 0x143   :  { %v206_v53 = vadd.f32 %v796_v50, %v205_v51  ;;  %v889_v0 = vpop.f32.mrb[1].mxu1 }
 0x145   :  { %v1489_v55 = vadd.f32 %v801_v52, %v206_v53 }
 0x147   :  { %v521_v1 = vsel %vm520_vm5, %v1489_v55, 0.0 }
 0x148   :  { %522 = vadd.xlane.f32.xlu0 %v521_v1 }
 0x152   :  { %v281_v56 = vpop.f32.mrb[2].mxu1 }
 0x153   :  { %v282_v58 = vadd.f32 %v796_v50, %v281_v56  ;;  %v908_v59 = vpop.f32.mrb[3].mxu1 }
 0x154   :  { %v860_v61 = vpop.f32.mrb[0].mxu0 }
 0x155   :  { %v1496_v60 = vadd.f32 %v804_v57, %v282_v58  ;;  %v861_v63 = vpop.f32.mrb[1].mxu0 }
 0x156   :  { %v862_v7 = vadd.f32 %v861_v63, %v860_v61 }
 0x157   :  { %v599_v6 = vsel %vm520_vm5, %v1496_v60, 0.0 }
 0x158   :  { %600 = vadd.xlane.f32.xlu0 %v599_v6  ;;  %v421_v5 = vadd.f32 %v862_v7, %v799_v13  ;;  %v1565_v7 = vld [vmem:[#allocation7] sm:$0x1] }
 0x15c   :  { %737 = vadd.xlane.f32.xlu0 %v736_v10 }
 0x160   :  { %734 = vadd.xlane.f32.xlu0 %v1516_v15  ;;  %v490_v18 = vpop.f32.mrb[4].mxu1 }
 0x161   :  { %v491_v21 = vadd.f32 %v490_v18, %v421_v5  ;;  %v925_v16 = vpop.f32.mrb[5].mxu1 }
 0x163   :  { %v664_v24 = vadd.f32 %v807_v20, %v491_v21 }
 0x164   :  { %504 = vadd.xlane.f32.xlu0 %v503_v22 }
 0x165   :  { %v665_v11 = vsel %vm520_vm5, %v664_v24, 0.0 }
 0x166   :  { %666 = vadd.xlane.f32.xlu1 %v665_v11 }
 0x168   :  { %649 = vadd.xlane.f32.xlu0 %v648_v28 }
 0x16a   :  { %732 = vadd.xlane.f32.xlu1 %v731_v30 }
 0x16e   :  { %729 = vadd.xlane.f32.xlu1 %v725_v34 }
 0x172   :  { %583 = vadd.xlane.f32.xlu1 %v582_v36 }
 0x176   :  { %715 = vadd.xlane.f32.xlu1 %v714_v31 }
 0x1d5   :  { %v523_v37 = vpop.xlane.xlu0 %522 }
 0x1d6   :  { %v524_v45 = vmul.f32 0.0078125, %v523_v37 }
 0x1d8   :  { %v1549_v51 = vsub.f32 %v1489_v55, %v524_v45 }
 0x1da   :  { %v526_v59 = vmul.f32 %v1549_v51, %v1549_v51 }
 0x1dc   :  { %v527_v13 = vsel %vm520_vm5, %v526_v59, 0.0 }
 0x1e5   :  { %v601_v19 = vpop.xlane.xlu0 %600 }
 0x1e6   :  { %v602_v52 = vmul.f32 0.0078125, %v601_v19 }
 0x1e8   :  { %v1556_v57 = vsub.f32 %v1496_v60, %v602_v52 }
 0x1e9   :  { %v738_v38 = vpop.xlane.xlu0 %737 }
 0x1ea   :  { %v742_v58 = vmul.f32 0.0078125, %v738_v38  ;;  %v604_v5 = vmul.f32 %v1556_v57, %v1556_v57 }
 0x1ec   :  { %v1576_v4 = vsub.f32 %v1501_v2, %v742_v58  ;;  %v605_v25 = vsel %vm520_vm5, %v604_v5, 0.0 }
 0x1ed   :  { %v735_v39 = vpop.xlane.xlu0 %734 }
 0x1ee   :  { %v741_v61 = vmul.f32 0.0078125, %v735_v39  ;;  %v750_v11 = vmul.f32 %v1576_v4, %v1576_v4 }
 0x1f0   :  { %v1579_v18 = vsub.f32 %v1516_v15, %v741_v61  ;;  %v758_v30 = vsel %vm495_vm2, %v750_v11, 0.0  ;;  %v1153_v61 = vmov 1966171168  }
 0x1f1   :  { %v505_v40 = vpop.xlane.xlu0 %504 }
 0x1f2   :  { %v506_v41 = vmul.f32 0.0078125, %v505_v40  ;;  %v749_v27 = vmul.f32 %v1579_v18, %v1579_v18 }
 0x1f3   :  { %v667_v42 = vpop.xlane.xlu1 %666 }
 0x1f4   :  { %v507_v43 = vadd.f32 1e-12, %v506_v41  ;;  %v668_v53 = vmul.f32 0.0078125, %v667_v42 }
 0x1f5   :  { %v650_v46 = vpop.xlane.xlu0 %649 }
 0x1f6   :  { %1004 = vrsqrt.f32 %v507_v43  ;;  %v651_v47 = vmul.f32 0.0078125, %v650_v46  ;;  %v1560_v55 = vsub.f32 %v664_v24, %v668_v53 }
 0x1f7   :  { %v733_v48 = vpop.xlane.xlu1 %732 }
 0x1f8   :  { %v652_v49 = vadd.f32 1e-12, %v651_v47  ;;  %v740_v50 = vmul.f32 0.0078125, %v733_v48  ;;  %v670_v21 = vmul.f32 %v1560_v55, %v1560_v55 }
 0x1fa   :  { %1006 = vrsqrt.f32 %v652_v49  ;;  %v1551_v0 = vsub.f32 %v726_v26, %v740_v50  ;;  %v671_v26 = vsel %vm520_vm5, %v670_v21, 0.0  ;;  %v537_v50 = vsub.s32 0, %v1337_v44 }
 0x1fb   :  { %v730_v1 = vpop.xlane.xlu1 %729 }
 0x1fc   :  { %v739_v54 = vmul.f32 0.0078125, %v730_v1  ;;  %v748_v56 = vmul.f32 %v1551_v0, %v1551_v0  ;;  %v538_v59 = vrot.slane %v1565_v7, %v537_v50 }
 0x1fe   :  { %v1562_v62 = vsub.f32 %v725_v34, %v739_v54  ;;  %v753_v63 = vsel %vm495_vm2, %v748_v56, 0.0 }
 0x1ff   :  { %754 = vadd.xlane.f32.xlu1 %v753_v63  ;;  %v584_v3 = vpop.xlane.xlu1 %583  ;;  %v550_v63 = vunpack.c.l.s4 %v1153_v61 }
 0x200   :  { %v1005_v6 = vpop.eup %1004  ;;  %v585_v10 = vmul.f32 0.0078125, %v584_v3  ;;  %v747_v60 = vmul.f32 %v1562_v62, %v1562_v62 }
 0x201   :  { %v509_v12 = vmul.f32 %v1005_v6, %v1506_v9  ;;  %v551_v5 = vunpack.c.0.s8 %v550_v63 }
 0x202   :  { %v586_v20 = vadd.f32 1e-12, %v585_v10  ;;  %751 = vadd.xlane.f32.xlu0 %v747_v60  ;;  %v545_v60 = vrot.slane %v1573_v17, %v537_v50 }
 0x203   :  { %v510_v9 = vmul.f32 %v509_v12, %v1565_v7  ;;  %528 = vadd.xlane.f32.xlu1 %v527_v13  ;;  %v716_v16 = vpop.xlane.xlu1 %715 }
 0x204   :  { %v1007_v22 = vpop.eup %1006  ;;  %1008 = vrsqrt.f32 %v586_v20  ;;  %v717_v23 = vmul.f32 0.0078125, %v716_v16 }
 0x205   :  { %v511_v24 = vadd.f32 %v510_v9, %v1573_v17  ;;  %v654_v2 = vmul.f32 %v1007_v22, %v1511_v14 }
 0x206   :  { %v718_v15 = vadd.f32 1e-12, %v717_v23  ;;  %606 = vadd.xlane.f32.xlu0 %v605_v25 }
 0x207   :  { %512 = vst [vmem:[%s1677_s11] sm:$0x1] %v511_v24  ;;  %513 = vst [vmem:[%s1677_s11 + $0x10] sm:$0x1] %v511_v24  ;;  %v655_v14 = vmul.f32 %v654_v2, %v1565_v7  ;;  %672 = vadd.xlane.f32.xlu1 %v671_v26  ;;  %v554_v24 = vsub.s32 %v551_v5, %v1337_v44 }
 0x208   :  { %1010 = vrsqrt.f32 %v718_v15 }
 0x209   :  { %v656_v28 = vadd.f32 %v655_v14, %v1573_v17 }
 0x20a   :  { %756 = vadd.xlane.f32.xlu0 %v749_v27 }
 0x20b   :  { %657 = vst [vmem:[%s1677_s11 + $0x4] sm:$0x1] %v656_v28  ;;  %658 = vst [vmem:[%s1677_s11 + $0x14] sm:$0x1] %v656_v28  ;;  %759 = vadd.xlane.f32.xlu1 %v758_v30 }
 0x20e   :  { %v1009_v32 = vpop.eup %1008 }
 0x20f   :  { %v588_v34 = vmul.f32 %v1009_v32, %v1533_v29 }
 0x211   :  { %v589_v35 = vmul.f32 %v588_v34, %v1565_v7 }
 0x212   :  { %v1011_v36 = vpop.eup %1010 }
 0x213   :  { %v590_v8 = vadd.f32 %v589_v35, %v1573_v17  ;;  %v720_v31 = vmul.f32 %v1011_v36, %v1537_v33 }
 0x215   :  { %591 = vst [vmem:[%s1677_s11 + $0x2] sm:$0x1] %v590_v8  ;;  %592 = vst [vmem:[%s1677_s11 + $0x12] sm:$0x1] %v590_v8  ;;  %v721_v37 = vmul.f32 %v720_v31, %v1565_v7 }
 0x217   :  { %v722_v19 = vadd.f32 %v721_v37, %v1573_v17 }
 0x219   :  { %723 = vst [vmem:[%s1677_s11 + $0x6] sm:$0x1] %v722_v19  ;;  %724 = vst [vmem:[%s1677_s11 + $0x16] sm:$0x1] %v722_v19 }
 0x28c   :  { %v755_v29 = vpop.xlane.xlu1 %754 }
 0x28d   :  { %v762_v33 = vmul.f32 0.0078125, %v755_v29 }
 0x28f   :  { %v766_v38 = vadd.f32 1e-12, %v762_v33  ;;  %v752_v39 = vpop.xlane.xlu0 %751 }
 0x290   :  { %v761_v40 = vmul.f32 0.0078125, %v752_v39  ;;  %v529_v41 = vpop.xlane.xlu1 %528 }
 0x291   :  { %1012 = vrsqrt.f32 %v766_v38  ;;  %v530_v42 = vmul.f32 0.0078125, %v529_v41 }
 0x292   :  { %v765_v43 = vadd.f32 1e-12, %v761_v40 }
 0x293   :  { %v531_v45 = vadd.f32 1e-12, %v530_v42  ;;  %v607_v46 = vpop.xlane.xlu0 %606 }
 0x294   :  { %1014 = vrsqrt.f32 %v765_v43  ;;  %v608_v47 = vmul.f32 0.0078125, %v607_v46  ;;  %v673_v48 = vpop.xlane.xlu1 %672 }
 0x295   :  { %1016 = vrsqrt.f32 %v531_v45  ;;  %v674_v49 = vmul.f32 0.0078125, %v673_v48 }
 0x296   :  { %v609_v52 = vadd.f32 1e-12, %v608_v47 }
 0x297   :  { %v675_v53 = vadd.f32 1e-12, %v674_v49  ;;  %v757_v1 = vpop.xlane.xlu0 %756 }
 0x298   :  { %1018 = vrsqrt.f32 %v609_v52  ;;  %v763_v54 = vmul.f32 0.0078125, %v757_v1  ;;  %v760_v56 = vpop.xlane.xlu1 %759 }
 0x299   :  { %1020 = vrsqrt.f32 %v675_v53  ;;  %v764_v58 = vmul.f32 0.0078125, %v760_v56 }
 0x29a   :  { %v767_v3 = vadd.f32 1e-12, %v763_v54 }
 0x29b   :  { %v1013_v6 = vpop.eup %1012  ;;  %v768_v10 = vadd.f32 1e-12, %v764_v58 }
 0x29c   :  { %v774_v12 = vmul.f32 %v1013_v6, %v1551_v0  ;;  %1022 = vrsqrt.f32 %v767_v3 }
 0x29d   :  { %1024 = vrsqrt.f32 %v768_v10 }
 0x29e   :  { %v1015_v13 = vpop.eup %1014  ;;  %v778_v20 = vmul.f32 %v774_v12, %v538_v59 }
 0x29f   :  { %v1017_v21 = vpop.eup %1016  ;;  %v773_v9 = vmul.f32 %v1015_v13, %v1562_v62 }
 0x2a0   :  { %v782_v16 = vadd.f32 %v778_v20, %v545_v60  ;;  %v533_v7 = vmul.f32 %v1017_v21, %v1549_v51 }
 0x2a1   :  { %v777_v22 = vmul.f32 %v773_v9, %v538_v59 }
 0x2a2   :  { %v1019_v23 = vpop.eup %1018  ;;  %786 = vst [vmem:[%s1677_s11 + $0xf] sm:$0x1] %v782_v16  ;;  %v540_v0 = vmul.f32 %v538_v59, %v533_v7 }
 0x2a3   :  { %v1021_v17 = vpop.eup %1020  ;;  %v781_v2 = vadd.f32 %v777_v22, %v545_v60  ;;  %v611_v25 = vmul.f32 %v1019_v23, %v1556_v57 }
 0x2a4   :  { %v547_v15 = vadd.f32 %v545_v60, %v540_v0  ;;  %v677_v26 = vmul.f32 %v1021_v17, %v1560_v55 }
 0x2a5   :  { %785 = vst [vmem:[%s1677_s11 + $0x7] sm:$0xff] %v781_v2  ;;  %v612_v51 = vmul.f32 %v611_v25, %v538_v59 }
 0x2a6   :  { %v1023_v62 = vpop.eup %1022  ;;  %v555_v27 = vrot.slane %v547_v15, %v554_v24  ;;  %v678_v44 = vmul.f32 %v677_v26, %v538_v59 }
 0x2a7   :  { %v1025_v11 = vpop.eup %1024  ;;  %v613_v14 = vadd.f32 %v612_v51, %v545_v60  ;;  %v775_v28 = vmul.f32 %v1023_v62, %v1579_v18 }
 0x2a8   :  { %v556_v30 = vcombine.high %v555_v27, %v555_v27  ;;  %802 = vst.sshfl [vmem:[%s1677_s11 + $0x1] sm:$0x1 pattern:$0x73625140] %v555_v27  ;;  %v679_v57 = vadd.f32 %v678_v44, %v545_v60  ;;  %v776_v55 = vmul.f32 %v1025_v11, %v1576_v4 }
 0x2a9   :  { %v621_v32 = vrot.slane %v613_v14, %v554_v24  ;;  %v779_v34 = vmul.f32 %v775_v28, %v538_v59 }
 0x2aa   :  { %803 = vst.sshfl [vmem:[%s1677_s11 + $0x11] sm:$0x1 pattern:$0x73625140] %v556_v30  ;;  %v687_v35 = vrot.slane %v679_v57, %v554_v24  ;;  %v780_v36 = vmul.f32 %v776_v55, %v538_v59 }
 0x2ab   :  { %v622_v8 = vcombine.high %v621_v32, %v621_v32  ;;  %805 = vst.sshfl [vmem:[%s1677_s11 + $0x3] sm:$0x1 pattern:$0x73625140] %v621_v32  ;;  %v783_v18 = vadd.f32 %v779_v34, %v545_v60 }
 0x2ac   :  { %v688_v31 = vcombine.high %v687_v35, %v687_v35  ;;  %808 = vst.sshfl [vmem:[%s1677_s11 + $0x5] sm:$0x1 pattern:$0x73625140] %v687_v35  ;;  %v784_v4 = vadd.f32 %v780_v36, %v545_v60 }
 0x2ad   :  { %806 = vst.sshfl [vmem:[%s1677_s11 + $0x13] sm:$0x1 pattern:$0x73625140] %v622_v8  ;;  %787 = vst [vmem:[%s1677_s11 + $0x17] sm:$0xff] %v783_v18 }
 0x2ae   :  { %809 = vst.sshfl [vmem:[%s1677_s11 + $0x15] sm:$0x1 pattern:$0x73625140] %v688_v31  ;;  %788 = vst [vmem:[%s1677_s11 + $0x1f] sm:$0x1] %v784_v4 }
 0x2af   :  { %793 = vsyncpa [#allocation3], 1 }
 0x2b0   :  { %794 = vsyncpa [#allocation5], 1 }
 0x2b1   :  { %795 = vsyncpa [#allocation8], 1 }

// kernel: _lambda_.3
= control target key start
LH: loop header
LB: loop body
LE: loop exit
PB: predicated region body
PF: predicated region fallthrough
CT: control target
= control target key end

     0   :  { %s6906_s0 = inlined_call_operand.vmem [shape: f32[32,128], index: 0, kind: input, shape index: {}]   ;;  %s6907_s1 = inlined_call_operand.vmem [shape: f32[2,16], index: 1, kind: input, shape index: {}]   ;;  %s6908_s2 = inlined_call_operand.hbm [shape: f32[2,128,128], index: 2, kind: input, shape index: {}]   ;;  %s6909_s3 = inlined_call_operand.vmem [shape: f32[2,1,128], index: 3, kind: input, shape index: {}]   ;;  %s6910_s4 = inlined_call_operand.hbm [shape: f32[2,128,128], index: 4, kind: input, shape index: {}]   ;;  %s6911_s5 = inlined_call_operand.hbm [shape: f32[2,1,128], index: 5, kind: input, shape index: {}]   ;;  %s6912_s6 = inlined_call_operand.hbm [shape: f32[2,128,128], index: 6, kind: input, shape index: {}]   ;;  %s6913_s7 = inlined_call_operand.hbm [shape: f32[2,1,128], index: 7, kind: input, shape index: {}]   ;;  %s6914_s8 = inlined_call_operand.hbm [shape: f32[2,128,128], index: 8, kind: input, shape index: {}]   ;;  %s6915_s9 = inlined_call_operand.hbm [shape: f32[2,1,128], index: 9, kind: input, shape index: {}]   ;;  %s6916_s10 = inlined_call_operand.hbm [shape: f32[2,1,128], index: 10, kind: input, shape index: {}]   ;;  %s6917_s11 = inlined_call_operand.vmem [shape: f32[2,1,128], index: 11, kind: input, shape index: {}]   ;;  %s6918_s12 = inlined_call_operand.vmem [shape: f32[2,128,256], index: 12, kind: input, shape index: {}]   ;;  %s6919_s13 = inlined_call_operand.vmem [shape: f32[2,1,256], index: 13, kind: input, shape index: {}]   ;;  %s6920_s14 = inlined_call_operand.vmem [shape: f32[2,256,128], index: 14, kind: input, shape index: {}]   ;;  %s6921_s15 = inlined_call_operand.vmem [shape: f32[2,1,128], index: 15, kind: input, shape index: {}]   ;;  %s6922_s16 = inlined_call_operand.vmem [shape: f32[2,1,128], index: 16, kind: input, shape index: {}]   ;;  %s6923_s17 = inlined_call_operand.hbm [shape: f32[2,1,128], index: 17, kind: input, shape index: {}]   ;;  %s6924_s18 = inlined_call_operand.hbm [shape: f32[128,128], index: 18, kind: input, shape index: {}]   ;;  %s6925_s19 = inlined_call_operand.hbm [shape: f32[1,128], index: 19, kind: input, shape index: {}]   ;;  %s6926_s20 = inlined_call_operand.hbm [shape: f32[2,128], index: 20, kind: output, shape index: {}]  }
   0x1   :  { %6957 = sst [smem:[#allocation33_spill]] %s6906_s0 }
   0x2   :  { %6958 = sst [smem:[#allocation34_spill]] %s6907_s1 }
   0x3   :  { %6959 = sst [smem:[#allocation35_spill]] %s6908_s2 }
   0x4   :  { %6960 = sst [smem:[#allocation36_spill]] %s6909_s3 }
   0x5   :  { %6961 = sst [smem:[#allocation37_spill]] %s6910_s4 }
   0x6   :  { %6962 = sst [smem:[#allocation38_spill]] %s6911_s5 }
   0x7   :  { %6963 = sst [smem:[#allocation39_spill]] %s6912_s6 }
   0x8   :  { %6964 = sst [smem:[#allocation40_spill]] %s6913_s7 }
   0x9   :  { %6965 = sst [smem:[#allocation41_spill]] %s6914_s8 }
   0xa   :  { %6966 = sst [smem:[#allocation42_spill]] %s6915_s9 }
   0xb   :  { %6967 = sst [smem:[#allocation43_spill]] %s6916_s10 }
   0xc   :  { %6968 = sst [smem:[#allocation44_spill]] %s6917_s11 }
   0xd   :  { %6969 = sst [smem:[#allocation45_spill]] %s6918_s12 }
   0xe   :  { %6970 = sst [smem:[#allocation46_spill]] %s6919_s13 }
   0xf   :  { %6971 = sst [smem:[#allocation47_spill]] %s6920_s14 }
  0x10   :  { %6972 = sst [smem:[#allocation48_spill]] %s6921_s15 }
  0x11   :  { %6973 = sst [smem:[#allocation49_spill]] %s6922_s16 }
  0x12   :  { %6974 = sst [smem:[#allocation50_spill]] %s6924_s18 }
  0x13   :  { %6975 = sst [smem:[#allocation51_spill]] %s6926_s20 }
  0x14   :  { %25 = vsyncpa [#allocation4], 0 }
  0x15   :  { %27 = vsyncpa [#allocation4 + $0x1], 0 }
  0x16   :  { %28 = vsyncpa [#allocation7], 0 }
  0x17   :  { %30 = vsyncpa [#allocation7 + $0x1], 0 }
  0x18   :  { %31 = vsyncpa [#allocation10], 0 }
  0x19   :  { %33 = vsyncpa [#allocation10 + $0x1], 0 }
  0x1a   :  { %34 = vsyncpa [#allocation13], 0 }
  0x1b   :  { %36 = vsyncpa [#allocation13 + $0x1], 0 }
  0x1c   :  { %37 = vsyncpa [#allocation16], 0 }
  0x1d   :  { %39 = vsyncpa [#allocation16 + $0x1], 0 }
  0x1e   :  { %40 = vsyncpa [#allocation19], 0 }
  0x1f   :  { %41 = vsyncpa [#allocation5], 0  ;;  %s5827_s1 = smov 0   ;;  %s5829_s22 = smov 0  }
  0x20   :  { %s5831_s23 = smov 0   ;;  %s5833_s24 = smov 0  }
  0x21 LB: > { %6976 = sst [smem:[#allocation29_spill]] %s5695_s23  ;;  %s5846_s2 = sadd.s32 4294967295, %s5699_s24   ;;  %s5699_s24 = sphi %s5833_s24, %s7043_s24   ;;  %s5695_s23 = sphi %s5831_s23, %s7045_s23   ;;  %s5691_s22 = sphi %s5829_s22, %s7047_s22   ;;  %s5687_s1 = sphi %s5827_s1, %s7046_s1  }
  0x22   : > { %6977 = sst [smem:[#allocation30_spill]] %s5846_s2  ;;  %s5849_s25 = sadd.s32 1, %s5699_s24  }
  0x23   : > { %6978 = sst [smem:[#allocation31_spill]] %s5849_s25  ;;  %s93_s3 = ssub.s32 %s5699_s24, %s5849_s25 }
  0x24   : > { %s96_s26 = sadd.s32 1, %s5695_s23  ;;  %p94_p0 = scmp.eq.s32.totalorder %s93_s3, 0 }
  0x25   : > { %p103_p1 = scmp.ne.s32.totalorder %s5695_s23, %s5691_s22  ;;  %p104_p2 = scmp.eq.s32.totalorder %s5699_s24, 0 }
  0x26   : > { %p109_p3 = scmp.ne.s32.totalorder %s5691_s22, %s5687_s1  ;;  %p6935_p5 = scmp.eq.s32.totalorder %s5846_s2, 0 }
  0x27   : > { %s5859_s27 = scalar_select %p94_p0, %s5695_s23, %s96_s26  }
  0x28   : > { %p5861_p4 = por %p104_p2, %p103_p1  ;;  %p4076_p6 = scmp.ge.s32.totalorder %s5699_s24, 1 }
  0x29   : > { %6979 = sst [smem:[#allocation32_spill]] %s5859_s27  ;;  %p573_p7 = scmp.lt.s32.totalorder %s5699_s24, 3 }
  0x2a   : > { %p5870_p8 = por %p6935_p5, %p109_p3  ;;  %s5701_s30 = smov [#allocation18]  }
  0x2b   : > { %p5875_p10 = pnand %p4076_p6, %p573_p7  ;;  %s591_s0 = sshll.u32 %s5701_s30, 4  ;;  %s592_s0 = int_to_ptr.vmem [resolvable:$true] %s591_s0 }
  0x2c   : > { %s6981_s4 = scalar_select %p5870_p8, 1, 0 }
  0x2d   : > { %s6982_s29 = scalar_select %p5875_p10, 1, 0 }
  0x2e   : > { %p5011_p11 = pneg %p5875_p10  ;;  %p5048_p13 = scmp.lt.s32.totalorder %s5699_s24, 2 }
  0x2f   : > { %s5889_s1 = sand.u32 1, %s5695_s23   ;;  %s5892_s3 = sshll.u32 %s5699_s24, 11 }
  0x30   : > { %p5883_p12 = pnand %p5011_p11, %p6935_p5  ;;  %p5896_p0 = pnand %p5048_p13, %p5861_p4 }
  0x31   : > { %s6985_s18 = sld [smem:[#allocation50_spill]] }
  0x32   : > { %s6983_s21 = scalar_select %p5883_p12, 1, 0 }
  0x33   : > { %s6984_s26 = scalar_select %p5896_p0, 1, 0 }
  0x34   : > { %p6943_p2 = pneg %p5883_p12 }
  0x37   : > { %s5289_s25 = scalar_lea.hbm %s6985_s18, 2048 }
  0x38   : > { %p5290_p1 = scmp.ne.s32.totalorder %s6985_s18, %s5289_s25  ;;  %p5296_p4 = scmp.lt.u32.totalorder %s5289_s25, %s6985_s18 }
  0x3a   : > { %p5292_p3 = pnand %p6943_p2, %p5290_p1 }
  0x3c   : > { %p5293_p6 = pneg %p5292_p3 }
  0x3e   : > { %p5298_p7 = pnand %p5296_p4, %p5293_p6 }
  0x40   : > { %5301 = shalt.err (!%p5298_p7)
}
  0x41   : > { %s5302_s15 = scalar_lea.vmem %s592_s0, 2048  ;;  %p5310_p5 = scmp.lt.s32.totalorder %s592_s0, %s592_s0 }
  0x42   : > { %p5303_p11 = scmp.ne.s32.totalorder %s592_s0, %s5302_s15  ;;  %p5311_p8 = scmp.lt.s32.totalorder %s5302_s15, %s5302_s15 }
  0x44   : > { %p5305_p13 = pnand %p5303_p11, %p6943_p2  ;;  %p5312_p10 = por %p5311_p8, %p5310_p5 }
  0x46   : > { %p5306_p9 = pneg %p5305_p13 }
  0x48   : > { %p5313_p0 = pnand %p5312_p10, %p5306_p9 }
  0x4a   : > { %5316 = shalt.err (!%p5313_p0)
}
  0x4b   : > { %s6939_s16 = smov 128   ;;  %s6941_s20 = smov 8  }
  0x4c   : > { %5014 = dma.hbm_to_vmem [thread:$0]  (!%p5883_p12), %s6985_s18, 2048, %s592_s0, [#allocation19], %s6939_s16, %s6939_s16, %s6941_s20  }
  0x4d   : > { %s5926_s27 = sshll.u32 %s5889_s1, 7  ;;  %s5929_s15 = sand.u32 1, %s5699_s24  }
  0x4e   : > { %s6986_s14 = sld [smem:[#allocation37_spill]]  ;;  %s647_s12 = scalar_lea.vmem [#allocation6], %s5926_s27 }
  0x4f   : > { %s654_s11 = sshll.u32 %s647_s12, 4  ;;  %p6987_p8 = scmp.ne.s32.totalorder %s6984_s26, 0  ;;  %s5938_s11 = int_to_ptr.vmem [resolvable:$true] %s654_s11 }
  0x51   : > { %p5945_p9 = pneg %p6987_p8 }
  0x53   : > { %s6988_s25 = scalar_select %p5945_p9, 1, 0 }
  0x54   : > { %s5935_s13 = scalar_lea.hbm %s6986_s14, %s5892_s3  ;;  %s5322_s16 = scalar_lea.hbm %s6986_s14, 4096 }
  0x55   : > { %s5317_s23 = scalar_lea.hbm %s5935_s13, 2048  ;;  %p5323_p1 = scmp.lt.u32.totalorder %s5935_s13, %s6986_s14 }
  0x56   : > { %p5318_p5 = scmp.ne.s32.totalorder %s5935_s13, %s5317_s23  ;;  %p5324_p3 = scmp.lt.u32.totalorder %s5322_s16, %s5317_s23 }
  0x57   : > { %p5326_p4 = scmp.lt.u32.totalorder %s5317_s23, %s5935_s13 }
  0x58   : > { %p5320_p10 = pnand %p5945_p9, %p5318_p5  ;;  %p5325_p6 = por %p5324_p3, %p5323_p1 }
  0x5a   : > { %p5321_p0 = pneg %p5320_p10  ;;  %p5327_p7 = por %p5326_p4, %p5325_p6 }
  0x5c   : > { %p5328_p11 = pnand %p5327_p7, %p5321_p0 }
  0x5e   : > { %5331 = shalt.err (!%p5328_p11)
}
  0x5f   : > { %s5332_s0 = scalar_lea.vmem %s5938_s11, 2048  ;;  %s5704_s30 = smov [#allocation6]  }
  0x60   : > { %p5333_p13 = scmp.ne.s32.totalorder %s5938_s11, %s5332_s0  ;;  %s5337_s28 = sshll.u32 %s5704_s30, 4  ;;  %s5338_s28 = int_to_ptr.vmem [resolvable:$false] %s5337_s28 }
  0x61   : > { %s5339_s20 = scalar_lea.vmem %s5338_s28, 4096  ;;  %p5340_p2 = scmp.lt.s32.totalorder %s5938_s11, %s5338_s28 }
  0x62   : > { %p5335_p5 = pnand %p5333_p13, %p5945_p9  ;;  %p5341_p12 = scmp.lt.s32.totalorder %s5339_s20, %s5332_s0 }
  0x64   : > { %p5336_p10 = pneg %p5335_p5  ;;  %p5342_p1 = por %p5341_p12, %p5340_p2 }
  0x66   : > { %p5343_p3 = pnand %p5342_p1, %p5336_p10 }
  0x68   : > { %5346 = shalt.err (!%p5343_p3)
}
  0x69   : > { %s6989_s16 = smov 8   ;;  %s6990_s23 = smov 128  }
  0x6a   : > { %s6991_s12 = scalar_lea.sflag [#allocation7], %s5929_s15  ;;  %s6992_s6 = sld [smem:[#allocation39_spill]] }
  0x6b   : > { %5024 = dma.hbm_to_vmem [thread:$0]  (!%p6987_p8), %s5935_s13, 2048, %s5938_s11, %s6991_s12, %s6990_s23, %s6990_s23, %s6989_s16  }
  0x6c   : > { %s685_s20 = scalar_lea.vmem [#allocation9], %s5926_s27  ;;  %s6950_s18 = scalar_lea.sflag [#allocation10], %s5929_s15 }
  0x6d   : > { %s692_s14 = sshll.u32 %s685_s20, 4  ;;  %s5980_s14 = int_to_ptr.vmem [resolvable:$true] %s692_s14 }
  0x70   : > { %s5977_s0 = scalar_lea.hbm %s6992_s6, %s5892_s3  ;;  %s5352_s12 = scalar_lea.hbm %s6992_s6, 4096 }
  0x71   : > { %s5347_s2 = scalar_lea.hbm %s5977_s0, 2048  ;;  %p5353_p6 = scmp.lt.u32.totalorder %s5977_s0, %s6992_s6 }
  0x72   : > { %p5348_p12 = scmp.ne.s32.totalorder %s5977_s0, %s5347_s2  ;;  %p5354_p4 = scmp.lt.u32.totalorder %s5352_s12, %s5347_s2 }
  0x73   : > { %p5356_p11 = scmp.lt.u32.totalorder %s5347_s2, %s5977_s0 }
  0x74   : > { %p5350_p2 = pnand %p5348_p12, %p5945_p9  ;;  %p5355_p7 = por %p5354_p4, %p5353_p6 }
  0x76   : > { %p5351_p0 = pneg %p5350_p2  ;;  %p5357_p13 = por %p5356_p11, %p5355_p7 }
  0x78   : > { %p5358_p5 = pnand %p5357_p13, %p5351_p0 }
  0x7a   : > { %5361 = shalt.err (!%p5358_p5)
}
  0x7b   : > { %s5362_s20 = scalar_lea.vmem %s5980_s14, 2048  ;;  %s5705_s11 = smov [#allocation9]  }
  0x7c   : > { %p5363_p10 = scmp.ne.s32.totalorder %s5980_s14, %s5362_s20  ;;  %s5367_s13 = sshll.u32 %s5705_s11, 4  ;;  %s5368_s13 = int_to_ptr.vmem [resolvable:$false] %s5367_s13 }
  0x7d   : > { %s5369_s30 = scalar_lea.vmem %s5368_s13, 4096  ;;  %p5370_p12 = scmp.lt.s32.totalorder %s5980_s14, %s5368_s13 }
  0x7e   : > { %p5365_p1 = pnand %p5363_p10, %p5945_p9  ;;  %p5371_p2 = scmp.lt.s32.totalorder %s5369_s30, %s5362_s20 }
  0x80   : > { %p5366_p3 = pneg %p5365_p1  ;;  %p5372_p6 = por %p5371_p2, %p5370_p12 }
  0x82   : > { %p5373_p4 = pnand %p5372_p6, %p5366_p3 }
  0x84   : > { %5376 = shalt.err (!%p5373_p4)
}
  0x85   : > { %5030 = dma.hbm_to_vmem [thread:$0]  (!%p6987_p8), %s5977_s0, 2048, %s5980_s14, %s6950_s18, %s6990_s23, %s6990_s23, %s6989_s16  }
  0x86   : > { %s6993_s8 = sld [smem:[#allocation41_spill]]  ;;  %s723_s20 = scalar_lea.vmem [#allocation12], %s5926_s27 }
  0x87   : > { %s730_s11 = sshll.u32 %s723_s20, 4  ;;  %s6017_s13 = sshll.u32 %s5699_s24, 4  ;;  %s6019_s11 = int_to_ptr.vmem [resolvable:$true] %s730_s11 }
  0x88   : > { %s6951_s30 = scalar_lea.sflag [#allocation13], %s5929_s15 }
  0x8c   : > { %s6013_s28 = scalar_lea.hbm %s6993_s8, %s5892_s3  ;;  %s5382_s2 = scalar_lea.hbm %s6993_s8, 4096 }
  0x8d   : > { %s5377_s6 = scalar_lea.hbm %s6013_s28, 2048  ;;  %p5383_p13 = scmp.lt.u32.totalorder %s6013_s28, %s6993_s8 }
  0x8e   : > { %p5378_p0 = scmp.ne.s32.totalorder %s6013_s28, %s5377_s6  ;;  %p5384_p5 = scmp.lt.u32.totalorder %s5382_s2, %s5377_s6 }
  0x8f   : > { %p5386_p1 = scmp.lt.u32.totalorder %s5377_s6, %s6013_s28 }
  0x90   : > { %p5380_p7 = pnand %p5378_p0, %p5945_p9  ;;  %p5385_p10 = por %p5384_p5, %p5383_p13 }
  0x92   : > { %p5381_p11 = pneg %p5380_p7  ;;  %p5387_p3 = por %p5386_p1, %p5385_p10 }
  0x94   : > { %p5388_p12 = pnand %p5387_p3, %p5381_p11 }
  0x96   : > { %5391 = shalt.err (!%p5388_p12)
}
  0x97   : > { %s5392_s24 = scalar_lea.vmem %s6019_s11, 2048  ;;  %s5706_s20 = smov [#allocation12]  }
  0x98   : > { %p5393_p2 = scmp.ne.s32.totalorder %s6019_s11, %s5392_s24  ;;  %s5397_s14 = sshll.u32 %s5706_s20, 4  ;;  %s5398_s14 = int_to_ptr.vmem [resolvable:$false] %s5397_s14 }
  0x99   : > { %s5399_s18 = scalar_lea.vmem %s5398_s14, 4096  ;;  %p5400_p0 = scmp.lt.s32.totalorder %s6019_s11, %s5398_s14 }
  0x9a   : > { %p5395_p6 = pnand %p5393_p2, %p5945_p9  ;;  %p5401_p7 = scmp.lt.s32.totalorder %s5399_s18, %s5392_s24 }
  0x9c   : > { %p5396_p4 = pneg %p5395_p6  ;;  %p5402_p13 = por %p5401_p7, %p5400_p0 }
  0x9e   : > { %p5403_p5 = pnand %p5402_p13, %p5396_p4 }
  0xa0   : > { %5406 = shalt.err (!%p5403_p5)
}
  0xa1   : > { %5036 = dma.hbm_to_vmem [thread:$0]  (!%p6987_p8), %s6013_s28, 2048, %s6019_s11, %s6951_s30, %s6990_s23, %s6990_s23, %s6989_s16  }
  0xa2   : > { %s6994_s10 = sld [smem:[#allocation43_spill]]  ;;  %s760_s12 = scalar_lea.vmem [#allocation15], %s5889_s1 }
  0xa3   : > { %s767_s24 = sshll.u32 %s760_s12, 4  ;;  %s5707_s20 = smov [#allocation20]   ;;  %s6055_s24 = int_to_ptr.vmem [resolvable:$true] %s767_s24 }
  0xa4   : > { %s6057_s14 = sshll.u32 %s5707_s20, 4  ;;  %s6955_s18 = scalar_lea.sflag [#allocation16], %s5929_s15  ;;  %s606_s14 = int_to_ptr.vmem [resolvable:$true] %s6057_s14 }
  0xa8   : > { %s6052_s2 = scalar_lea.hbm %s6994_s10, %s6017_s13  ;;  %s5412_s6 = scalar_lea.hbm %s6994_s10, 32 }
  0xa9   : > { %s5407_s8 = scalar_lea.hbm %s6052_s2, 16  ;;  %p5413_p3 = scmp.lt.u32.totalorder %s6052_s2, %s6994_s10 }
  0xaa   : > { %p5408_p11 = scmp.ne.s32.totalorder %s6052_s2, %s5407_s8  ;;  %p5414_p12 = scmp.lt.u32.totalorder %s5412_s6, %s5407_s8 }
  0xab   : > { %p5416_p6 = scmp.lt.u32.totalorder %s5407_s8, %s6052_s2 }
  0xac   : > { %p5410_p10 = pnand %p5408_p11, %p5945_p9  ;;  %p5415_p2 = por %p5414_p12, %p5413_p3 }
  0xae   : > { %p5411_p1 = pneg %p5410_p10  ;;  %p5417_p4 = por %p5416_p6, %p5415_p2 }
  0xb0   : > { %p5418_p0 = pnand %p5417_p4, %p5411_p1 }
  0xb2   : > { %5421 = shalt.err (!%p5418_p0)
}
  0xb3   : > { %s5422_s12 = scalar_lea.vmem %s6055_s24, 16  ;;  %s5708_s20 = smov [#allocation15]  }
  0xb4   : > { %p5423_p7 = scmp.ne.s32.totalorder %s6055_s24, %s5422_s12  ;;  %s5427_s28 = sshll.u32 %s5708_s20, 4  ;;  %s5428_s28 = int_to_ptr.vmem [resolvable:$false] %s5427_s28 }
  0xb5   : > { %s5429_s30 = scalar_lea.vmem %s5428_s28, 32  ;;  %p5430_p11 = scmp.lt.s32.totalorder %s6055_s24, %s5428_s28 }
  0xb6   : > { %p5425_p13 = pnand %p5423_p7, %p5945_p9  ;;  %p5431_p10 = scmp.lt.s32.totalorder %s5429_s30, %s5422_s12 }
  0xb8   : > { %p5426_p5 = pneg %p5425_p13  ;;  %p5432_p3 = por %p5431_p10, %p5430_p11 }
  0xba   : > { %p5433_p12 = pnand %p5432_p3, %p5426_p5 }
  0xbc   : > { %5436 = shalt.err (!%p5433_p12)
}
  0xbd   : > { %5042 = dma.hbm_to_vmem [thread:$0]  (!%p6987_p8), %s6052_s2, 16, %s6055_s24, %s6955_s18  }
  0xbe   : > { %s5437_s6 = scalar_lea.hbm %s6925_s19, 16  ;;  %p6995_p2 = scmp.ne.s32.totalorder %s6983_s21, 0 }
  0xbf   : > { %p5438_p1 = scmp.ne.s32.totalorder %s6925_s19, %s5437_s6  ;;  %p5444_p7 = scmp.lt.u32.totalorder %s5437_s6, %s6925_s19 }
  0xc0   : > { %p6996_p6 = pneg %p6995_p2 }
  0xc2   : > { %p5440_p4 = pnand %p5438_p1, %p6996_p6 }
  0xc4   : > { %p5441_p0 = pneg %p5440_p4 }
  0xc6   : > { %p5446_p13 = pnand %p5444_p7, %p5441_p0 }
  0xc8   : > { %5449 = shalt.err (!%p5446_p13)
}
  0xc9   : > { %s5450_s2 = scalar_lea.vmem %s606_s14, 16  ;;  %p6997_p11 = pmov %p6996_p6 }
  0xca   : > { %p5451_p5 = scmp.ne.s32.totalorder %s606_s14, %s5450_s2  ;;  %s5457_s24 = scalar_lea.vmem %s606_s14, 32 }
  0xcb   : > { %p5458_p12 = scmp.lt.s32.totalorder %s606_s14, %s606_s14  ;;  %p5459_p8 = scmp.lt.s32.totalorder %s5457_s24, %s5450_s2 }
  0xcc   : > { %p5453_p10 = pnand %p5451_p5, %p6997_p11 }
  0xcd   : > { %p5460_p9 = por %p5459_p8, %p5458_p12 }
  0xce   : > { %p5454_p3 = pneg %p5453_p10 }
  0xd0   : > { %p5461_p1 = pnand %p5460_p9, %p5454_p3 }
  0xd2   : > { %5464 = shalt.err (!%p5461_p1)
}
  0xd3   : > { %5017 = dma.hbm_to_vmem [thread:$0]  (!%p6995_p2), %s6925_s19, 16, %s606_s14, [#allocation19]  }
  0xd4   : > { %s6998_s0 = sld [smem:[#allocation35_spill]]  ;;  %s620_s12 = scalar_lea.vmem [#allocation3], %s5926_s27 }
  0xd5   : > { %s627_s21 = sshll.u32 %s620_s12, 4  ;;  %s6999_s5 = sld [smem:[#allocation38_spill]]  ;;  %s6111_s21 = int_to_ptr.vmem [resolvable:$true] %s627_s21 }
  0xd6   : > { %s617_s30 = scalar_lea.sflag [#allocation4], %s5889_s1  ;;  %p7000_p9 = scmp.ne.s32.totalorder %s6988_s25, 0 }
  0xda   : > { %s6108_s20 = scalar_lea.hbm %s6998_s0, %s5892_s3  ;;  %s5470_s11 = scalar_lea.hbm %s6998_s0, 4096 }
  0xdb   : > { %s6117_s24 = scalar_lea.hbm %s6999_s5, %s6017_s13  ;;  %s5465_s14 = scalar_lea.hbm %s6108_s20, 2048 }
  0xdc   : > { %p5466_p8 = scmp.ne.s32.totalorder %s6108_s20, %s5465_s14  ;;  %p5471_p4 = scmp.lt.u32.totalorder %s6108_s20, %s6998_s0 }
  0xdd   : > { %p5472_p0 = scmp.lt.u32.totalorder %s5470_s11, %s5465_s14  ;;  %p5474_p13 = scmp.lt.u32.totalorder %s5465_s14, %s6108_s20 }
  0xde   : > { %p5468_p2 = pnand %p5466_p8, %p7000_p9 }
  0xdf   : > { %p5473_p7 = por %p5472_p0, %p5471_p4 }
  0xe0   : > { %p5469_p6 = pneg %p5468_p2 }
  0xe1   : > { %p5475_p5 = por %p5474_p13, %p5473_p7 }
  0xe3   : > { %p5476_p11 = pnand %p5475_p5, %p5469_p6 }
  0xe5   : > { %5479 = shalt.err (!%p5476_p11)
}
  0xe6   : > { %s5480_s12 = scalar_lea.vmem %s6111_s21, 2048  ;;  %s5709_s28 = smov [#allocation3]  }
  0xe7   : > { %p5481_p10 = scmp.ne.s32.totalorder %s6111_s21, %s5480_s12  ;;  %s5485_s2 = sshll.u32 %s5709_s28, 4  ;;  %s5486_s2 = int_to_ptr.vmem [resolvable:$false] %s5485_s2 }
  0xe8   : > { %s5487_s3 = scalar_lea.vmem %s5486_s2, 4096  ;;  %p5488_p1 = scmp.lt.s32.totalorder %s6111_s21, %s5486_s2 }
  0xe9   : > { %p5483_p3 = pnand %p5481_p10, %p7000_p9  ;;  %p5489_p8 = scmp.lt.s32.totalorder %s5487_s3, %s5480_s12 }
  0xeb   : > { %p5484_p12 = pneg %p5483_p3  ;;  %p5490_p2 = por %p5489_p8, %p5488_p1 }
  0xed   : > { %p5491_p4 = pnand %p5490_p2, %p5484_p12 }
  0xef   : > { %5494 = shalt.err (!%p5491_p4)
}
  0xf0   : > { %p7001_p6 = scmp.ne.s32.totalorder %s6984_s26, 0  ;;  %s667_s14 = scalar_lea.vmem [#allocation8], %s5889_s1 }
  0xf1   : > { %s674_s8 = sshll.u32 %s667_s14, 4  ;;  %s7002_s7 = sld [smem:[#allocation40_spill]]  ;;  %s675_s8 = int_to_ptr.vmem [resolvable:$true] %s674_s8 }
  0xf2   : > { %5021 = dma.hbm_to_vmem [thread:$0]  (!%p7001_p6), %s6108_s20, 2048, %s6111_s21, %s617_s30, %s6990_s23, %s6990_s23, %s6989_s16  }
  0xf3   : > { %s5495_s12 = scalar_lea.hbm %s6117_s24, 16  ;;  %s5500_s3 = scalar_lea.hbm %s6999_s5, 32 }
  0xf4   : > { %p5496_p0 = scmp.ne.s32.totalorder %s6117_s24, %s5495_s12  ;;  %p5501_p5 = scmp.lt.u32.totalorder %s6117_s24, %s6999_s5 }
  0xf5   : > { %p5502_p11 = scmp.lt.u32.totalorder %s5500_s3, %s5495_s12  ;;  %p5504_p3 = scmp.lt.u32.totalorder %s5495_s12, %s6117_s24 }
  0xf6   : > { %p5498_p7 = pnand %p5496_p0, %p7000_p9 }
  0xf7   : > { %s6151_s27 = scalar_lea.hbm %s7002_s7, %s6017_s13  ;;  %p5503_p10 = por %p5502_p11, %p5501_p5 }
  0xf8   : > { %p5499_p13 = pneg %p5498_p7 }
  0xf9   : > { %p5505_p12 = por %p5504_p3, %p5503_p10 }
  0xfb   : > { %p5506_p1 = pnand %p5505_p12, %p5499_p13 }
  0xfd   : > { %5509 = shalt.err (!%p5506_p1)
}
  0xfe   : > { %s5510_s16 = scalar_lea.vmem %s675_s8, 16  ;;  %s5710_s23 = smov [#allocation8]  }
  0xff   : > { %p5511_p8 = scmp.ne.s32.totalorder %s675_s8, %s5510_s16  ;;  %s5515_s20 = sshll.u32 %s5710_s23, 4  ;;  %s5516_s20 = int_to_ptr.vmem [resolvable:$false] %s5515_s20 }
 0x100   : > { %s5517_s21 = scalar_lea.vmem %s5516_s20, 32  ;;  %p5518_p0 = scmp.lt.s32.totalorder %s675_s8, %s5516_s20 }
 0x101   : > { %p5513_p2 = pnand %p5511_p8, %p7000_p9  ;;  %p5519_p7 = scmp.lt.s32.totalorder %s5517_s21, %s5510_s16 }
 0x103   : > { %p5514_p4 = pneg %p5513_p2  ;;  %p5520_p6 = por %p5519_p7, %p5518_p0 }
 0x105   : > { %p5521_p5 = pnand %p5520_p6, %p5514_p4 }
 0x107   : > { %5524 = shalt.err (!%p5521_p5)
}
 0x108   : > { %p7003_p11 = scmp.ne.s32.totalorder %s6984_s26, 0  ;;  %s7004_s18 = scalar_lea.sflag [#allocation7], %s5929_s15 }
 0x109   : > { %s705_s0 = scalar_lea.vmem [#allocation11], %s5889_s1  ;;  %s7005_s9 = sld [smem:[#allocation42_spill]] }
 0x10a   : > { %5027 = dma.hbm_to_vmem [thread:$0]  (!%p7003_p11), %s6117_s24, 16, %s675_s8, %s7004_s18  }
 0x10b   : > { %s712_s30 = sshll.u32 %s705_s0, 4  ;;  %s5525_s12 = scalar_lea.hbm %s6151_s27, 16  ;;  %s713_s30 = int_to_ptr.vmem [resolvable:$true] %s712_s30 }
 0x10c   : > { %p5526_p6 = scmp.ne.s32.totalorder %s6151_s27, %s5525_s12  ;;  %s5530_s3 = scalar_lea.hbm %s7002_s7, 32 }
 0x10d   : > { %p5531_p3 = scmp.lt.u32.totalorder %s6151_s27, %s7002_s7  ;;  %p5532_p12 = scmp.lt.u32.totalorder %s5530_s3, %s5525_s12 }
 0x10e   : > { %p5528_p13 = pnand %p5526_p6, %p7000_p9  ;;  %p5534_p8 = scmp.lt.u32.totalorder %s5525_s12, %s6151_s27 }
 0x10f   : > { %s6177_s6 = scalar_lea.hbm %s7005_s9, %s6017_s13  ;;  %p5533_p1 = por %p5532_p12, %p5531_p3 }
 0x110   : > { %p5529_p10 = pneg %p5528_p13 }
 0x111   : > { %p5535_p2 = por %p5534_p8, %p5533_p1 }
 0x113   : > { %p5536_p4 = pnand %p5535_p2, %p5529_p10 }
 0x115   : > { %5539 = shalt.err (!%p5536_p4)
}
 0x116   : > { %s5540_s24 = scalar_lea.vmem %s713_s30, 16  ;;  %s5711_s8 = smov [#allocation11]  }
 0x117   : > { %p5541_p0 = scmp.ne.s32.totalorder %s713_s30, %s5540_s24  ;;  %s5545_s20 = sshll.u32 %s5711_s8, 4  ;;  %s5546_s20 = int_to_ptr.vmem [resolvable:$false] %s5545_s20 }
 0x118   : > { %s5547_s21 = scalar_lea.vmem %s5546_s20, 32  ;;  %p5548_p6 = scmp.lt.s32.totalorder %s713_s30, %s5546_s20 }
 0x119   : > { %p5543_p7 = pnand %p5541_p0, %p7000_p9  ;;  %p5549_p13 = scmp.lt.s32.totalorder %s5547_s21, %s5540_s24 }
 0x11b   : > { %p5544_p5 = pneg %p5543_p7  ;;  %p5550_p11 = por %p5549_p13, %p5548_p6 }
 0x11d   : > { %p5551_p3 = pnand %p5550_p11, %p5544_p5 }
 0x11f   : > { %5554 = shalt.err (!%p5551_p3)
}
 0x120   : > { %p7006_p12 = scmp.ne.s32.totalorder %s6984_s26, 0  ;;  %s7007_s18 = scalar_lea.sflag [#allocation10], %s5929_s15 }
 0x121   : > { %s743_s0 = scalar_lea.vmem [#allocation14], %s5889_s1  ;;  %s6203_s28 = scalar_lea.hbm %s6923_s17, %s6017_s13 }
 0x122   : > { %5033 = dma.hbm_to_vmem [thread:$0]  (!%p7006_p12), %s6151_s27, 16, %s713_s30, %s7007_s18  }
 0x123   : > { %s750_s14 = sshll.u32 %s743_s0, 4  ;;  %s5555_s2 = scalar_lea.hbm %s6177_s6, 16  ;;  %s751_s14 = int_to_ptr.vmem [resolvable:$true] %s750_s14 }
 0x124   : > { %p5556_p11 = scmp.ne.s32.totalorder %s6177_s6, %s5555_s2  ;;  %s5560_s23 = scalar_lea.hbm %s7005_s9, 32 }
 0x125   : > { %p5561_p8 = scmp.lt.u32.totalorder %s6177_s6, %s7005_s9  ;;  %p5562_p2 = scmp.lt.u32.totalorder %s5560_s23, %s5555_s2 }
 0x126   : > { %p5558_p10 = pnand %p5556_p11, %p7000_p9  ;;  %p5564_p0 = scmp.lt.u32.totalorder %s5555_s2, %s6177_s6 }
 0x127   : > { %p5563_p4 = por %p5562_p2, %p5561_p8 }
 0x128   : > { %p5559_p1 = pneg %p5558_p10 }
 0x129   : > { %p5565_p7 = por %p5564_p0, %p5563_p4 }
 0x12b   : > { %p5566_p5 = pnand %p5565_p7, %p5559_p1 }
 0x12d   : > { %5569 = shalt.err (!%p5566_p5)
}
 0x12e   : > { %s5570_s13 = scalar_lea.vmem %s751_s14, 16  ;;  %s5712_s27 = smov [#allocation14]  }
 0x12f   : > { %p5571_p6 = scmp.ne.s32.totalorder %s751_s14, %s5570_s13  ;;  %s5575_s30 = sshll.u32 %s5712_s27, 4  ;;  %s5576_s30 = int_to_ptr.vmem [resolvable:$false] %s5575_s30 }
 0x130   : > { %s5577_s20 = scalar_lea.vmem %s5576_s30, 32  ;;  %p5578_p11 = scmp.lt.s32.totalorder %s751_s14, %s5576_s30 }
 0x131   : > { %p5573_p13 = pnand %p5571_p6, %p7000_p9  ;;  %p5579_p10 = scmp.lt.s32.totalorder %s5577_s20, %s5570_s13 }
 0x133   : > { %p5574_p3 = pneg %p5573_p13  ;;  %p5580_p12 = por %p5579_p10, %p5578_p11 }
 0x135   : > { %p5581_p2 = pnand %p5580_p12, %p5574_p3 }
 0x137   : > { %5584 = shalt.err (!%p5581_p2)
}
 0x138   : > { %p7008_p8 = scmp.ne.s32.totalorder %s6984_s26, 0  ;;  %s7009_s21 = scalar_lea.sflag [#allocation13], %s5929_s15 }
 0x139   : > { %s818_s18 = scalar_lea.vmem [#allocation17], %s5889_s1  ;;  %s5585_s11 = scalar_lea.hbm %s6203_s28, 16 }
 0x13a   : > { %5039 = dma.hbm_to_vmem [thread:$0]  (!%p7008_p8), %s6177_s6, 16, %s751_s14, %s7009_s21  }
 0x13b   : > { %s825_s0 = sshll.u32 %s818_s18, 4  ;;  %p5586_p1 = scmp.ne.s32.totalorder %s6203_s28, %s5585_s11  ;;  %s826_s0 = int_to_ptr.vmem [resolvable:$true] %s825_s0 }
 0x13c   : > { %s5590_s3 = scalar_lea.hbm %s6923_s17, 32  ;;  %p5591_p0 = scmp.lt.u32.totalorder %s6203_s28, %s6923_s17 }
 0x13d   : > { %p5588_p12 = pnand %p5586_p1, %p7000_p9  ;;  %p5592_p7 = scmp.lt.u32.totalorder %s5590_s3, %s5585_s11 }
 0x13e   : > { %p5594_p6 = scmp.lt.u32.totalorder %s5585_s11, %s6203_s28 }
 0x13f   : > { %p5589_p4 = pneg %p5588_p12  ;;  %p5593_p5 = por %p5592_p7, %p5591_p0 }
 0x141   : > { %p5595_p13 = por %p5594_p6, %p5593_p5 }
 0x143   : > { %p5596_p3 = pnand %p5595_p13, %p5589_p4 }
 0x145   : > { %5599 = shalt.err (!%p5596_p3)
}
 0x146   : > { %s5600_s1 = scalar_lea.vmem %s826_s0, 16  ;;  %s5713_s6 = smov [#allocation17]  }
 0x147   : > { %p5601_p11 = scmp.ne.s32.totalorder %s826_s0, %s5600_s1  ;;  %s5605_s14 = sshll.u32 %s5713_s6, 4  ;;  %s5606_s14 = int_to_ptr.vmem [resolvable:$false] %s5605_s14 }
 0x148   : > { %s5607_s24 = scalar_lea.vmem %s5606_s14, 32  ;;  %p5608_p1 = scmp.lt.s32.totalorder %s826_s0, %s5606_s14 }
 0x149   : > { %p5603_p10 = pnand %p5601_p11, %p7000_p9  ;;  %p5609_p12 = scmp.lt.s32.totalorder %s5607_s24, %s5600_s1 }
 0x14b   : > { %p5604_p2 = pneg %p5603_p10  ;;  %p5610_p8 = por %p5609_p12, %p5608_p1 }
 0x14d   : > { %p5611_p0 = pnand %p5610_p8, %p5604_p2 }
 0x14f   : > { %5614 = shalt.err (!%p5611_p0)
}
 0x150   : > { %p7010_p7 = scmp.ne.s32.totalorder %s6984_s26, 0  ;;  %s7011_s8 = scalar_lea.sflag [#allocation16], %s5929_s15 }
 0x151   : > { %p7012_p4 = scmp.ne.s32.totalorder %s6982_s29, 0 }
 0x152   : > { %5045 = dma.hbm_to_vmem [thread:$0]  (!%p7010_p7), %s6203_s28, 16, %s826_s0, %s7011_s8  }
 0x153   : > { %834 = sbr.rel (%p7012_p4) target bundleno = 5817 (0x16b9), region = 100  ;;  %s6247_s25 = sand.u32 (!%p7012_p4), 1, %s5691_s22  }
 0x154   : > { %s4098_s13 = sshll.u32 (!%p7012_p4), %s6247_s25, 7  ;;  %s837_s27 = scalar_lea.sflag (!%p7012_p4), [#allocation4], %s6247_s25 }
 0x155   : > { %s6251_s30 = scalar_lea.vmem (!%p7012_p4), [#allocation3], %s4098_s13  ;;  %p7013_p9 = scmp.ne.s32.totalorder (!%p7012_p4), %s6981_s4, 0 }
 0x15a   : > { %5658 = dma.done.wait (%p7013_p9), %s837_s27, 2048  }
 0x15b   : > { %5660 = vsyncadd (%p7013_p9), %s837_s27, 4294965248  ;;  %s7014_s26 = sld [smem:[#allocation30_spill]]  ;;  %s6258_s28 = scalar_lea.vmem [#allocation6], %s4098_s13 }
 0x161   : > { %s845_s15 = sand.u32 1, %s7014_s26  }
 0x162   : > { %s846_s29 = scalar_lea.sflag [#allocation7], %s845_s15 }
 0x163   : > { %5662 = dma.done.wait (%p7013_p9), %s846_s29, 2064  }
 0x164   : > { %5664 = vsyncadd (%p7013_p9), %s846_s29, 4294965232  ;;  %s863_s21 = scalar_lea.sflag [#allocation10], %s845_s15  ;;  %s6265_s18 = scalar_lea.vmem [#allocation9], %s4098_s13 }
 0x165   : > { %5666 = dma.done.wait (%p7013_p9), %s863_s21, 2064  }
 0x166   : > { %5668 = vsyncadd (%p7013_p9), %s863_s21, 4294965232  ;;  %s880_s11 = scalar_lea.sflag [#allocation13], %s845_s15  ;;  %s6272_s12 = scalar_lea.vmem [#allocation12], %s4098_s13 }
 0x167   : > { %5670 = dma.done.wait (%p7013_p9), %s880_s11, 2064  }
 0x168   : > { %5672 = vsyncadd (%p7013_p9), %s880_s11, 4294965232  ;;  %s897_s3 = scalar_lea.sflag [#allocation16], %s845_s15 }
 0x169   : > { %5674 = dma.done.wait (%p7013_p9), %s897_s3, 32  }
 0x16a   : > { %5676 = vsyncadd (%p7013_p9), %s897_s3, 4294967264  ;;  %p7015_p8 = scmp.eq.s32.totalorder %s7014_s26, 0 }
 0x16c   : > { %5678 = dma.done.wait (%p7015_p8), [#allocation19], 2064   ;;  %p7016_p5 = pmov %p7015_p8 }
 0x16d   : > { %p1028_p6 = scmp.lt.s32.totalorder %s7014_s26, 1  ;;  %s7019_s23 = sld [smem:[#allocation45_spill]] }
 0x16e   : > { %5680 = vsyncadd (%p7016_p5), [#allocation19], 4294965232  ;;  %s7020_s6 = sld [smem:[#allocation46_spill]]  ;;  %s7021_s7 = sld [smem:[#allocation47_spill]] }
 0x16f   : > { %s6291_s1 = scalar_select %p1028_p6, %s7014_s26, 1 }
 0x170   : > { %s7022_s13 = sld [smem:[#allocation48_spill]]  ;;  %s7023_s10 = sld [smem:[#allocation49_spill]] }
 0x171   : > { %s4179_s29 = sshll.u32 %s6291_s1, 8  ;;  %s4106_s21 = sshll.u32 %s6291_s1, 1 }
 0x172   : > { %p7024_p13 = scmp.ne.s32.totalorder %s7014_s26, 0 }
 0x173   : > { %s6306_s16 = scalar_lea.vmem %s7019_s23, %s4179_s29  ;;  %s7025_s2 = sld [smem:[#allocation33_spill]] (!%p7024_p13) }
 0x174   : > { %s6311_s14 = scalar_lea.vmem %s7020_s6, %s4106_s21  ;;  %s6316_s24 = scalar_lea.vmem %s7021_s7, %s4179_s29 }
 0x175   : > { %1057 = sbr.rel (%p7024_p13) target bundleno = 380 (0x17c), region = 148 }
 0x176   : > { %s1050_s27 = scalar_lea.vmem %s7022_s13, %s6291_s1  ;;  %s1053_s11 = scalar_lea.vmem %s7023_s10, %s6291_s1 }
 0x179   : > { %v1058_v0 = vld [vmem:[%s7025_s2] sm:$0xff] (!%p7024_p13)  ;;  %v1059_v1 = vld [vmem:[%s7025_s2 + $0x8] sm:$0xff] (!%p7024_p13)  ;;  %v1060_v2 = vld [vmem:[%s7025_s2 + $0x10] sm:$0xff] (!%p7024_p13) }
 0x17a   : > { %1062 = vst [vmem:[#allocation2] sm:$0xff] (!%p7024_p13), %v1058_v0  ;;  %1063 = vst [vmem:[#allocation2 + $0x8] sm:$0xff] (!%p7024_p13), %v1059_v1  ;;  %v1061_v3 = vld [vmem:[%s7025_s2 + $0x18] sm:$0xff] (!%p7024_p13) }
 0x17b   : > { %1064 = vst [vmem:[#allocation2 + $0x10] sm:$0xff] (!%p7024_p13), %v1060_v2  ;;  %1065 = vst [vmem:[#allocation2 + $0x18] sm:$0xff] (!%p7024_p13), %v1061_v3 }
 0x17c PF: > { %v1178_v4 = vld [vmem:[%s6258_s28] sm:$0xff]  ;;  %v1179_v5 = vld [vmem:[%s6258_s28 + $0x8] sm:$0xff]  ;;  %v1180_v6 = vld [vmem:[%s6258_s28 + $0x10] sm:$0xff]  ;;  %vm1395_vm0 = vcmask 261120   ;;  %s7027_s20 = sld [smem:[#allocation36_spill]]  ;;  %s5714_s15 = smov 96  }
 0x17d   : > { %v4717_v7 = vpack.c.bf16 %v1179_v5, %v1178_v4  ;;  %v1181_v8 = vld [vmem:[%s6258_s28 + $0x18] sm:$0xff]  ;;  %v1182_v9 = vld [vmem:[%s6258_s28 + $0x20] sm:$0xff]  ;;  %v1183_v11 = vld [vmem:[%s6258_s28 + $0x28] sm:$0xff]  ;;  %s7031_s6 = sld [smem:[#allocation34_spill]]  ;;  %vm1491_vm2 = vcmask 130048   ;;  %s7032_s8 = scalar_lea.vmem [#allocation11], %s6247_s25 }
 0x17e   : > { %v4721_v10 = vpack.c.bf16 %v1181_v8, %v1180_v6  ;;  %v1070_v12 = vld [vmem:[%s6251_s30] sm:$0xff]  ;;  %v1071_v13 = vld [vmem:[%s6251_s30 + $0x8] sm:$0xff]  ;;  %v1072_v15 = vld [vmem:[%s6251_s30 + $0x10] sm:$0xff]  ;;  %v4725_v19 = vpack.c.bf16 %v1183_v11, %v1182_v9  ;;  %s5715_s13 = smov 64   ;;  %s5716_s23 = smov 32   ;;  %vm2235_vm3 = vcmask 523264  }
 0x17f   : > { %4718 = vmatprep.subr.bf16.mxu1 %v4717_v7  ;;  %v4685_v14 = vpack.c.bf16 %v1071_v13, %v1070_v12  ;;  %v1073_v16 = vld [vmem:[%s6251_s30 + $0x18] sm:$0xff]  ;;  %v1074_v18 = vld [vmem:[%s6251_s30 + $0x20] sm:$0xff]  ;;  %v1075_v20 = vld [vmem:[%s6251_s30 + $0x28] sm:$0xff]  ;;  %vm2238_vm4 = vcmask 785408   ;;  %s7035_s7 = sld [smem:[#allocation44_spill]] }
 0x180   : > { %4720 = vmatpush3.bf16.msra.mxu1 %v4717_v7  ;;  %v4689_v17 = vpack.c.bf16 %v1073_v16, %v1072_v15  ;;  %v1184_v21 = vld [vmem:[%s6258_s28 + $0x30] sm:$0xff]  ;;  %v1185_v22 = vld [vmem:[%s6258_s28 + $0x38] sm:$0xff]  ;;  %v4693_v23 = vpack.c.bf16 %v1075_v20, %v1074_v18  ;;  %v1186_v28 = vld [vmem:[%s6258_s28 + $0x40] sm:$0xff] }
 0x181   : > { %4722 = vmatprep.subr.bf16.mxu1 %v4721_v10  ;;  %4686 = vmatprep.subr.bf16.mxu0 %v4685_v14  ;;  %v1076_v24 = vld [vmem:[%s6251_s30 + $0x30] sm:$0xff]  ;;  %v1077_v25 = vld [vmem:[%s6251_s30 + $0x38] sm:$0xff]  ;;  %v4729_v26 = vpack.c.bf16 %v1185_v22, %v1184_v21  ;;  %v1066_v27 = vld [vmem:[#allocation2] sm:$0xff] }
 0x182   : > { %4688 = vmatpush3.bf16.msra.mxu0 %v4685_v14  ;;  %v1187_v29 = vld [vmem:[%s6258_s28 + $0x48] sm:$0xff]  ;;  %4456 = vmatprep.mubr.f32.mxu1 %v1066_v27  ;;  %v4697_v30 = vpack.c.bf16 %v1077_v25, %v1076_v24  ;;  %v1078_v31 = vld [vmem:[%s6251_s30 + $0x40] sm:$0xff]  ;;  %v1188_v34 = vld [vmem:[%s6258_s28 + $0x50] sm:$0xff]  ;;  %s7028_s4 = scalar_lea.vmem %s7027_s20, %s6291_s1 }
 0x183   : > { %4690 = vmatprep.subr.bf16.mxu0 %v4689_v17  ;;  %4418 = vmatprep.mubr.f32.mxu0 %v1066_v27  ;;  %v1079_v32 = vld [vmem:[%s6251_s30 + $0x48] sm:$0xff]  ;;  %v4733_v33 = vpack.c.bf16 %v1187_v29, %v1186_v28  ;;  %v1189_v35 = vld [vmem:[%s6258_s28 + $0x58] sm:$0xff]  ;;  %v1080_v37 = vld [vmem:[%s6251_s30 + $0x50] sm:$0xff] }
 0x184   : > { %4724 = vmatpush3.bf16.msra.mxu1 %v4721_v10  ;;  %v4701_v36 = vpack.c.bf16 %v1079_v32, %v1078_v31  ;;  %v1081_v38 = vld [vmem:[%s6251_s30 + $0x58] sm:$0xff]  ;;  %v4737_v39 = vpack.c.bf16 %v1189_v35, %v1188_v34  ;;  %v1190_v40 = vld [vmem:[%s6258_s28 + $0x60] sm:$0xff]  ;;  %v1191_v41 = vld [vmem:[%s6258_s28 + $0x68] sm:$0xff] }
 0x185   : > { %4726 = vmatprep.subr.bf16.mxu1 %v4725_v19  ;;  %v4705_v42 = vpack.c.bf16 %v1081_v38, %v1080_v37  ;;  %v1082_v43 = vld [vmem:[%s6251_s30 + $0x60] sm:$0xff]  ;;  %v1083_v44 = vld [vmem:[%s6251_s30 + $0x68] sm:$0xff]  ;;  %v4741_v45 = vpack.c.bf16 %v1191_v41, %v1190_v40  ;;  %v1192_v46 = vld [vmem:[%s6258_s28 + $0x70] sm:$0xff]  ;;  %s7036_s9 = scalar_lea.vmem %s7035_s7, %s6291_s1 }
 0x186   : > { %4692 = vmatpush3.bf16.msra.mxu0 %v4689_v17  ;;  %v1193_v47 = vld [vmem:[%s6258_s28 + $0x78] sm:$0xff]  ;;  %v4709_v48 = vpack.c.bf16 %v1083_v44, %v1082_v43  ;;  %v1084_v49 = vld [vmem:[%s6251_s30 + $0x70] sm:$0xff]  ;;  %v6372_v53 = vld [vmem:[#allocation2 + $0x8] sm:$0xff]  ;;  %s7039_s28 = scalar_lea.vmem [#allocation17], %s6247_s25 }
 0x187   : > { %4694 = vmatprep.subr.bf16.mxu0 %v4693_v23  ;;  %v1085_v50 = vld [vmem:[%s6251_s30 + $0x78] sm:$0xff]  ;;  %v4745_v51 = vpack.c.bf16 %v1193_v47, %v1192_v46  ;;  %v6376_v54 = vld [vmem:[#allocation2 + $0x10] sm:$0xff]  ;;  %v1286_v56 = vld [vmem:[%s6265_s18] sm:$0xff]  ;;  %s7026_s30 = scalar_lea.vmem [#allocation8], %s6247_s25 }
 0x188   : > { %4728 = vmatpush3.bf16.msra.mxu1 %v4725_v19  ;;  %v4713_v52 = vpack.c.bf16 %v1085_v50, %v1084_v49  ;;  %v6379_v55 = vld [vmem:[#allocation2 + $0x18] sm:$0xff]  ;;  %v1287_v57 = vld [vmem:[%s6265_s18 + $0x8] sm:$0xff]  ;;  %v1290_v62 = vld [vmem:[%s6265_s18 + $0x20] sm:$0xff] }
 0x189   : > { %4730 = vmatprep.subr.bf16.mxu1 %v4729_v26  ;;  %v1288_v58 = vld [vmem:[%s6265_s18 + $0x10] sm:$0xff]  ;;  %v4749_v59 = vpack.c.bf16 %v1287_v57, %v1286_v56  ;;  %v1289_v60 = vld [vmem:[%s6265_s18 + $0x18] sm:$0xff]  ;;  %v1291_v63 = vld [vmem:[%s6265_s18 + $0x28] sm:$0xff] }
 0x18a   : > { %4696 = vmatpush3.bf16.msra.mxu0 %v4693_v23  ;;  %v4753_v61 = vpack.c.bf16 %v1289_v60, %v1288_v58  ;;  %v4757_v0 = vpack.c.bf16 %v1291_v63, %v1290_v62  ;;  %v4111_v1 = vld [vmem:[%s7026_s30] ss:$0 sm:$0xff]  ;;  %v1292_v2 = vld [vmem:[%s6265_s18 + $0x30] sm:$0xff]  ;;  %v1294_v11 = vld [vmem:[%s6265_s18 + $0x40] sm:$0xff] }
 0x18b   : > { %4698 = vmatprep.subr.bf16.mxu0 %v4697_v30  ;;  %v1293_v3 = vld [vmem:[%s6265_s18 + $0x38] sm:$0xff]  ;;  %v1295_v12 = vld [vmem:[%s6265_s18 + $0x48] sm:$0xff]  ;;  %vm6405_vm1 = vmpackc.low %vm1395_vm0, %vm1395_vm0 }
 0x18c   : > { %4732 = vmatpush3.bf16.msra.mxu1 %v4729_v26  ;;  %v6399_v7 = vld [vmem:[%s7028_s4] ss:$0 sm:$0xff]  ;;  %v4761_v8 = vpack.c.bf16 %v1293_v3, %v1292_v2  ;;  %v4765_v18 = vpack.c.bf16 %v1295_v12, %v1294_v11  ;;  %v1296_v19 = vld [vmem:[%s6265_s18 + $0x50] sm:$0xff]  ;;  %v1298_v22 = vld [vmem:[%s6265_s18 + $0x60] sm:$0xff] }
 0x18d   : > { %4734 = vmatprep.subr.bf16.mxu1 %v4733_v33  ;;  %v1297_v20 = vld [vmem:[%s6265_s18 + $0x58] sm:$0xff]  ;;  %v1299_v23 = vld [vmem:[%s6265_s18 + $0x68] sm:$0xff]  ;;  %v1300_v26 = vld [vmem:[%s6265_s18 + $0x70] sm:$0xff] }
 0x18e   : > { %4700 = vmatpush3.bf16.msra.mxu0 %v4697_v30  ;;  %v4769_v21 = vpack.c.bf16 %v1297_v20, %v1296_v19  ;;  %v4773_v25 = vpack.c.bf16 %v1299_v23, %v1298_v22  ;;  %v6445_v37 = vld [vmem:[%s7031_s6] ss:$0 sm:$0xff] }
 0x18f   : > { %4702 = vmatprep.subr.bf16.mxu0 %v4701_v36  ;;  %v6459_v49 = vld [vmem:[%s7032_s8] ss:$0 sm:$0xff] }
 0x190   : > { %4736 = vmatpush3.bf16.msra.mxu1 %v4733_v33 }
 0x191   : > { %4738 = vmatprep.subr.bf16.mxu1 %v4737_v39 }
 0x192   : > { %4704 = vmatpush3.bf16.msra.mxu0 %v4701_v36 }
 0x193   : > { %4706 = vmatprep.subr.bf16.mxu0 %v4705_v42 }
 0x194   : > { %4740 = vmatpush3.bf16.msra.mxu1 %v4737_v39 }
 0x195   : > { %4742 = vmatprep.subr.bf16.mxu1 %v4741_v45 }
 0x196   : > { %4708 = vmatpush3.bf16.msra.mxu0 %v4705_v42 }
 0x197   : > { %4710 = vmatprep.subr.bf16.mxu0 %v4709_v48 }
 0x198   : > { %4744 = vmatpush3.bf16.msra.mxu1 %v4741_v45 }
 0x199   : > { %4746 = vmatprep.subr.bf16.mxu1 %v4745_v51 }
 0x19a   : > { %4712 = vmatpush3.bf16.msra.mxu0 %v4709_v48 }
 0x19b   : > { %4714 = vmatprep.subr.bf16.mxu0 %v4713_v52 }
 0x19c   : > { %4748 = vmatpush3.bf16.msra.mxu1 %v4745_v51 }
 0x19e   : > { %4716 = vmatpush3.bf16.msra.mxu0 %v4713_v52 }
 0x19f   : > { %4457 = vmatmul.mubr.f32.vlgmr.msra.gmra.mrb[0].mxu1 %v6372_v53  ;;  %4750 = vmatprep.subr.bf16.mxu0 %v4749_v59 }
 0x1a0   : > { %4459 = vmatprep.mubr.f32.mxu1 %v6376_v54 }
 0x1a1   : > { %4419 = vmatmul.mubr.f32.vlgmr.msra.gmra.mrb[0].mxu0 %v6372_v53 }
 0x1a2   : > { %4421 = vmatprep.mubr.f32.mxu0 %v6376_v54  ;;  %4752 = vmatpush3.bf16.msra.mxu0 %v4749_v59 }
 0x1a3   : > { %4460 = vmatmul.mubr.f32.gmra.mrb[2].mxu1 %v6379_v55  ;;  %4754 = vmatprep.subr.bf16.mxu0 %v4753_v61 }
 0x1a5   : > { %4422 = vmatmul.mubr.f32.gmra.mrb[2].mxu0 %v6379_v55 }
 0x1a6   : > { %4494 = vmatprep.mubr.f32.mxu0 %v1066_v27  ;;  %4756 = vmatpush3.bf16.msra.mxu0 %v4753_v61  ;;  %v1301_v27 = vld [vmem:[%s6265_s18 + $0x78] sm:$0xff] }
 0x1a7   : > { %4758 = vmatprep.subr.bf16.mxu0 %v4757_v0  ;;  %v4777_v28 = vpack.c.bf16 %v1301_v27, %v1300_v26 }
 0x1aa   : > { %4760 = vmatpush3.bf16.msra.mxu0 %v4757_v0 }
 0x1ab   : > { %4762 = vmatprep.subr.bf16.mxu0 %v4761_v8 }
 0x1ae   : > { %4764 = vmatpush3.bf16.msra.mxu0 %v4761_v8 }
 0x1af   : > { %4766 = vmatprep.subr.bf16.mxu0 %v4765_v18 }
 0x1b2   : > { %4768 = vmatpush3.bf16.msra.mxu0 %v4765_v18 }
 0x1b3   : > { %4770 = vmatprep.subr.bf16.mxu0 %v4769_v21 }
 0x1b6   : > { %4772 = vmatpush3.bf16.msra.mxu0 %v4769_v21 }
 0x1b7   : > { %4774 = vmatprep.subr.bf16.mxu0 %v4773_v25 }
 0x1ba   : > { %4776 = vmatpush3.bf16.msra.mxu0 %v4773_v25 }
 0x1bb   : > { %4778 = vmatprep.subr.bf16.mxu0 %v4777_v28 }
 0x1be   : > { %4780 = vmatpush3.bf16.msra.mxu0 %v4777_v28 }
 0x1c1   : > { %4495 = vmatmul.mubr.f32.vlgmr.msra.gmra.mrb[4].mxu0 %v6372_v53 }
 0x1c2   : > { %4497 = vmatprep.mubr.f32.mxu0 %v6376_v54 }
 0x1c5   : > { %4498 = vmatmul.mubr.f32.gmra.mrb[6].mxu0 %v6379_v55 }
 0x272   : > { %v4458_v4 = vpop.f32.mrb[0].mxu1 }
 0x273   : > { %v1273_v5 = vadd.f32 %v4458_v4, %v4111_v1  ;;  %v1267_v6 = vpop.f32.mrb[1].mxu1 }
 0x274   : > { %v1268_v9 = vadd.f32 %v4111_v1, %v1267_v6  ;;  %v4420_v10 = vpop.f32.mrb[0].mxu0 }
 0x275   : > { %v1159_v14 = vpop.f32.mrb[1].mxu0  ;;  %v6427_v24 = vadd.f32 %v4420_v10, %v6399_v7 }
 0x276   : > { %v4781_v15 = vpack.c.bf16 %v1273_v5, %v1268_v9  ;;  %v6410_v16 = vadd.f32 %v6399_v7, %v1159_v14  ;;  %v6412_v17 = vpack.i.bf16 %v1273_v5, %v1268_v9  ;;  %v4461_v29 = vpop.f32.mrb[2].mxu1 }
 0x277   : > { %v1283_v30 = vadd.f32 %v4461_v29, %v4111_v1  ;;  %v1277_v31 = vpop.f32.mrb[3].mxu1 }
 0x278   : > { %4783 = vmatprep.subr.msk.bf16.mxu1 %vm6405_vm1, %v4781_v15  ;;  %1595 = vrot.lane.b32.xlu1 %v6410_v16, %s5714_s15  ;;  %v1278_v32 = vadd.f32 %v4111_v1, %v1277_v31  ;;  %v4423_v44 = vpop.f32.mrb[2].mxu0 }
 0x279   : > { %4786 = vmatpush3.bf16.xpose.msk.msra.mxu1 %vm6405_vm1, %v4781_v15  ;;  %4504 = vmatprep.mubr.msk.f32.mxu1 %vm1395_vm0, %v6410_v16  ;;  %v1169_v45 = vpop.f32.mrb[3].mxu0  ;;  %v6452_v46 = vadd.f32 %v4423_v44, %v6399_v7 }
 0x27a   : > { %v4821_v33 = vpack.c.bf16 %v1283_v30, %v1278_v32  ;;  %v6440_v34 = vpack.i.bf16 %v1283_v30, %v1278_v32  ;;  %v6455_v47 = vadd.f32 %v6399_v7, %v1169_v45 }
 0x27c   : > { %4823 = vmatprep.subr.msk.bf16.mxu0 %vm6405_vm1, %v4821_v33  ;;  %4560 = vmatprep.mubr.msk.f32.mxu0 %vm1395_vm0, %v6455_v47 }
 0x27d   : > { %4826 = vmatpush3.bf16.xpose.msk.msra.mxu0 %vm6405_vm1, %v4821_v33 }
 0x280   : > { %4505 = vmatmul.mubr.msk.f32.vlgmr.msra.gmra.mrb[4].mxu1 %vm1395_vm0, %v6427_v24 }
 0x284   : > { %4561 = vmatmul.mubr.msk.f32.vlgmr.msra.gmra.mrb[8].mxu0 %vm1395_vm0, %v6452_v46 }
 0x294   : > { %v4496_v48 = vpop.f32.mrb[4].mxu0 }
 0x295   : > { %v1375_v50 = vpop.f32.mrb[5].mxu0  ;;  %v1381_v51 = vadd.f32 %v4496_v48, %v6459_v49 }
 0x296   : > { %v1376_v52 = vadd.f32 %v6459_v49, %v1375_v50 }
 0x298   : > { %v4787_v53 = vpack.c.bf16 %v1381_v51, %v1376_v52  ;;  %v6475_v4 = vpop.f32.mrb[6].mxu0  ;;  %v6497_v30 = vpack.i.bf16 %v1381_v51, %v1376_v52 }
 0x299   : > { %v6477_v5 = vpop.f32.mrb[7].mxu0 }
 0x29a   : > { %4788 = vmatprep.subr.bf16.mxu1 %v4787_v53 }
 0x29b   : > { %4790 = vmatpush3.bf16.msra.mxu1 %v4787_v53 }
 0x2ea   : > { %v1596_v8 = vpop.permute.xlu1 %1595 }
 0x353   : > { %v4506_v35 = vpop.f32.mrb[4].mxu1 }
 0x354   : > { %v1474_v36 = vpop.f32.mrb[5].mxu1  ;;  %v1484_v38 = vmul.f32 0.17677669, %v4506_v35 }
 0x355   : > { %v1483_v39 = vmul.f32 0.17677669, %v1474_v36 }
 0x356   : > { %v1490_v42 = vadd.f32 %v6445_v37, %v1484_v38 }
 0x357   : > { %v1489_v40 = vadd.f32 %v6445_v37, %v1483_v39  ;;  %v6479_v6 = vpop.f32.mrb[8].mxu0 }
 0x358   : > { %v1495_v43 = vsel %vm1491_vm2, %v1490_v42, -inf  ;;  %v6481_v7 = vpop.f32.mrb[9].mxu0 }
 0x359   : > { %v1492_v41 = vsel %vm1491_vm2, %v1489_v40, -inf }
 0x35a   : > { %1493 = vmax.xlane.f32.xlu0 %v1492_v41 }
 0x35e   : > { %1496 = vmax.xlane.f32.xlu0 %v1495_v43 }
 0x374   : > { %5098 = vrot.lane.b32.xlu0 %v6412_v17, %s5714_s15 }
 0x3e7   : > { %v1494_v54 = vpop.xlane.xlu0 %1493 }
 0x3e8   : > { %v1498_v55 = vsub.f32 %v1489_v40, %v1494_v54 }
 0x3ea   : > { %v1500_v58 = vmul.f32 1.442695, %v1498_v55 }
 0x3eb   : > { %v1497_v56 = vpop.xlane.xlu0 %1496 }
 0x3ec   : > { %v1499_v57 = vsub.f32 %v1490_v42, %v1497_v56 }
 0x3ee   : > { %v1502_v59 = vmul.f32 1.442695, %v1499_v57 }
 0x3ef   : > { %v5099_v60 = vpop.permute.xlu0 %5098 }
 0x3f0   : > { %5187 = vpow2.f32 %v1502_v59  ;;  %v5101_v61 = vunpack.i.h.bf16 %v5099_v60  ;;  %v5100_v62 = vunpack.i.l.bf16 %v5099_v60 }
 0x3f1   : > { %5189 = vpow2.f32 %v1500_v58 }
 0x3f2   : > { %v4791_v63 = vpack.c.bf16 %v5101_v61, %v5100_v62 }
 0x3f4   : > { %4793 = vmatprep.subr.msk.bf16.mxu1 %vm6405_vm1, %v4791_v63 }
 0x3fa   : > { %v5188_v0 = vpop.eup %5187 }
 0x3fb   : > { %v1507_v1 = vsel %vm1491_vm2, %v5188_v0, 0.0  ;;  %v5190_v2 = vpop.eup %5189 }
 0x3fc   : > { %1508 = vadd.xlane.f32.xlu1 %v1507_v1  ;;  %v1504_v3 = vsel %vm1491_vm2, %v5190_v2, 0.0 }
 0x400   : > { %1505 = vadd.xlane.f32.xlu1 %v1504_v3 }
 0x411   : > { %1597 = vrot.lane.b32.xlu1 %v6427_v24, %s5714_s15 }
 0x489   : > { %v1509_v9 = vpop.xlane.xlu1 %1508 }
 0x48a   : > { %5191 = vrcp.f32 %v1509_v9 }
 0x48d   : > { %v1506_v10 = vpop.xlane.xlu1 %1505 }
 0x48e   : > { %5193 = vrcp.f32 %v1506_v10 }
 0x491   : > { %v1598_v18 = vpop.permute.xlu1 %1597 }
 0x494   : > { %v5192_v11 = vpop.eup %5191 }
 0x495   : > { %v1513_v15 = vmul.f32 %v5192_v11, %v5188_v0 }
 0x498   : > { %v5194_v12 = vpop.eup %5193 }
 0x499   : > { %v1511_v14 = vmul.f32 %v5194_v12, %v5190_v2 }
 0x49b   : > { %4511 = vmatprep.mubr.msk.f32.mxu1 %vm1491_vm2, %v1511_v14 }
 0x49c   : > { %4512 = vmatmul.mubr.msk.f32.vlgmr.msra.gmra.mrb[6].mxu1 %vm1491_vm2, %v1513_v15 }
 0x49d   : > { %4796 = vmatpush3.bf16.xpose.msk.msra.mxu1 %vm6405_vm1, %v4791_v63  ;;  %4518 = vmatprep.mubr.msk.f32.mxu1 %vm1395_vm0, %v1596_v8 }
 0x4a4   : > { %4519 = vmatmul.mubr.msk.f32.vlgmr.msra.gmra.mrb[8].mxu1 %vm1395_vm0, %v1598_v18 }
 0x56f   : > { %v6489_v19 = vpop.f32.mrb[6].mxu1 }
 0x570   : > { %v6491_v20 = vpop.f32.mrb[7].mxu1 }
 0x577   : > { %v4520_v21 = vpop.f32.mrb[8].mxu1 }
 0x578   : > { %v1687_v22 = vmul.f32 0.17677669, %v4520_v21  ;;  %v1677_v23 = vpop.f32.mrb[9].mxu1 }
 0x579   : > { %v1686_v25 = vmul.f32 0.17677669, %v1677_v23 }
 0x57a   : > { %v1689_v26 = vadd.f32 %v6445_v37, %v1687_v22 }
 0x57b   : > { %v1688_v27 = vadd.f32 %v6445_v37, %v1686_v25 }
 0x57c   : > { %v1693_v28 = vsel %vm1491_vm2, %v1689_v26, -inf }
 0x57d   : > { %1694 = vmax.xlane.f32.xlu0 %v1693_v28  ;;  %v1690_v29 = vsel %vm1491_vm2, %v1688_v27, -inf }
 0x57e   : > { %1691 = vmax.xlane.f32.xlu1 %v1690_v29 }
 0x58f   : > { %5103 = vrot.lane.b32.xlu1 %v6497_v30, %s5714_s15 }
 0x593   : > { %1801 = vrot.lane.b32.xlu1 %v6410_v16, %s5715_s13 }
 0x597   : > { %1803 = vrot.lane.b32.xlu1 %v6427_v24, %s5715_s13 }
 0x60a   : > { %v1695_v31 = vpop.xlane.xlu0 %1694 }
 0x60b   : > { %v1697_v32 = vsub.f32 %v1689_v26, %v1695_v31  ;;  %v1692_v33 = vpop.xlane.xlu1 %1691 }
 0x60c   : > { %v1696_v35 = vsub.f32 %v1688_v27, %v1692_v33 }
 0x60d   : > { %v1700_v36 = vmul.f32 1.442695, %v1697_v32 }
 0x60e   : > { %v1698_v38 = vmul.f32 1.442695, %v1696_v35 }
 0x60f   : > { %5195 = vpow2.f32 %v1700_v36  ;;  %v5104_v39 = vpop.permute.xlu1 %5103 }
 0x610   : > { %v5106_v40 = vunpack.i.h.bf16 %v5104_v39  ;;  %v5105_v41 = vunpack.i.l.bf16 %v5104_v39  ;;  %5197 = vpow2.f32 %v1698_v38 }
 0x612   : > { %v4797_v42 = vpack.c.bf16 %v5106_v40, %v5105_v41 }
 0x613   : > { %v1802_v60 = vpop.permute.xlu1 %1801 }
 0x614   : > { %4798 = vmatprep.subr.bf16.mxu1 %v4797_v42 }
 0x615   : > { %4800 = vmatpush3.bf16.msra.mxu1 %v4797_v42 }
 0x617   : > { %v1804_v61 = vpop.permute.xlu1 %1803 }
 0x619   : > { %v5196_v43 = vpop.eup %5195 }
 0x61a   : > { %v1705_v44 = vsel %vm1491_vm2, %v5196_v43, 0.0  ;;  %v5198_v45 = vpop.eup %5197 }
 0x61b   : > { %1706 = vadd.xlane.f32.xlu0 %v1705_v44  ;;  %v1702_v48 = vsel %vm1491_vm2, %v5198_v45, 0.0 }
 0x61f   : > { %1703 = vadd.xlane.f32.xlu0 %v1702_v48  ;;  %v1386_v48 = vadd.f32 %v6459_v49, %v6477_v5 }
 0x635   : > { %5108 = vrot.lane.b32.xlu0 %v6412_v17, %s5715_s13 }
 0x6a8   : > { %v1707_v50 = vpop.xlane.xlu0 %1706 }
 0x6a9   : > { %5199 = vrcp.f32 %v1707_v50 }
 0x6ac   : > { %v1704_v51 = vpop.xlane.xlu0 %1703 }
 0x6ad   : > { %5201 = vrcp.f32 %v1704_v51 }
 0x6b0   : > { %v5109_v52 = vpop.permute.xlu0 %5108 }
 0x6b1   : > { %v5111_v53 = vunpack.i.h.bf16 %v5109_v52  ;;  %v5110_v54 = vunpack.i.l.bf16 %v5109_v52 }
 0x6b3   : > { %v4801_v55 = vpack.c.bf16 %v5111_v53, %v5110_v54  ;;  %v5200_v56 = vpop.eup %5199 }
 0x6b4   : > { %v1711_v59 = vmul.f32 %v5200_v56, %v5196_v43  ;;  %v2329_v56 = vmul.f32 0.17677669, %v6481_v7 }
 0x6b5   : > { %4803 = vmatprep.subr.msk.bf16.mxu1 %vm6405_vm1, %v4801_v55 }
 0x6b7   : > { %v5202_v57 = vpop.eup %5201 }
 0x6b8   : > { %v1709_v58 = vmul.f32 %v5202_v57, %v5198_v45  ;;  %v1391_v45 = vadd.f32 %v6475_v4, %v6459_v49  ;;  %v6563_v49 = vld [vmem:[%s7031_s6 + $0x1] ss:$0 sm:$0xff] }
 0x6ba   : > { %4525 = vmatprep.mubr.msk.f32.mxu1 %vm1491_vm2, %v1709_v58  ;;  %v6549_v50 = vpack.c.bf16 %v1391_v45, %v1386_v48  ;;  %v6551_v51 = vpack.i.bf16 %v1391_v45, %v1386_v48 }
 0x6bb   : > { %4526 = vmatmul.mubr.msk.f32.vlgmr.msra.gmra.mrb[10].mxu1 %vm1491_vm2, %v1711_v59 }
 0x6bc   : > { %4806 = vmatpush3.bf16.xpose.msk.msra.mxu1 %vm6405_vm1, %v4801_v55  ;;  %4532 = vmatprep.mubr.msk.f32.mxu1 %vm1395_vm0, %v1802_v60  ;;  %v2330_v60 = vmul.f32 0.17677669, %v6479_v6 }
 0x6c3   : > { %4533 = vmatmul.mubr.msk.f32.vlgmr.msra.gmra.mrb[12].mxu1 %vm1395_vm0, %v1804_v61 }
 0x78e   : > { %v6517_v62 = vpop.f32.mrb[10].mxu1 }
 0x78f   : > { %v6519_v63 = vpop.f32.mrb[11].mxu1 }
 0x790   : > { %v5157_v0 = vpack.i.bf16 %v6517_v62, %v6519_v63 }
 0x796   : > { %v4534_v1 = vpop.f32.mrb[12].mxu1 }
 0x797   : > { %v1893_v2 = vmul.f32 0.17677669, %v4534_v1  ;;  %v1883_v3 = vpop.f32.mrb[13].mxu1  ;;  %v2335_v1 = vadd.f32 %v6563_v49, %v2329_v56 }
 0x798   : > { %v1892_v8 = vmul.f32 0.17677669, %v1883_v3  ;;  %v2336_v3 = vadd.f32 %v6563_v49, %v2330_v60 }
 0x799   : > { %v1895_v9 = vadd.f32 %v6445_v37, %v1893_v2  ;;  %v2337_v2 = vsel %vm1491_vm2, %v2335_v1, -inf }
 0x79a   : > { %v1894_v10 = vadd.f32 %v6445_v37, %v1892_v8  ;;  %v2340_v8 = vsel %vm1491_vm2, %v2336_v3, -inf }
 0x79b   : > { %v1899_v11 = vsel %vm1491_vm2, %v1895_v9, -inf }
 0x79c   : > { %1900 = vmax.xlane.f32.xlu0 %v1899_v11  ;;  %v1896_v12 = vsel %vm1491_vm2, %v1894_v10, -inf }
 0x79d   : > { %1897 = vmax.xlane.f32.xlu1 %v1896_v12 }
 0x7ae   : > { %5113 = vrot.lane.b32.xlu1 %v6497_v30, %s5715_s13 }
 0x7b2   : > { %2005 = vrot.lane.b32.xlu1 %v6410_v16, %s5716_s23 }
 0x7b6   : > { %2007 = vrot.lane.b32.xlu1 %v6427_v24, %s5716_s23 }
 0x829   : > { %v1901_v14 = vpop.xlane.xlu0 %1900 }
 0x82a   : > { %v1903_v15 = vsub.f32 %v1895_v9, %v1901_v14  ;;  %v1898_v18 = vpop.xlane.xlu1 %1897 }
 0x82b   : > { %v1902_v21 = vsub.f32 %v1894_v10, %v1898_v18 }
 0x82c   : > { %v1906_v22 = vmul.f32 1.442695, %v1903_v15 }
 0x82d   : > { %v1904_v23 = vmul.f32 1.442695, %v1902_v21 }
 0x82e   : > { %5203 = vpow2.f32 %v1906_v22  ;;  %v5114_v25 = vpop.permute.xlu1 %5113 }
 0x82f   : > { %v5116_v26 = vunpack.i.h.bf16 %v5114_v25  ;;  %v5115_v27 = vunpack.i.l.bf16 %v5114_v25  ;;  %5205 = vpow2.f32 %v1904_v23 }
 0x831   : > { %v4807_v28 = vpack.c.bf16 %v5116_v26, %v5115_v27 }
 0x832   : > { %v2006_v44 = vpop.permute.xlu1 %2005 }
 0x833   : > { %4808 = vmatprep.subr.bf16.mxu1 %v4807_v28 }
 0x834   : > { %4810 = vmatpush3.bf16.msra.mxu1 %v4807_v28 }
 0x838   : > { %v5204_v29 = vpop.eup %5203 }
 0x839   : > { %v1911_v16 = vsel %vm1491_vm2, %v5204_v29, 0.0  ;;  %v5206_v31 = vpop.eup %5205 }
 0x83a   : > { %1912 = vadd.xlane.f32.xlu0 %v1911_v16  ;;  %v1908_v24 = vsel %vm1491_vm2, %v5206_v31, 0.0 }
 0x83e   : > { %1909 = vadd.xlane.f32.xlu0 %v1908_v24 }
 0x854   : > { %5118 = vrot.lane.b32.xlu0 %v6412_v17, %s5716_s23  ;;  %v2008_v17 = vpop.permute.xlu1 %2007 }
 0x8c7   : > { %v1913_v32 = vpop.xlane.xlu0 %1912 }
 0x8c8   : > { %5207 = vrcp.f32 %v1913_v32 }
 0x8cb   : > { %v1910_v33 = vpop.xlane.xlu0 %1909 }
 0x8cc   : > { %5209 = vrcp.f32 %v1910_v33 }
 0x8cf   : > { %v5119_v35 = vpop.permute.xlu0 %5118 }
 0x8d0   : > { %v5121_v36 = vunpack.i.h.bf16 %v5119_v35  ;;  %v5120_v38 = vunpack.i.l.bf16 %v5119_v35 }
 0x8d2   : > { %v4811_v39 = vpack.c.bf16 %v5121_v36, %v5120_v38  ;;  %v5208_v40 = vpop.eup %5207 }
 0x8d3   : > { %v1917_v43 = vmul.f32 %v5208_v40, %v5204_v29 }
 0x8d4   : > { %4813 = vmatprep.subr.msk.bf16.mxu1 %vm6405_vm1, %v4811_v39 }
 0x8d6   : > { %v5210_v41 = vpop.eup %5209 }
 0x8d7   : > { %v1915_v42 = vmul.f32 %v5210_v41, %v5206_v31 }
 0x8d9   : > { %4539 = vmatprep.mubr.msk.f32.mxu1 %vm1491_vm2, %v1915_v42 }
 0x8da   : > { %4540 = vmatmul.mubr.msk.f32.vlgmr.msra.gmra.mrb[14].mxu1 %vm1491_vm2, %v1917_v43 }
 0x8db   : > { %4816 = vmatpush3.bf16.xpose.msk.msra.mxu1 %vm6405_vm1, %v4811_v39  ;;  %4546 = vmatprep.mubr.msk.f32.mxu1 %vm1395_vm0, %v2006_v44 }
 0x8e2   : > { %4547 = vmatmul.mubr.msk.f32.vlgmr.msra.gmra.mrb[16].mxu1 %vm1395_vm0, %v2008_v17 }
 0x9ad   : > { %v6553_v52 = vpop.f32.mrb[14].mxu1 }
 0x9ae   : > { %v6555_v53 = vpop.f32.mrb[15].mxu1 }
 0x9af   : > { %v5162_v54 = vpack.i.bf16 %v6553_v52, %v6555_v53  ;;  %v3085_v52 = vld [vmem:[%s6272_s12 + $0x8] sm:$0xff] }
 0x9b5   : > { %v4548_v55 = vpop.f32.mrb[16].mxu1 }
 0x9b6   : > { %v2097_v57 = vmul.f32 0.17677669, %v4548_v55  ;;  %v2087_v58 = vpop.f32.mrb[17].mxu1 }
 0x9b7   : > { %v2096_v4 = vmul.f32 0.17677669, %v2087_v58 }
 0x9b8   : > { %v2099_v5 = vadd.f32 %v6445_v37, %v2097_v57 }
 0x9b9   : > { %v2098_v59 = vadd.f32 %v6445_v37, %v2096_v4 }
 0x9ba   : > { %v2103_v61 = vsel %vm1491_vm2, %v2099_v5, -inf }
 0x9bb   : > { %2104 = vmax.xlane.f32.xlu0 %v2103_v61  ;;  %v2100_v7 = vsel %vm1491_vm2, %v2098_v59, -inf }
 0x9bc   : > { %2101 = vmax.xlane.f32.xlu1 %v2100_v7 }
 0x9bf   : > { %2338 = vmax.xlane.f32.xlu0 %v2337_v2 }
 0x9c3   : > { %2341 = vmax.xlane.f32.xlu0 %v2340_v8 }
 0xa48   : > { %v2105_v9 = vpop.xlane.xlu0 %2104 }
 0xa49   : > { %v2107_v37 = vsub.f32 %v2099_v5, %v2105_v9  ;;  %v2102_v10 = vpop.xlane.xlu1 %2101 }
 0xa4a   : > { %v2106_v11 = vsub.f32 %v2098_v59, %v2102_v10 }
 0xa4b   : > { %v2110_v6 = vmul.f32 1.442695, %v2107_v37 }
 0xa4c   : > { %v2339_v12 = vpop.xlane.xlu0 %2338  ;;  %v2108_v15 = vmul.f32 1.442695, %v2106_v11 }
 0xa4d   : > { %5211 = vpow2.f32 %v2110_v6  ;;  %v2343_v14 = vsub.f32 %v2335_v1, %v2339_v12 }
 0xa4f   : > { %v2345_v18 = vmul.f32 1.442695, %v2343_v14 }
 0xa50   : > { %v2342_v21 = vpop.xlane.xlu0 %2341 }
 0xa51   : > { %5213 = vpow2.f32 %v2345_v18  ;;  %v2344_v22 = vsub.f32 %v2336_v3, %v2342_v21 }
 0xa52   : > { %5215 = vpow2.f32 %v2108_v15 }
 0xa53   : > { %v2347_v23 = vmul.f32 1.442695, %v2344_v22 }
 0xa55   : > { %5217 = vpow2.f32 %v2347_v23 }
 0xa57   : > { %v5212_v25 = vpop.eup %5211 }
 0xa58   : > { %v2115_v26 = vsel %vm1491_vm2, %v5212_v25, 0.0 }
 0xa59   : > { %2116 = vadd.xlane.f32.xlu0 %v2115_v26 }
 0xa5b   : > { %v5214_v27 = vpop.eup %5213 }
 0xa5c   : > { %v2349_v28 = vsel %vm1491_vm2, %v5214_v27, 0.0  ;;  %v5216_v29 = vpop.eup %5215 }
 0xa5d   : > { %2350 = vadd.xlane.f32.xlu1 %v2349_v28  ;;  %v2112_v24 = vsel %vm1491_vm2, %v5216_v29, 0.0 }
 0xa5f   : > { %v5218_v16 = vpop.eup %5217 }
 0xa60   : > { %v2352_v31 = vsel %vm1491_vm2, %v5218_v16, 0.0 }
 0xa61   : > { %2353 = vadd.xlane.f32.xlu0 %v2352_v31  ;;  %2113 = vadd.xlane.f32.xlu1 %v2112_v24 }
 0xa72   : > { %5123 = vrot.lane.b32.xlu1 %v6497_v30, %s5716_s23 }
 0xa76   : > { %5133 = vrot.lane.b32.xlu1 %v6440_v34, %s5715_s13 }
 0xa77   : > { %5128 = vrot.lane.b32.xlu0 %v6440_v34, %s5714_s15 }
 0xa7a   : > { %2440 = vrot.lane.b32.xlu1 %v6455_v47, %s5714_s15 }
 0xa7b   : > { %2646 = vrot.lane.b32.xlu0 %v6455_v47, %s5715_s13 }
 0xa7e   : > { %2442 = vrot.lane.b32.xlu1 %v6452_v46, %s5714_s15 }
 0xa82   : > { %2648 = vrot.lane.b32.xlu1 %v6452_v46, %s5715_s13 }
 0xae6   : > { %v2117_v30 = vpop.xlane.xlu0 %2116 }
 0xae7   : > { %5219 = vrcp.f32 %v2117_v30 }
 0xaea   : > { %v2351_v32 = vpop.xlane.xlu1 %2350 }
 0xaeb   : > { %5221 = vrcp.f32 %v2351_v32 }
 0xaee   : > { %v2114_v33 = vpop.xlane.xlu1 %2113  ;;  %v2354_v35 = vpop.xlane.xlu0 %2353 }
 0xaef   : > { %5223 = vrcp.f32 %v2114_v33 }
 0xaf0   : > { %5225 = vrcp.f32 %v2354_v35 }
 0xaf1   : > { %v5220_v42 = vpop.eup %5219 }
 0xaf2   : > { %v5124_v36 = vpop.permute.xlu1 %5123  ;;  %v5129_v41 = vpop.permute.xlu0 %5128  ;;  %v2121_v55 = vmul.f32 %v5220_v42, %v5212_v25 }
 0xaf3   : > { %v5126_v38 = vunpack.i.h.bf16 %v5124_v36  ;;  %v5125_v39 = vunpack.i.l.bf16 %v5124_v36  ;;  %v5131_v17 = vunpack.i.h.bf16 %v5129_v41  ;;  %v5130_v45 = vunpack.i.l.bf16 %v5129_v41 }
 0xaf5   : > { %v4817_v40 = vpack.c.bf16 %v5126_v38, %v5125_v39  ;;  %v5222_v43 = vpop.eup %5221  ;;  %v4831_v4 = vpack.c.bf16 %v5131_v17, %v5130_v45 }
 0xaf6   : > { %v5134_v56 = vpop.permute.xlu1 %5133  ;;  %v2356_v58 = vmul.f32 %v5222_v43, %v5214_v27  ;;  %v2647_v7 = vpop.permute.xlu0 %2646 }
 0xaf7   : > { %4818 = vmatprep.subr.bf16.mxu1 %v4817_v40  ;;  %v5136_v60 = vunpack.i.h.bf16 %v5134_v56  ;;  %v5135_v61 = vunpack.i.l.bf16 %v5134_v56 }
 0xaf8   : > { %4820 = vmatpush3.bf16.msra.mxu1 %v4817_v40 }
 0xaf9   : > { %4828 = vmatprep.subr.bf16.mxu1 %v6549_v50  ;;  %v5224_v44 = vpop.eup %5223  ;;  %v4841_v1 = vpack.c.bf16 %v5136_v60, %v5135_v61 }
 0xafa   : > { %v2119_v48 = vmul.f32 %v5224_v44, %v5216_v29  ;;  %v5226_v57 = vpop.eup %5225  ;;  %v2441_v59 = vpop.permute.xlu1 %2440 }
 0xafb   : > { %v2358_v5 = vmul.f32 %v5226_v57, %v5218_v16 }
 0xafc   : > { %4553 = vmatprep.mubr.msk.f32.mxu1 %vm1491_vm2, %v2119_v48 }
 0xafd   : > { %4554 = vmatmul.mubr.msk.f32.vlgmr.msra.gmra.mrb[18].mxu1 %vm1491_vm2, %v2121_v55 }
 0xafe   : > { %4830 = vmatpush3.bf16.msra.mxu1 %v6549_v50  ;;  %4567 = vmatprep.mubr.msk.f32.mxu1 %vm1491_vm2, %v2356_v58  ;;  %v2443_v50 = vpop.permute.xlu1 %2442 }
 0xaff   : > { %4833 = vmatprep.subr.msk.bf16.mxu1 %vm6405_vm1, %v4831_v4 }
 0xb01   : > { %4568 = vmatmul.mubr.msk.f32.vlgmr.msra.gmra.mrb[20].mxu1 %vm1491_vm2, %v2358_v5 }
 0xb02   : > { %4574 = vmatprep.mubr.msk.f32.mxu1 %vm1395_vm0, %v2441_v59  ;;  %v2649_v2 = vpop.permute.xlu1 %2648 }
 0xb07   : > { %4836 = vmatpush3.bf16.xpose.msk.msra.mxu1 %vm6405_vm1, %v4831_v4 }
 0xb08   : > { %4843 = vmatprep.subr.msk.bf16.mxu1 %vm6405_vm1, %v4841_v1 }
 0xb0e   : > { %4575 = vmatmul.mubr.msk.f32.vlgmr.msra.gmra.mrb[22].mxu1 %vm1395_vm0, %v2443_v50 }
 0xb0f   : > { %4846 = vmatpush3.bf16.xpose.msk.msra.mxu1 %vm6405_vm1, %v4841_v1  ;;  %4588 = vmatprep.mubr.msk.f32.mxu1 %vm1395_vm0, %v2647_v7 }
 0xb16   : > { %4589 = vmatmul.mubr.msk.f32.vlgmr.msra.gmra.mrb[24].mxu1 %vm1395_vm0, %v2649_v2 }
 0xbd0   : > { %v6610_v3 = vpop.f32.mrb[18].mxu1 }
 0xbd1   : > { %v6612_v8 = vpop.f32.mrb[19].mxu1 }
 0xbd2   : > { %v5167_v9 = vpack.i.bf16 %v6610_v3, %v6612_v8 }
 0xbd4   : > { %v6616_v37 = vpop.f32.mrb[20].mxu1 }
 0xbd5   : > { %v6618_v10 = vpop.f32.mrb[21].mxu1 }
 0xbe1   : > { %v4576_v6 = vpop.f32.mrb[22].mxu1 }
 0xbe2   : > { %v2522_v11 = vpop.f32.mrb[23].mxu1  ;;  %v2532_v26 = vmul.f32 0.17677669, %v4576_v6 }
 0xbe3   : > { %v2531_v42 = vmul.f32 0.17677669, %v2522_v11 }
 0xbe4   : > { %v2534_v27 = vadd.f32 %v6563_v49, %v2532_v26 }
 0xbe5   : > { %v2533_v43 = vadd.f32 %v6563_v49, %v2531_v42 }
 0xbe6   : > { %v2538_v28 = vsel %vm1491_vm2, %v2534_v27, -inf }
 0xbe7   : > { %v2535_v44 = vsel %vm1491_vm2, %v2533_v43, -inf }
 0xbe9   : > { %v4590_v12 = vpop.f32.mrb[24].mxu1 }
 0xbea   : > { %v2738_v14 = vmul.f32 0.17677669, %v4590_v12  ;;  %v2728_v15 = vpop.f32.mrb[25].mxu1 }
 0xbeb   : > { %v2737_v18 = vmul.f32 0.17677669, %v2728_v15 }
 0xbec   : > { %v2740_v21 = vadd.f32 %v6563_v49, %v2738_v14 }
 0xbed   : > { %v2739_v22 = vadd.f32 %v6563_v49, %v2737_v18 }
 0xbee   : > { %v2744_v23 = vsel %vm1491_vm2, %v2740_v21, -inf }
 0xbef   : > { %2745 = vmax.xlane.f32.xlu1 %v2744_v23  ;;  %v2741_v25 = vsel %vm1491_vm2, %v2739_v22, -inf }
 0xbf0   : > { %2742 = vmax.xlane.f32.xlu0 %v2741_v25 }
 0xc00   : > { %5143 = vrot.lane.b32.xlu1 %v6440_v34, %s5716_s23 }
 0xc04   : > { %2850 = vrot.lane.b32.xlu1 %v6455_v47, %s5716_s23 }
 0xc08   : > { %2852 = vrot.lane.b32.xlu1 %v6452_v46, %s5716_s23 }
 0xc2c   : > { %2539 = vmax.xlane.f32.xlu1 %v2538_v28 }
 0xc7c   : > { %v2746_v29 = vpop.xlane.xlu1 %2745 }
 0xc7d   : > { %v2748_v16 = vsub.f32 %v2740_v21, %v2746_v29  ;;  %v2743_v31 = vpop.xlane.xlu0 %2742 }
 0xc7e   : > { %v2747_v24 = vsub.f32 %v2739_v22, %v2743_v31 }
 0xc7f   : > { %v2751_v32 = vmul.f32 1.442695, %v2748_v16 }
 0xc80   : > { %v2749_v30 = vmul.f32 1.442695, %v2747_v24  ;;  %v5144_v35 = vpop.permute.xlu1 %5143 }
 0xc81   : > { %5227 = vpow2.f32 %v2751_v32  ;;  %v5146_v57 = vunpack.i.h.bf16 %v5144_v35  ;;  %v5145_v58 = vunpack.i.l.bf16 %v5144_v35 }
 0xc82   : > { %5229 = vpow2.f32 %v2749_v30 }
 0xc83   : > { %v4851_v60 = vpack.c.bf16 %v5146_v57, %v5145_v58  ;;  %v3087_v57 = vld [vmem:[%s6272_s12 + $0x18] sm:$0xff] }
 0xc84   : > { %v2851_v36 = vpop.permute.xlu1 %2850 }
 0xc88   : > { %v2853_v38 = vpop.permute.xlu1 %2852 }
 0xc8b   : > { %v5228_v34 = vpop.eup %5227 }
 0xc8c   : > { %v2756_v47 = vsel %vm1491_vm2, %v5228_v34, 0.0  ;;  %v5230_v33 = vpop.eup %5229 }
 0xc8d   : > { %2757 = vadd.xlane.f32.xlu0 %v2756_v47  ;;  %v2753_v46 = vsel %vm1491_vm2, %v5230_v33, 0.0 }
 0xc91   : > { %2754 = vadd.xlane.f32.xlu0 %v2753_v46 }
 0xca7   : > { %5138 = vrot.lane.b32.xlu0 %v6551_v51, %s5715_s13 }
 0xcb9   : > { %v2540_v39 = vpop.xlane.xlu1 %2539 }
 0xcba   : > { %v2542_v40 = vsub.f32 %v2534_v27, %v2540_v39 }
 0xcbc   : > { %v2545_v41 = vmul.f32 1.442695, %v2542_v40 }
 0xcbe   : > { %5231 = vpow2.f32 %v2545_v41  ;;  %v3084_v41 = vld [vmem:[%s6272_s12] sm:$0xff] }
 0xcc6   : > { %2536 = vmax.xlane.f32.xlu0 %v2535_v44 }
 0xcc8   : > { %v6638_v17 = vpop.eup %5231 }
 0xcc9   : > { %v2550_v45 = vsel %vm1491_vm2, %v6638_v17, 0.0 }
 0xcca   : > { %2551 = vadd.xlane.f32.xlu1 %v2550_v45  ;;  %v4861_v45 = vpack.c.bf16 %v3085_v52, %v3084_v41 }
 0xd1a   : > { %v2758_v48 = vpop.xlane.xlu0 %2757 }
 0xd1b   : > { %5233 = vrcp.f32 %v2758_v48 }
 0xd1e   : > { %v2755_v55 = vpop.xlane.xlu0 %2754 }
 0xd1f   : > { %5235 = vrcp.f32 %v2755_v55 }
 0xd22   : > { %v5139_v56 = vpop.permute.xlu0 %5138 }
 0xd23   : > { %v5141_v4 = vunpack.i.h.bf16 %v5139_v56  ;;  %v5140_v5 = vunpack.i.l.bf16 %v5139_v56  ;;  %v3086_v56 = vld [vmem:[%s6272_s12 + $0x10] sm:$0xff] }
 0xd25   : > { %v4847_v59 = vpack.c.bf16 %v5141_v4, %v5140_v5  ;;  %v5234_v61 = vpop.eup %5233 }
 0xd26   : > { %v2762_v7 = vmul.f32 %v5234_v61, %v5228_v34 }
 0xd27   : > { %4848 = vmatprep.subr.bf16.mxu1 %v4847_v59 }
 0xd28   : > { %4850 = vmatpush3.bf16.msra.mxu1 %v4847_v59 }
 0xd29   : > { %v5236_v1 = vpop.eup %5235  ;;  %4853 = vmatprep.subr.msk.bf16.mxu1 %vm6405_vm1, %v4851_v60 }
 0xd2a   : > { %v2760_v50 = vmul.f32 %v5236_v1, %v5230_v33  ;;  %v3088_v1 = vld [vmem:[%s6272_s12 + $0x20] sm:$0xff] }
 0xd2c   : > { %4595 = vmatprep.mubr.msk.f32.mxu1 %vm1491_vm2, %v2760_v50  ;;  %v3089_v50 = vld [vmem:[%s6272_s12 + $0x28] sm:$0xff] }
 0xd2d   : > { %4596 = vmatmul.mubr.msk.f32.vlgmr.msra.gmra.mrb[26].mxu1 %vm1491_vm2, %v2762_v7 }
 0xd2e   : > { %4602 = vmatprep.mubr.msk.f32.mxu1 %vm1395_vm0, %v2851_v36 }
 0xd31   : > { %4856 = vmatpush3.bf16.xpose.msk.msra.mxu1 %vm6405_vm1, %v4851_v60  ;;  %v4865_v60 = vpack.c.bf16 %v3087_v57, %v3086_v56 }
 0xd38   : > { %4603 = vmatmul.mubr.msk.f32.vlgmr.msra.gmra.mrb[28].mxu1 %vm1395_vm0, %v2853_v38 }
 0xd53   : > { %v2537_v6 = vpop.xlane.xlu0 %2536 }
 0xd54   : > { %v2541_v14 = vsub.f32 %v2533_v43, %v2537_v6 }
 0xd56   : > { %v2543_v15 = vmul.f32 1.442695, %v2541_v14  ;;  %v3090_v14 = vld [vmem:[%s6272_s12 + $0x30] sm:$0xff] }
 0xd58   : > { %5237 = vpow2.f32 %v2543_v15  ;;  %v3091_v15 = vld [vmem:[%s6272_s12 + $0x38] sm:$0xff] }
 0xd62   : > { %v5238_v28 = vpop.eup %5237 }
 0xd63   : > { %v2547_v29 = vsel %vm1491_vm2, %v5238_v28, 0.0 }
 0xe00   : > { %v4597_v2 = vpop.f32.mrb[26].mxu1 }
 0xe01   : > { %v2841_v11 = vpop.f32.mrb[27].mxu1 }
 0xe02   : > { %v5177_v12 = vpack.i.bf16 %v4597_v2, %v2841_v11 }
 0xe0b   : > { %v4604_v18 = vpop.f32.mrb[28].mxu1 }
 0xe0c   : > { %v2932_v21 = vpop.f32.mrb[29].mxu1  ;;  %v2942_v22 = vmul.f32 0.17677669, %v4604_v18  ;;  %v4873_v18 = vpack.c.bf16 %v3091_v15, %v3090_v14 }
 0xe0d   : > { %v2941_v23 = vmul.f32 0.17677669, %v2932_v21  ;;  %v3092_v21 = vld [vmem:[%s6272_s12 + $0x40] sm:$0xff] }
 0xe0e   : > { %v2944_v13 = vadd.f32 %v6563_v49, %v2942_v22 }
 0xe0f   : > { %v2943_v25 = vadd.f32 %v6563_v49, %v2941_v23  ;;  %v3094_v23 = vld [vmem:[%s6272_s12 + $0x50] sm:$0xff] }
 0xe10   : > { %v2948_v27 = vsel %vm1491_vm2, %v2944_v13, -inf }
 0xe11   : > { %v2945_v26 = vsel %vm1491_vm2, %v2943_v25, -inf }
 0xe12   : > { %2946 = vmax.xlane.f32.xlu0 %v2945_v26 }
 0xe16   : > { %2949 = vmax.xlane.f32.xlu0 %v2948_v27  ;;  %v3097_v27 = vld [vmem:[%s6272_s12 + $0x68] sm:$0xff] }
 0xe1a   : > { %2548 = vadd.xlane.f32.xlu0 %v2547_v29  ;;  %v3098_v29 = vld [vmem:[%s6272_s12 + $0x70] sm:$0xff] }
 0xe9f   : > { %v2947_v16 = vpop.xlane.xlu0 %2946 }
 0xea0   : > { %v2951_v31 = vsub.f32 %v2943_v25, %v2947_v16  ;;  %v3095_v25 = vld [vmem:[%s6272_s12 + $0x58] sm:$0xff] }
 0xea1   : > { %v4881_v26 = vpack.c.bf16 %v3095_v25, %v3094_v23  ;;  %v3099_v16 = vld [vmem:[%s6272_s12 + $0x78] sm:$0xff] }
 0xea2   : > { %v2953_v24 = vmul.f32 1.442695, %v2951_v31  ;;  %v4889_v31 = vpack.c.bf16 %v3099_v16, %v3098_v29  ;;  %v5286_v23 = vld [vmem:[#allocation2 + $0x18] sm:$0xff]  ;;  %v3267_v29 = vld [vmem:[%s6306_s16 + $0x20] sm:$0xff]  ;;  %v3269_v16 = vld [vmem:[%s6306_s16 + $0x30] sm:$0xff] }
 0xea3   : > { %v2950_v32 = vpop.xlane.xlu0 %2949 }
 0xea4   : > { %5239 = vpow2.f32 %v2953_v24  ;;  %v2952_v30 = vsub.f32 %v2944_v13, %v2950_v32  ;;  %v3096_v13 = vld [vmem:[%s6272_s12 + $0x60] sm:$0xff] }
 0xea6   : > { %v2955_v34 = vmul.f32 1.442695, %v2952_v30 }
 0xea7   : > { %v2549_v47 = vpop.xlane.xlu0 %2548 }
 0xea8   : > { %5241 = vpow2.f32 %v2955_v34 }
 0xea9   : > { %5243 = vrcp.f32 %v2549_v47 }
 0xeae   : > { %v5240_v33 = vpop.eup %5239 }
 0xeaf   : > { %v2957_v49 = vsel %vm1491_vm2, %v5240_v33, 0.0 }
 0xeb0   : > { %2958 = vadd.xlane.f32.xlu0 %v2957_v49 }
 0xeb2   : > { %v5242_v46 = vpop.eup %5241 }
 0xeb3   : > { %v5244_v35 = vpop.eup %5243  ;;  %v2960_v36 = vsel %vm1491_vm2, %v5242_v46, 0.0 }
 0xeb4   : > { %2961 = vadd.xlane.f32.xlu1 %v2960_v36  ;;  %v2554_v38 = vmul.f32 %v5244_v35, %v5238_v28  ;;  %v4885_v28 = vpack.c.bf16 %v3097_v27, %v3096_v13  ;;  %v3268_v13 = vld [vmem:[%s6306_s16 + $0x28] sm:$0xff]  ;;  %v3270_v27 = vld [vmem:[%s6306_s16 + $0x38] sm:$0xff] }
 0xeb6   : > { %4581 = vmatprep.mubr.msk.f32.mxu0 %vm1491_vm2, %v2554_v38 }
 0xec5   : > { %5153 = vrot.lane.b32.xlu1 %v6551_v51, %s5716_s23 }
 0xec6   : > { %5148 = vrot.lane.b32.xlu0 %v6551_v51, %s5714_s15  ;;  %v2552_v51 = vpop.xlane.xlu1 %2551 }
 0xec7   : > { %5245 = vrcp.f32 %v2552_v51 }
 0xec9   : > { %5158 = vrot.lane.b32.xlu1 %v5157_v0, %s5716_s23 }
 0xeca   : > { %5168 = vrot.lane.b32.xlu0 %v5167_v9, %s5714_s15 }
 0xecd   : > { %5163 = vrot.lane.b32.xlu1 %v5162_v54, %s5715_s13 }
 0xece   : > { %5178 = vrot.lane.b32.xlu0 %v5177_v12, %s5715_s13  ;;  %v4869_v12 = vpack.c.bf16 %v3089_v50, %v3088_v1  ;;  %v3263_v1 = vld [vmem:[%s6306_s16] sm:$0xff] }
 0xed1   : > { %v5246_v8 = vpop.eup %5245 }
 0xed2   : > { %v2556_v43 = vmul.f32 %v5246_v8, %v6638_v17  ;;  %v5284_v8 = vld [vmem:[#allocation2 + $0x8] sm:$0xff] }
 0xf3d   : > { %v2959_v39 = vpop.xlane.xlu0 %2958 }
 0xf3e   : > { %5247 = vrcp.f32 %v2959_v39 }
 0xf41   : > { %v2962_v62 = vpop.xlane.xlu1 %2961  ;;  %v5149_v63 = vpop.permute.xlu0 %5148 }
 0xf42   : > { %5249 = vrcp.f32 %v2962_v62  ;;  %v5151_v0 = vunpack.i.h.bf16 %v5149_v63  ;;  %v5150_v40 = vunpack.i.l.bf16 %v5149_v63 }
 0xf44   : > { %v4837_v3 = vpack.c.bf16 %v5151_v0, %v5150_v40  ;;  %v5283_v40 = vld [vmem:[#allocation2] sm:$0xff] }
 0xf45   : > { %v5154_v9 = vpop.permute.xlu1 %5153  ;;  %v5169_v5 = vpop.permute.xlu0 %5168 }
 0xf46   : > { %v5156_v53 = vunpack.i.h.bf16 %v5154_v9  ;;  %v5155_v54 = vunpack.i.l.bf16 %v5154_v9  ;;  %4838 = vmatprep.subr.bf16.mxu0 %v4837_v3  ;;  %v5170_v7 = vunpack.i.l.bf16 %v5169_v5  ;;  %v5171_v47 = vunpack.i.h.bf16 %v5169_v5 }
 0xf47   : > { %4840 = vmatpush3.bf16.msra.mxu0 %v4837_v3 }
 0xf48   : > { %v5248_v42 = vpop.eup %5247  ;;  %v4857_v44 = vpack.c.bf16 %v5156_v53, %v5155_v54 }
 0xf49   : > { %v5159_v48 = vpop.permute.xlu1 %5158  ;;  %v2964_v55 = vmul.f32 %v5248_v42, %v5240_v33  ;;  %v5179_v54 = vpop.permute.xlu0 %5178 }
 0xf4a   : > { %4582 = vmatmul.mubr.msk.f32.vlgmr.msra.gmra.mrb[10].mxu0 %vm1491_vm2, %v2556_v43  ;;  %4858 = vmatprep.subr.bf16.mxu0 %v4857_v44  ;;  %v5160_v58 = vunpack.i.l.bf16 %v5159_v48  ;;  %v5161_v24 = vunpack.i.h.bf16 %v5159_v48 }
 0xf4b   : > { %4860 = vmatpush3.bf16.msra.mxu0 %v4857_v44  ;;  %4609 = vmatprep.mubr.msk.f32.mxu0 %vm1491_vm2, %v2964_v55  ;;  %v5181_v44 = vunpack.i.h.bf16 %v5179_v54 }
 0xf4c   : > { %v5250_v4 = vpop.eup %5249  ;;  %4862 = vmatprep.subr.bf16.mxu0 %v4861_v45  ;;  %v2233_v2 = vsel %vm1395_vm0, %v6491_v20, %v5160_v58  ;;  %v3093_v20 = vld [vmem:[%s6272_s12 + $0x48] sm:$0xff]  ;;  %v2234_v30 = vsel %vm1395_vm0, %v6489_v19, %v5161_v24  ;;  %s7033_s12 = scalar_lea.vmem [#allocation14], %s6247_s25 }
 0xf4d   : > { %v2966_v59 = vmul.f32 %v5250_v4, %v5242_v46  ;;  %v5164_v17 = vpop.permute.xlu1 %5163  ;;  %v4877_v22 = vpack.c.bf16 %v3093_v20, %v3092_v21  ;;  %v4163_v39 = vld [vmem:[%s7033_s12] ss:$0 sm:$0xff]  ;;  %v5285_v21 = vld [vmem:[#allocation2 + $0x10] sm:$0xff]  ;;  %v3272_v24 = vld [vmem:[%s6306_s16 + $0x48] sm:$0xff] }
 0xf4e   : > { %v5165_v61 = vunpack.i.l.bf16 %v5164_v17  ;;  %v5166_v32 = vunpack.i.h.bf16 %v5164_v17 }
 0xf4f   : > { %4610 = vmatmul.mubr.msk.f32.vlgmr.msra.gmra.mrb[12].mxu0 %vm1491_vm2, %v2966_v59 }
 0xf50   : > { %4864 = vmatpush3.bf16.msra.mxu0 %v4861_v45  ;;  %v2236_v6 = vsel %vm2235_vm3, %v2233_v2, %v5165_v61  ;;  %v2237_v34 = vsel %vm2235_vm3, %v2234_v30, %v5166_v32  ;;  %v5180_v45 = vunpack.i.l.bf16 %v5179_v54  ;;  %v3266_v61 = vld [vmem:[%s6306_s16 + $0x18] sm:$0xff]  ;;  %v3288_v54 = vld [vmem:[%s6306_s16 + $0xc8] sm:$0xff] }
 0xf51   : > { %4866 = vmatprep.subr.bf16.mxu0 %v4865_v60  ;;  %v2239_v11 = vsel %vm2238_vm4, %v2236_v6, %v5170_v7  ;;  %v2240_v33 = vsel %vm2238_vm4, %v2237_v34, %v5171_v47  ;;  %v3265_v7 = vld [vmem:[%s6306_s16 + $0x10] sm:$0xff]  ;;  %v3274_v32 = vld [vmem:[%s6306_s16 + $0x58] sm:$0xff]  ;;  %v3271_v34 = vld [vmem:[%s6306_s16 + $0x40] sm:$0xff] }
 0xf52   : > { %4644 = vmatprep.mubr.f32.mxu0 %v2239_v11  ;;  %v4895_v2 = vpack.c.bf16 %v3265_v7, %v3263_v1  ;;  %v4901_v30 = vpack.c.bf16 %v3274_v32, %v3272_v24  ;;  %v3273_v47 = vld [vmem:[%s6306_s16 + $0x50] sm:$0xff]  ;;  %v3468_v24 = vld [vmem:[%s6316_s24] sm:$0xff]  ;;  %v3469_v32 = vld [vmem:[%s6316_s24 + $0x8] sm:$0xff] }
 0xf54   : > { %4868 = vmatpush3.bf16.msra.mxu0 %v4865_v60  ;;  %v3264_v60 = vld [vmem:[%s6306_s16 + $0x8] sm:$0xff] }
 0xf55   : > { %4870 = vmatprep.subr.bf16.mxu0 %v4869_v12  ;;  %v4893_v50 = vpack.c.bf16 %v3266_v61, %v3264_v60 }
 0xf57   : > { %4894 = vmatprep.subr.bf16.mxu1 %v4893_v50 }
 0xf58   : > { %4872 = vmatpush3.bf16.msra.mxu0 %v4869_v12  ;;  %4896 = vmatpush1.bf16.msra.mxu1 %v4895_v2 }
 0xf59   : > { %4874 = vmatprep.subr.bf16.mxu0 %v4873_v18 }
 0xf5c   : > { %4876 = vmatpush3.bf16.msra.mxu0 %v4873_v18 }
 0xf5d   : > { %4878 = vmatprep.subr.bf16.mxu0 %v4877_v22 }
 0xf60   : > { %4880 = vmatpush3.bf16.msra.mxu0 %v4877_v22 }
 0xf61   : > { %4882 = vmatprep.subr.bf16.mxu0 %v4881_v26 }
 0xf64   : > { %4884 = vmatpush3.bf16.msra.mxu0 %v4881_v26 }
 0xf65   : > { %4886 = vmatprep.subr.bf16.mxu0 %v4885_v28 }
 0xf68   : > { %4888 = vmatpush3.bf16.msra.mxu0 %v4885_v28  ;;  %v4897_v28 = vpack.c.bf16 %v3270_v27, %v3268_v13  ;;  %v6784_v27 = vld [vmem:[%s7036_s9] ss:$0 sm:$0xff] }
 0xf69   : > { %4890 = vmatprep.subr.bf16.mxu0 %v4889_v31 }
 0xf6a   : > { %4898 = vmatprep.subr.bf16.mxu1 %v4897_v28 }
 0xf6c   : > { %4892 = vmatpush3.bf16.msra.mxu0 %v4889_v31  ;;  %v4899_v31 = vpack.c.bf16 %v3269_v16, %v3267_v29  ;;  %v3484_v29 = vld [vmem:[%s6316_s24 + $0x80] sm:$0xff]  ;;  %v3485_v16 = vld [vmem:[%s6316_s24 + $0x88] sm:$0xff] }
 0xf6e   : > { %4900 = vmatpush1.bf16.msra.mxu1 %v4899_v31  ;;  %v4925_v31 = vpack.c.bf16 %v3485_v16, %v3484_v29 }
 0xf6f   : > { %4645 = vmatmul.mubr.f32.vlgmr.msra.gmra.mrb[14].mxu0 %v2240_v33  ;;  %v4903_v33 = vpack.c.bf16 %v3273_v47, %v3271_v34  ;;  %4902 = vmatprep.subr.bf16.mxu1 %v4901_v30  ;;  %v4927_v30 = vpack.c.bf16 %v3469_v32, %v3468_v24  ;;  %v3486_v34 = vld [vmem:[%s6316_s24 + $0x90] sm:$0xff]  ;;  %v3487_v47 = vld [vmem:[%s6316_s24 + $0x98] sm:$0xff] }
 0xf70   : > { %4926 = vmatprep.subr.bf16.mxu0 %v4925_v31 }
 0xf71   : > { %4928 = vmatpush3.bf16.msra.mxu0 %v4927_v30 }
 0xf72   : > { %4904 = vmatpush1.bf16.msra.mxu1 %v4903_v33  ;;  %v4929_v33 = vpack.c.bf16 %v3487_v47, %v3486_v34  ;;  %v3295_v47 = vld [vmem:[%s6311_s14] sm:$0x3] }
 0xf74   : > { %4930 = vmatprep.subr.bf16.mxu0 %v4929_v33 }
0x101d   : > { %v4583_v49 = vpop.f32.mrb[10].mxu0 }
0x101e   : > { %v2637_v46 = vpop.f32.mrb[11].mxu0 }
0x101f   : > { %v5172_v35 = vpack.i.bf16 %v4583_v49, %v2637_v46  ;;  %v3276_v49 = vld [vmem:[%s6306_s16 + $0x68] sm:$0xff]  ;;  %v3278_v46 = vld [vmem:[%s6306_s16 + $0x78] sm:$0xff] }
0x1021   : > { %5173 = vrot.lane.b32.xlu1 %v5172_v35, %s5716_s23  ;;  %v4905_v35 = vpack.c.bf16 %v3278_v46, %v3276_v49  ;;  %v3470_v49 = vld [vmem:[%s6316_s24 + $0x10] sm:$0xff]  ;;  %v3471_v46 = vld [vmem:[%s6316_s24 + $0x18] sm:$0xff] }
0x1022   : > { %v4611_v36 = vpop.f32.mrb[12].mxu0 }
0x1023   : > { %v3045_v38 = vpop.f32.mrb[13].mxu0  ;;  %4906 = vmatprep.subr.bf16.mxu1 %v4905_v35  ;;  %v4931_v35 = vpack.c.bf16 %v3471_v46, %v3470_v49 }
0x1024   : > { %v5182_v51 = vpack.i.bf16 %v4611_v36, %v3045_v38  ;;  %v3275_v36 = vld [vmem:[%s6306_s16 + $0x60] sm:$0xff]  ;;  %v3277_v38 = vld [vmem:[%s6306_s16 + $0x70] sm:$0xff] }
0x1025   : > { %4932 = vmatpush3.bf16.msra.mxu0 %v4931_v35 }
0x1026   : > { %5183 = vrot.lane.b32.xlu1 %v5182_v51, %s5714_s15  ;;  %v4907_v51 = vpack.c.bf16 %v3277_v38, %v3275_v36  ;;  %v3488_v36 = vld [vmem:[%s6316_s24 + $0xa0] sm:$0xff]  ;;  %v3489_v38 = vld [vmem:[%s6316_s24 + $0xa8] sm:$0xff] }
0x1028   : > { %4908 = vmatpush1.bf16.msra.mxu1 %v4907_v51  ;;  %v4933_v51 = vpack.c.bf16 %v3489_v38, %v3488_v36 }
0x102a   : > { %4934 = vmatprep.subr.bf16.mxu0 %v4933_v51 }
0x1042   : > { %v4646_v19 = vpop.f32.mrb[14].mxu0 }
0x1043   : > { %v3173_v62 = vpop.f32.mrb[15].mxu0  ;;  %v3179_v63 = vadd.f32 %v4646_v19, %v4163_v39  ;;  %v3282_v19 = vld [vmem:[%s6306_s16 + $0x98] sm:$0xff] }
0x1044   : > { %v3174_v0 = vadd.f32 %v4163_v39, %v3173_v62 }
0x1045   : > { %v3193_v9 = vadd.f32 %v5284_v8, %v3179_v63  ;;  %v3279_v63 = vld [vmem:[%s6306_s16 + $0x80] sm:$0xff]  ;;  %v3286_v8 = vld [vmem:[%s6306_s16 + $0xb8] sm:$0xff] }
0x1046   : > { %v3192_v3 = vadd.f32 %v5283_v40, %v3174_v0  ;;  %v3281_v0 = vld [vmem:[%s6306_s16 + $0x90] sm:$0xff]  ;;  %v3284_v40 = vld [vmem:[%s6306_s16 + $0xa8] sm:$0xff] }
0x1048   : > { %3198 = vadd.xlane.f32.xlu0 %v3192_v3 }
0x104a   : > { %3200 = vadd.xlane.f32.xlu1 %v3193_v9 }
0x1093   : > { %v5174_v41 = vpop.permute.xlu1 %5173 }
0x1094   : > { %v5176_v52 = vunpack.i.h.bf16 %v5174_v41  ;;  %v5175_v53 = vunpack.i.l.bf16 %v5174_v41  ;;  %v3285_v41 = vld [vmem:[%s6306_s16 + $0xb0] sm:$0xff] }
0x1096   : > { %v3078_v42 = vsel %vm1395_vm0, %v6618_v10, %v5175_v53  ;;  %v3079_v43 = vsel %vm1395_vm0, %v6616_v37, %v5176_v52  ;;  %v5717_v52 = vmov 0.0   ;;  %v4913_v53 = vpack.c.bf16 %v3286_v8, %v3284_v40  ;;  %v3475_v8 = vld [vmem:[%s6316_s24 + $0x38] sm:$0xff] }
0x1097   : > { %v3080_v57 = vsel %vm2235_vm3, %v3078_v42, %v5180_v45  ;;  %v3081_v58 = vsel %vm2235_vm3, %v3079_v43, %v5181_v44  ;;  %3371 = vmatprep.mubr.f32.mxu1 %v5717_v52  ;;  %v3290_v42 = vld [vmem:[%s6306_s16 + $0xd8] sm:$0xff]  ;;  %v3287_v45 = vld [vmem:[%s6306_s16 + $0xc0] sm:$0xff] }
0x1098   : > { %v5184_v48 = vpop.permute.xlu1 %5183  ;;  %v4917_v44 = vpack.c.bf16 %v3290_v42, %v3288_v54  ;;  %v3476_v42 = vld [vmem:[%s6316_s24 + $0x40] sm:$0xff] }
0x1099   : > { %v5186_v55 = vunpack.i.h.bf16 %v5184_v48  ;;  %v5185_v56 = vunpack.i.l.bf16 %v5184_v48  ;;  %v3289_v48 = vld [vmem:[%s6306_s16 + $0xd0] sm:$0xff] }
0x109b   : > { %v3082_v4 = vsel %vm2238_vm4, %v3080_v57, %v5185_v56  ;;  %v3083_v10 = vsel %vm2238_vm4, %v3081_v58, %v5186_v55  ;;  %v3292_v55 = vld [vmem:[%s6306_s16 + $0xe8] sm:$0xff]  ;;  %v3294_v56 = vld [vmem:[%s6306_s16 + $0xf8] sm:$0xff]  ;;  %v4919_v57 = vpack.c.bf16 %v3289_v48, %v3287_v45  ;;  %v3494_v45 = vld [vmem:[%s6316_s24 + $0xd0] sm:$0xff] }
0x109c   : > { %4647 = vmatprep.mubr.f32.mxu0 %v3082_v4  ;;  %v4921_v58 = vpack.c.bf16 %v3294_v56, %v3292_v55  ;;  %v3291_v4 = vld [vmem:[%s6306_s16 + $0xe0] sm:$0xff]  ;;  %v3495_v48 = vld [vmem:[%s6316_s24 + $0xd8] sm:$0xff]  ;;  %v3478_v56 = vld [vmem:[%s6316_s24 + $0x50] sm:$0xff] }
0x109d   : > { %4648 = vmatmul.mubr.f32.gmra.mrb[16].mxu0 %v3083_v10  ;;  %v3293_v10 = vld [vmem:[%s6306_s16 + $0xf0] sm:$0xff]  ;;  %v4945_v55 = vpack.c.bf16 %v3495_v48, %v3494_v45 }
0x10d5   : > { %v3199_v11 = vpop.xlane.xlu0 %3198 }
0x10d6   : > { %v3207_v15 = vmul.f32 0.0078125, %v3199_v11 }
0x10d7   : > { %v3201_v37 = vpop.xlane.xlu1 %3200 }
0x10d8   : > { %v3208_v5 = vmul.f32 0.0078125, %v3201_v37  ;;  %v6726_v22 = vsub.f32 %v3192_v3, %v3207_v15  ;;  %v4911_v3 = vpack.c.bf16 %v3281_v0, %v3279_v63  ;;  %v4923_v37 = vpack.c.bf16 %v3293_v10, %v3291_v4  ;;  %v3490_v63 = vld [vmem:[%s6316_s24 + $0xb0] sm:$0xff]  ;;  %v3491_v0 = vld [vmem:[%s6316_s24 + $0xb8] sm:$0xff]  ;;  %v3496_v4 = vld [vmem:[%s6316_s24 + $0xe0] sm:$0xff] }
0x10d9   : > { %v4937_v40 = vpack.c.bf16 %v3491_v0, %v3490_v63  ;;  %v3497_v10 = vld [vmem:[%s6316_s24 + $0xe8] sm:$0xff] }
0x10da   : > { %v6715_v59 = vsub.f32 %v3193_v9, %v3208_v5  ;;  %v3215_v26 = vmul.f32 %v6726_v22, %v6726_v22  ;;  %v3283_v9 = vld [vmem:[%s6306_s16 + $0xa0] sm:$0xff] }
0x10db   : > { %v4915_v43 = vpack.c.bf16 %v3285_v41, %v3283_v9  ;;  %v3492_v41 = vld [vmem:[%s6316_s24 + $0xc0] sm:$0xff] }
0x10dc   : > { %v3216_v17 = vmul.f32 %v6715_v59, %v6715_v59 }
0x10de   : > { %3221 = vadd.xlane.f32.xlu1 %v3216_v17 }
0x116b   : > { %v3222_v5 = vpop.xlane.xlu1 %3221 }
0x116c   : > { %v3228_v61 = vmul.f32 0.0078125, %v3222_v5  ;;  %v3480_v5 = vld [vmem:[%s6316_s24 + $0x60] sm:$0xff] }
0x1170   : > { %v4649_v6 = vpop.f32.mrb[16].mxu0 }
0x1171   : > { %v3183_v12 = vpop.f32.mrb[17].mxu0  ;;  %v3189_v18 = vadd.f32 %v4649_v6, %v4163_v39  ;;  %v3232_v6 = vadd.f32 1e-12, %v3228_v61  ;;  %v3498_v61 = vld [vmem:[%s6316_s24 + $0xf0] sm:$0xff] }
0x1172   : > { %v3184_v14 = vadd.f32 %v4163_v39, %v3183_v12  ;;  %v3280_v39 = vld [vmem:[%s6306_s16 + $0x88] sm:$0xff]  ;;  %s7034_s16 = scalar_lea.vmem [#allocation15], %s6247_s25  ;;  %s7040_s25 = sld [smem:[#allocation30_spill]] }
0x1173   : > { %v6728_v25 = vadd.f32 %v5286_v23, %v3189_v18  ;;  %v4909_v62 = vpack.c.bf16 %v3282_v19, %v3280_v39  ;;  %5251 = vrsqrt.f32 %v3232_v6  ;;  %v3472_v39 = vld [vmem:[%s6316_s24 + $0x20] sm:$0xff]  ;;  %v3473_v19 = vld [vmem:[%s6316_s24 + $0x28] sm:$0xff]  ;;  %v3483_v6 = vld [vmem:[%s6316_s24 + $0x78] sm:$0xff] }
0x1174   : > { %v6723_v20 = vadd.f32 %v5285_v21, %v3184_v14 }
0x1175   : > { %4910 = vmatprep.subr.bf16.mxu1 %v4909_v62  ;;  %v4935_v62 = vpack.c.bf16 %v3473_v19, %v3472_v39 }
0x1176   : > { %3202 = vadd.xlane.f32.xlu0 %v6723_v20  ;;  %4912 = vmatpush1.bf16.msra.mxu1 %v4911_v3  ;;  %v3474_v3 = vld [vmem:[%s6316_s24 + $0x30] sm:$0xff] }
0x1177   : > { %4914 = vmatprep.subr.bf16.mxu1 %v4913_v53  ;;  %4936 = vmatpush3.bf16.msra.mxu0 %v4935_v62  ;;  %v4939_v9 = vpack.c.bf16 %v3475_v8, %v3474_v3  ;;  %v3493_v53 = vld [vmem:[%s6316_s24 + $0xc8] sm:$0xff] }
0x1178   : > { %4938 = vmatprep.subr.bf16.mxu0 %v4937_v40  ;;  %v4941_v54 = vpack.c.bf16 %v3493_v53, %v3492_v41  ;;  %p4169_p3 = scmp.ne.s32.totalorder %s7040_s25, 1 }
0x1179   : > { %vm5719_vm5 = vmmov (!%p4169_p3), 0   ;;  %vm3673_vm6 = vcmask (!%p4169_p3), 1040384  }
0x117a   : > { %3204 = vadd.xlane.f32.xlu0 %v6728_v25  ;;  %4916 = vmatpush1.bf16.msra.mxu1 %v4915_v43  ;;  %v3477_v43 = vld [vmem:[%s6316_s24 + $0x48] sm:$0xff] }
0x117b   : > { %4918 = vmatprep.subr.bf16.mxu1 %v4917_v44  ;;  %4940 = vmatpush3.bf16.msra.mxu0 %v4939_v9  ;;  %v4943_v44 = vpack.c.bf16 %v3477_v43, %v3476_v42 }
0x117c   : > { %4942 = vmatprep.subr.bf16.mxu0 %v4941_v54 }
0x117d   : > { %v5252_v21 = vpop.eup %5251 }
0x117e   : > { %3219 = vadd.xlane.f32.xlu0 %v3215_v26  ;;  %4920 = vmatpush1.bf16.msra.mxu1 %v4919_v57  ;;  %v6776_v26 = vld [vmem:[%s7034_s16] ss:$0 sm:$0xff]  ;;  %v3479_v57 = vld [vmem:[%s6316_s24 + $0x58] sm:$0xff] }
0x117f   : > { %4922 = vmatprep.subr.bf16.mxu1 %v4921_v58  ;;  %4944 = vmatpush3.bf16.msra.mxu0 %v4943_v44  ;;  %v4947_v58 = vpack.c.bf16 %v3479_v57, %v3478_v56 }
0x1180   : > { %4946 = vmatprep.subr.bf16.mxu0 %v4945_v55 }
0x1182   : > { %4924 = vmatpush1.bf16.msra.mxu1 %v4923_v37  ;;  %v4949_v37 = vpack.c.bf16 %v3497_v10, %v3496_v4 }
0x1183   : > { %4948 = vmatpush3.bf16.msra.mxu0 %v4947_v58 }
0x1184   : > { %4950 = vmatprep.subr.bf16.mxu0 %v4949_v37 }
0x1203   : > { %v3203_v17 = vpop.xlane.xlu0 %3202 }
0x1204   : > { %v3209_v60 = vmul.f32 0.0078125, %v3203_v17  ;;  %v3481_v17 = vld [vmem:[%s6316_s24 + $0x68] sm:$0xff] }
0x1206   : > { %v6763_v1 = vsub.f32 %v6723_v20, %v3209_v60  ;;  %v4951_v60 = vpack.c.bf16 %v3481_v17, %v3480_v5 }
0x1207   : > { %v3205_v50 = vpop.xlane.xlu0 %3204 }
0x1208   : > { %v3210_v7 = vmul.f32 0.0078125, %v3205_v50  ;;  %v3217_v2 = vmul.f32 %v6763_v1, %v6763_v1  ;;  %4952 = vmatpush3.bf16.msra.mxu0 %v4951_v60  ;;  %v3499_v50 = vld [vmem:[%s6316_s24 + $0xf8] sm:$0xff] }
0x120a   : > { %v6768_v11 = vsub.f32 %v6728_v25, %v3210_v7  ;;  %3223 = vadd.xlane.f32.xlu0 %v3217_v2  ;;  %v3240_v25 = vmul.f32 %v5252_v21, %v6715_v59  ;;  %v4953_v7 = vpack.c.bf16 %v3499_v50, %v3498_v61  ;;  %v3482_v2 = vld [vmem:[%s6316_s24 + $0x70] sm:$0xff] }
0x120b   : > { %v3220_v12 = vpop.xlane.xlu0 %3219 }
0x120c   : > { %v3227_v14 = vmul.f32 0.0078125, %v3220_v12  ;;  %v3218_v15 = vmul.f32 %v6768_v11, %v6768_v11  ;;  %v4955_v12 = vpack.c.bf16 %v3483_v6, %v3482_v2  ;;  %4954 = vmatprep.subr.bf16.mxu0 %v4953_v7 }
0x120e   : > { %v3231_v18 = vadd.f32 1e-12, %v3227_v14  ;;  %3225 = vadd.xlane.f32.xlu1 %v3218_v15  ;;  %4956 = vmatpush3.bf16.msra.mxu0 %v4955_v12 }
0x1210   : > { %5253 = vrsqrt.f32 %v3231_v18 }
0x121a   : > { %v5254_v20 = vpop.eup %5253 }
0x121b   : > { %v3239_v23 = vmul.f32 %v5254_v20, %v6726_v22  ;;  %v3250_v22 = vmul.f32 %v6776_v26, %v3240_v25 }
0x121d   : > { %v3249_v13 = vmul.f32 %v6776_v26, %v3239_v23  ;;  %v6793_v59 = vadd.f32 %v6784_v27, %v3250_v22 }
0x121f   : > { %v6787_v28 = vadd.f32 %v6784_v27, %v3249_v13 }
0x1221   : > { %3372 = vmatmul.mubr.f32.vlgmr.msra.gmra.mrb[30].mxu1 %v6787_v28 }
0x1222   : > { %3377 = vmatprep.mubr.f32.mxu1 %v5717_v52 }
0x1225   : > { %3378 = vmatmul.mubr.f32.gmra.mrb[32].mxu1 %v6793_v59 }
0x1226   : > { %3383 = vmatprep.mubr.f32.mxu1 %v5717_v52 }
0x1297   : > { %v3224_v14 = vpop.xlane.xlu0 %3223 }
0x1298   : > { %v3229_v15 = vmul.f32 0.0078125, %v3224_v14 }
0x129a   : > { %v3233_v18 = vadd.f32 1e-12, %v3229_v15 }
0x129b   : > { %v3226_v21 = vpop.xlane.xlu1 %3225 }
0x129c   : > { %5255 = vrsqrt.f32 %v3233_v18  ;;  %v3230_v20 = vmul.f32 0.0078125, %v3226_v21 }
0x129e   : > { %v3234_v23 = vadd.f32 1e-12, %v3230_v20 }
0x12a0   : > { %5257 = vrsqrt.f32 %v3234_v23 }
0x12a6   : > { %v5256_v25 = vpop.eup %5255 }
0x12a7   : > { %v3241_v13 = vmul.f32 %v5256_v25, %v6763_v1  ;;  %v3297_v1 = vlaneseq }
0x12a9   : > { %v3251_v22 = vmul.f32 %v6776_v26, %v3241_v13  ;;  %v3298_v30 = vshrl.u32 %v3297_v1, 7 }
0x12aa   : > { %v5258_v29 = vpop.eup %5257 }
0x12ab   : > { %v6832_v16 = vadd.f32 %v6784_v27, %v3251_v22  ;;  %v3242_v31 = vmul.f32 %v5258_v29, %v6768_v11  ;;  %v3299_v34 = vsub.s32 0, %v3298_v30  ;;  %v3303_v33 = vsub.s32 1, %v3298_v30 }
0x12ad   : > { %3384 = vmatmul.mubr.f32.gmra.mrb[34].mxu1 %v6832_v16  ;;  %v3252_v24 = vmul.f32 %v6776_v26, %v3242_v31  ;;  %v3300_v49 = vrot.slane %v3295_v47, %v3299_v34  ;;  %v6843_v46 = vrot.slane %v3295_v47, %v3303_v33 }
0x12ae   : > { %3389 = vmatprep.mubr.f32.mxu1 %v5717_v52 }
0x12af   : > { %v6839_v32 = vadd.f32 %v6784_v27, %v3252_v24 }
0x12b1   : > { %3390 = vmatmul.mubr.f32.gmra.mrb[36].mxu1 %v6839_v32 }
0x12f4   : > { %v3373_v11 = vpop.f32.mrb[30].mxu1 }
0x12f5   : > { %v3374_v35 = vadd.f32 %v3373_v11, %v3300_v49  ;;  %v3375_v36 = vpop.f32.mrb[31].mxu1 }
0x12f6   : > { %v3376_v26 = vadd.f32 %v3375_v36, %v6843_v46 }
0x12f7   : > { %v3396_v38 = vmul.f32 %v3374_v35, %v3374_v35 }
0x12f8   : > { %v3397_v52 = vmul.f32 %v3376_v26, %v3376_v26  ;;  %v3379_v51 = vpop.f32.mrb[32].mxu1 }
0x12f9   : > { %v3404_v27 = vmul.f32 %v3396_v38, %v3374_v35  ;;  %v3380_v39 = vadd.f32 %v3379_v51, %v3300_v49  ;;  %v3381_v19 = vpop.f32.mrb[33].mxu1 }
0x12fa   : > { %v3405_v62 = vmul.f32 %v3397_v52, %v3376_v26  ;;  %v3382_v63 = vadd.f32 %v3381_v19, %v6843_v46 }
0x12fb   : > { %v3412_v0 = vmul.f32 0.044715, %v3404_v27  ;;  %v3398_v40 = vmul.f32 %v3380_v39, %v3380_v39 }
0x12fc   : > { %v3413_v3 = vmul.f32 0.044715, %v3405_v62  ;;  %v3399_v8 = vmul.f32 %v3382_v63, %v3382_v63 }
0x12fd   : > { %v3420_v9 = vadd.f32 %v3412_v0, %v3374_v35  ;;  %v3406_v41 = vmul.f32 %v3398_v40, %v3380_v39 }
0x12fe   : > { %v3421_v53 = vadd.f32 %v3413_v3, %v3376_v26  ;;  %v3407_v54 = vmul.f32 %v3399_v8, %v3382_v63 }
0x12ff   : > { %v3428_v42 = vmul.f32 0.7978846, %v3420_v9  ;;  %v3414_v43 = vmul.f32 0.044715, %v3406_v41 }
0x1300   : > { %v3429_v44 = vmul.f32 0.7978846, %v3421_v53  ;;  %v3415_v45 = vmul.f32 0.044715, %v3407_v54 }
0x1301   : > { %5259 = vtanh.f32 %v3428_v42  ;;  %v3422_v48 = vadd.f32 %v3414_v43, %v3380_v39 }
0x1302   : > { %v3423_v55 = vadd.f32 %v3415_v45, %v3382_v63  ;;  %5261 = vtanh.f32 %v3429_v44 }
0x1303   : > { %v3430_v56 = vmul.f32 0.7978846, %v3422_v48 }
0x1304   : > { %v3431_v57 = vmul.f32 0.7978846, %v3423_v55 }
0x1305   : > { %5263 = vtanh.f32 %v3430_v56 }
0x1306   : > { %5265 = vtanh.f32 %v3431_v57 }
0x130b   : > { %v5260_v58 = vpop.eup %5259 }
0x130c   : > { %v5262_v4 = vpop.eup %5261  ;;  %v3444_v10 = vadd.f32 1.0, %v5260_v58 }
0x130d   : > { %v3445_v37 = vadd.f32 1.0, %v5262_v4  ;;  %v4166_v4 = vld [vmem:[%s1050_s27] ss:$0 sm:$0xff] }
0x130e   : > { %v3452_v5 = vmul.f32 0.5, %v3444_v10 }
0x130f   : > { %v5264_v17 = vpop.eup %5263  ;;  %v3453_v60 = vmul.f32 0.5, %v3445_v37 }
0x1310   : > { %v5266_v61 = vpop.eup %5265  ;;  %v3446_v50 = vadd.f32 1.0, %v5264_v17  ;;  %v3460_v6 = vmul.f32 %v3452_v5, %v3374_v35 }
0x1311   : > { %v3461_v7 = vmul.f32 %v3453_v60, %v3376_v26  ;;  %v3447_v2 = vadd.f32 1.0, %v5266_v61 }
0x1312   : > { %v3454_v12 = vmul.f32 0.5, %v3446_v50 }
0x1313   : > { %3571 = vmatprep.mubr.f32.mxu0 %v3461_v7  ;;  %v3455_v14 = vmul.f32 0.5, %v3447_v2 }
0x1314   : > { %3572 = vmatmul.mubr.f32.vlgmr.msra.gmra.mrb[18].mxu0 %v3460_v6  ;;  %v3462_v18 = vmul.f32 %v3454_v12, %v3380_v39 }
0x1315   : > { %v3463_v15 = vmul.f32 %v3455_v14, %v3382_v63 }
0x1317   : > { %3576 = vmatprep.mubr.f32.mxu0 %v3463_v15 }
0x1318   : > { %3577 = vmatmul.mubr.f32.gmra.mrb[20].mxu0 %v3462_v18 }
0x1380   : > { %v3385_v21 = vpop.f32.mrb[34].mxu1 }
0x1381   : > { %v3386_v20 = vadd.f32 %v3385_v21, %v3300_v49  ;;  %v3387_v23 = vpop.f32.mrb[35].mxu1 }
0x1382   : > { %v3388_v25 = vadd.f32 %v3387_v23, %v6843_v46 }
0x1383   : > { %v3400_v13 = vmul.f32 %v3386_v20, %v3386_v20 }
0x1384   : > { %v3401_v22 = vmul.f32 %v3388_v25, %v3388_v25  ;;  %v3391_v29 = vpop.f32.mrb[36].mxu1 }
0x1385   : > { %v3408_v31 = vmul.f32 %v3400_v13, %v3386_v20  ;;  %v3392_v24 = vadd.f32 %v3391_v29, %v3300_v49  ;;  %v3393_v1 = vpop.f32.mrb[37].mxu1 }
0x1386   : > { %v3409_v30 = vmul.f32 %v3401_v22, %v3388_v25  ;;  %v3394_v34 = vadd.f32 %v3393_v1, %v6843_v46 }
0x1387   : > { %v3416_v47 = vmul.f32 0.044715, %v3408_v31  ;;  %v3402_v33 = vmul.f32 %v3392_v24, %v3392_v24 }
0x1388   : > { %v3417_v11 = vmul.f32 0.044715, %v3409_v30  ;;  %v3403_v35 = vmul.f32 %v3394_v34, %v3394_v34 }
0x1389   : > { %v3424_v36 = vadd.f32 %v3416_v47, %v3386_v20  ;;  %v3410_v26 = vmul.f32 %v3402_v33, %v3392_v24 }
0x138a   : > { %v3425_v38 = vadd.f32 %v3417_v11, %v3388_v25  ;;  %v3411_v52 = vmul.f32 %v3403_v35, %v3394_v34 }
0x138b   : > { %v3432_v51 = vmul.f32 0.7978846, %v3424_v36  ;;  %v3418_v27 = vmul.f32 0.044715, %v3410_v26 }
0x138c   : > { %v3433_v39 = vmul.f32 0.7978846, %v3425_v38  ;;  %v3419_v19 = vmul.f32 0.044715, %v3411_v52 }
0x138d   : > { %v3426_v62 = vadd.f32 %v3418_v27, %v3392_v24  ;;  %5267 = vtanh.f32 %v3432_v51 }
0x138e   : > { %v3427_v63 = vadd.f32 %v3419_v19, %v3394_v34  ;;  %5269 = vtanh.f32 %v3433_v39 }
0x138f   : > { %v3434_v49 = vmul.f32 0.7978846, %v3426_v62  ;;  %v4167_v62 = vld [vmem:[%s1053_s11] ss:$0 sm:$0xff] }
0x1390   : > { %v3435_v0 = vmul.f32 0.7978846, %v3427_v63 }
0x1391   : > { %5271 = vtanh.f32 %v3434_v49  ;;  %v4168_v49 = vld [vmem:[%s7039_s28] ss:$0 sm:$0xff] }
0x1392   : > { %5273 = vtanh.f32 %v3435_v0 }
0x1397   : > { %v5268_v46 = vpop.eup %5267 }
0x1398   : > { %v5270_v40 = vpop.eup %5269  ;;  %v3448_v3 = vadd.f32 1.0, %v5268_v46 }
0x1399   : > { %v3449_v8 = vadd.f32 1.0, %v5270_v40 }
0x139a   : > { %v3456_v9 = vmul.f32 0.5, %v3448_v3 }
0x139b   : > { %v5272_v41 = vpop.eup %5271  ;;  %v3457_v53 = vmul.f32 0.5, %v3449_v8 }
0x139c   : > { %v5274_v54 = vpop.eup %5273  ;;  %v3450_v42 = vadd.f32 1.0, %v5272_v41  ;;  %v3464_v45 = vmul.f32 %v3456_v9, %v3386_v20 }
0x139d   : > { %v3465_v43 = vmul.f32 %v3457_v53, %v3388_v25  ;;  %v3451_v44 = vadd.f32 1.0, %v5274_v54 }
0x139e   : > { %v3458_v48 = vmul.f32 0.5, %v3450_v42 }
0x139f   : > { %3581 = vmatprep.mubr.f32.mxu0 %v3465_v43  ;;  %v3459_v55 = vmul.f32 0.5, %v3451_v44 }
0x13a0   : > { %3582 = vmatmul.mubr.f32.gmra.mrb[22].mxu0 %v3464_v45  ;;  %v3466_v57 = vmul.f32 %v3458_v48, %v3392_v24 }
0x13a1   : > { %v3467_v56 = vmul.f32 %v3459_v55, %v3394_v34 }
0x13a3   : > { %3586 = vmatprep.mubr.f32.mxu0 %v3467_v56 }
0x13a4   : > { %3587 = vmatmul.mubr.f32.gmra.mrb[24].mxu0 %v3466_v57 }
0x13e7   : > { %v4357_v58 = vpop.f32.mrb[18].mxu0 }
0x13e8   : > { %v4358_v10 = vpop.f32.mrb[19].mxu0 }
0x13e9   : > { %v4359_v37 = vadd.f32 %v4358_v10, %v4357_v58 }
0x13eb   : > { %v3574_v5 = vadd.f32 %v4359_v37, %v4166_v4  ;;  %v4360_v17 = vpop.f32.mrb[20].mxu0  ;;  %v3675_v37 = vld [vmem:[#allocation18] sm:$0xff] (!%p4169_p3) }
0x13ec   : > { %v4361_v60 = vpop.f32.mrb[21].mxu0 }
0x13ed   : > { %v4362_v61 = vadd.f32 %v4361_v60, %v4360_v17  ;;  %v3592_v50 = vadd.f32 %v3574_v5, %v6787_v28  ;;  %v3676_v5 = vld [vmem:[#allocation18 + $0x8] sm:$0xff] (!%p4169_p3)  ;;  %v3677_v17 = vld [vmem:[#allocation18 + $0x10] sm:$0xff] (!%p4169_p3)  ;;  %v5718_v60 = vmov (!%p4169_p3), 0.0|0.0  }
0x13ee   : > { %4957 = vmatprep.subr.bf16.mxu0 (!%p4169_p3), %v5718_v60 }
0x13ef   : > { %v3579_v7 = vadd.f32 %v4362_v61, %v4166_v4  ;;  %3598 = vadd.xlane.f32.xlu0 %v3592_v50  ;;  %v4958_v61 = vpack.c.bf16 (!%p4169_p3), %v3676_v5, %v3675_v37 }
0x13f1   : > { %v3593_v2 = vadd.f32 %v3579_v7, %v6793_v59  ;;  %v5720_v7 = vmov (!%p4169_p3), 0.0   ;;  %4959 = vmatpush3.bf16.msra.mxu0 (!%p4169_p3), %v4958_v61 }
0x13f2   : > { %4682 = vmatprep.mubr.msk.f32.mxu0 (!%p4169_p3), %vm5719_vm5, %v5720_v7  ;;  %4960 = vmatprep.subr.bf16.mxu0 (!%p4169_p3), %v5718_v60 }
0x13f3   : > { %3600 = vadd.xlane.f32.xlu1 %v3593_v2 }
0x1473   : > { %v4363_v6 = vpop.f32.mrb[22].mxu0 }
0x1474   : > { %v4364_v12 = vpop.f32.mrb[23].mxu0 }
0x1475   : > { %v4365_v14 = vadd.f32 %v4364_v12, %v4363_v6  ;;  %v3679_v6 = vld [vmem:[#allocation18 + $0x20] sm:$0xff] (!%p4169_p3)  ;;  %v3680_v12 = vld [vmem:[#allocation18 + $0x28] sm:$0xff] (!%p4169_p3) }
0x1477   : > { %v3584_v15 = vadd.f32 %v4365_v14, %v4166_v4  ;;  %v4366_v18 = vpop.f32.mrb[24].mxu0  ;;  %v4964_v14 = vpack.c.bf16 (!%p4169_p3), %v3680_v12, %v3679_v6 }
0x1478   : > { %v4367_v21 = vpop.f32.mrb[25].mxu0 }
0x1479   : > { %v4368_v20 = vadd.f32 %v4367_v21, %v4366_v18  ;;  %v3594_v23 = vadd.f32 %v3584_v15, %v6832_v16  ;;  %v3681_v15 = vld [vmem:[#allocation18 + $0x30] sm:$0xff] (!%p4169_p3)  ;;  %v3682_v18 = vld [vmem:[#allocation18 + $0x38] sm:$0xff] (!%p4169_p3) }
0x147a   : > { %v4967_v21 = vpack.c.bf16 (!%p4169_p3), %v3682_v18, %v3681_v15 }
0x147b   : > { %v3589_v25 = vadd.f32 %v4368_v20, %v4166_v4  ;;  %3602 = vadd.xlane.f32.xlu0 %v3594_v23  ;;  %v3683_v20 = vld [vmem:[#allocation18 + $0x40] sm:$0xff] (!%p4169_p3) }
0x147c   : > { %v3599_v13 = vpop.xlane.xlu0 %3598 }
0x147d   : > { %v3606_v22 = vmul.f32 0.0078125, %v3599_v13  ;;  %v3595_v28 = vadd.f32 %v3589_v25, %v6839_v32  ;;  %v3685_v13 = vld [vmem:[#allocation18 + $0x50] sm:$0xff] (!%p4169_p3) }
0x147f   : > { %v3610_v29 = vsub.f32 %v3592_v50, %v3606_v22  ;;  %3604 = vadd.xlane.f32.xlu1 %v3595_v28  ;;  %v3678_v50 = vld [vmem:[#allocation18 + $0x18] sm:$0xff] (!%p4169_p3) }
0x1480   : > { %v3601_v31 = vpop.xlane.xlu1 %3600  ;;  %v3686_v22 = vld [vmem:[#allocation18 + $0x58] sm:$0xff] (!%p4169_p3) }
0x1481   : > { %v3607_v59 = vmul.f32 0.0078125, %v3601_v31  ;;  %v3614_v24 = vmul.f32 %v3610_v29, %v3610_v29  ;;  %v3688_v31 = vld [vmem:[#allocation18 + $0x68] sm:$0xff] (!%p4169_p3) }
0x1483   : > { %v3611_v1 = vsub.f32 %v3593_v2, %v3607_v59  ;;  %3618 = vadd.xlane.f32.xlu0 %v3614_v24  ;;  %v4961_v2 = vpack.c.bf16 (!%p4169_p3), %v3678_v50, %v3677_v17  ;;  %v3689_v24 = vld [vmem:[#allocation18 + $0x70] sm:$0xff] (!%p4169_p3) }
0x1485   : > { %v3615_v30 = vmul.f32 %v3611_v1, %v3611_v1  ;;  %4962 = vmatpush3.bf16.msra.mxu0 (!%p4169_p3), %v4961_v2 }
0x1486   : > { %4963 = vmatprep.subr.bf16.mxu0 (!%p4169_p3), %v5718_v60 }
0x1487   : > { %3620 = vadd.xlane.f32.xlu1 %v3615_v30 }
0x1489   : > { %4965 = vmatpush3.bf16.msra.mxu0 (!%p4169_p3), %v4964_v14 }
0x148a   : > { %4966 = vmatprep.subr.bf16.mxu0 (!%p4169_p3), %v5718_v60 }
0x148d   : > { %4968 = vmatpush3.bf16.msra.mxu0 (!%p4169_p3), %v4967_v21 }
0x148e   : > { %4969 = vmatprep.subr.bf16.mxu0 (!%p4169_p3), %v5718_v60 }
0x1508   : > { %v3603_v34 = vpop.xlane.xlu0 %3602 }
0x1509   : > { %v3608_v47 = vmul.f32 0.0078125, %v3603_v34 }
0x150b   : > { %v3612_v33 = vsub.f32 %v3594_v23, %v3608_v47  ;;  %v3684_v23 = vld [vmem:[#allocation18 + $0x48] sm:$0xff] (!%p4169_p3) }
0x150c   : > { %v3605_v11 = vpop.xlane.xlu1 %3604  ;;  %v4970_v25 = vpack.c.bf16 (!%p4169_p3), %v3684_v23, %v3683_v20 }
0x150d   : > { %v3609_v16 = vmul.f32 0.0078125, %v3605_v11  ;;  %v3616_v35 = vmul.f32 %v3612_v33, %v3612_v33 }
0x150e   : > { %4971 = vmatpush3.bf16.msra.mxu0 (!%p4169_p3), %v4970_v25 }
0x150f   : > { %v3613_v36 = vsub.f32 %v3595_v28, %v3609_v16  ;;  %3622 = vadd.xlane.f32.xlu0 %v3616_v35  ;;  %v4973_v28 = vpack.c.bf16 (!%p4169_p3), %v3686_v22, %v3685_v13  ;;  %4972 = vmatprep.subr.bf16.mxu0 (!%p4169_p3), %v5718_v60 }
0x1510   : > { %v3619_v32 = vpop.xlane.xlu0 %3618 }
0x1511   : > { %v3626_v26 = vmul.f32 0.0078125, %v3619_v32  ;;  %v3617_v38 = vmul.f32 %v3613_v36, %v3613_v36 }
0x1512   : > { %4974 = vmatpush3.bf16.msra.mxu0 (!%p4169_p3), %v4973_v28 }
0x1513   : > { %v3630_v52 = vadd.f32 1e-12, %v3626_v26  ;;  %3624 = vadd.xlane.f32.xlu1 %v3617_v38  ;;  %4975 = vmatprep.subr.bf16.mxu0 (!%p4169_p3), %v5718_v60 }
0x1514   : > { %v3621_v51 = vpop.xlane.xlu1 %3620 }
0x1515   : > { %5275 = vrsqrt.f32 %v3630_v52  ;;  %v3627_v27 = vmul.f32 0.0078125, %v3621_v51 }
0x1517   : > { %v3631_v39 = vadd.f32 1e-12, %v3627_v27 }
0x1519   : > { %5277 = vrsqrt.f32 %v3631_v39 }
0x151f   : > { %v5276_v19 = vpop.eup %5275 }
0x1520   : > { %v3638_v63 = vmul.f32 %v5276_v19, %v3610_v29  ;;  %v3687_v29 = vld [vmem:[#allocation18 + $0x60] sm:$0xff] (!%p4169_p3) }
0x1521   : > { %v4976_v59 = vpack.c.bf16 (!%p4169_p3), %v3688_v31, %v3687_v29 }
0x1522   : > { %v3648_v0 = vmul.f32 %v4167_v62, %v3638_v63 }
0x1523   : > { %v5278_v46 = vpop.eup %5277  ;;  %4977 = vmatpush3.bf16.msra.mxu0 (!%p4169_p3), %v4976_v59 }
0x1524   : > { %v6865_v40 = vadd.f32 %v4168_v49, %v3648_v0  ;;  %v3639_v3 = vmul.f32 %v5278_v46, %v3611_v1  ;;  %v3690_v1 = vld [vmem:[#allocation18 + $0x78] sm:$0xff] (!%p4169_p3)  ;;  %4978 = vmatprep.subr.bf16.mxu0 (!%p4169_p3), %v5718_v60 }
0x1525   : > { %v4979_v30 = vpack.c.bf16 (!%p4169_p3), %v3690_v1, %v3689_v24 }
0x1526   : > { %3662 = vst [vmem:[#allocation2] sm:$0xff] %v6865_v40  ;;  %v3649_v8 = vmul.f32 %v4167_v62, %v3639_v3 }
0x1527   : > { %4980 = vmatpush3.bf16.msra.mxu0 (!%p4169_p3), %v4979_v30 }
0x1528   : > { %v3659_v9 = vadd.f32 %v4168_v49, %v3649_v8 }
0x152a   : > { %3663 = vst [vmem:[#allocation2 + $0x8] sm:$0xff] %v3659_v9 }
0x159c   : > { %v3623_v41 = vpop.xlane.xlu0 %3622 }
0x159d   : > { %v3628_v53 = vmul.f32 0.0078125, %v3623_v41 }
0x159f   : > { %v3632_v54 = vadd.f32 1e-12, %v3628_v53 }
0x15a0   : > { %v3625_v42 = vpop.xlane.xlu1 %3624 }
0x15a1   : > { %5279 = vrsqrt.f32 %v3632_v54  ;;  %v3629_v43 = vmul.f32 0.0078125, %v3625_v42 }
0x15a3   : > { %v3633_v44 = vadd.f32 1e-12, %v3629_v43 }
0x15a5   : > { %5281 = vrsqrt.f32 %v3633_v44 }
0x15ab   : > { %v5280_v45 = vpop.eup %5279 }
0x15ac   : > { %v3640_v48 = vmul.f32 %v5280_v45, %v3612_v33  ;;  %v4170_v33 = vld [vmem:[#allocation20] ss:$0 sm:$0xff] (!%p4169_p3) }
0x15ae   : > { %v3650_v55 = vmul.f32 %v4167_v62, %v3640_v48 }
0x15af   : > { %v5282_v56 = vpop.eup %5281 }
0x15b0   : > { %v3660_v57 = vadd.f32 %v4168_v49, %v3650_v55  ;;  %v3641_v58 = vmul.f32 %v5282_v56, %v3613_v36  ;;  %3669 = sbr.rel (%p4169_p3) target bundleno = 5783 (0x1697), region = 152 }
0x15b2   : > { %3664 = vst [vmem:[#allocation2 + $0x10] sm:$0xff] %v3660_v57  ;;  %v3651_v4 = vmul.f32 %v4167_v62, %v3641_v58  ;;  %v3671_v34 = vrot.slane (!%p4169_p3), %v3660_v57, 7 }
0x15b4   : > { %v3661_v10 = vadd.f32 %v4168_v49, %v3651_v4  ;;  %v3674_v47 = vsel (!%p4169_p3), %vm3673_vm6, %v6865_v40, %v3671_v34 }
0x15b5   : > { %4683 = vmatmul.mubr.f32.vlgmr.msra.gmra.mrb[0].mxu0 (!%p4169_p3), %v3674_v47 }
0x15b6   : > { %3665 = vst [vmem:[#allocation2 + $0x18] sm:$0xff] %v3661_v10 }
0x1688   : > { %v3764_v11 = vpop.f32.mrb[0].mxu0 }
0x1689   : > { %v3765_v16 = vadd.f32 %v4170_v33, %v3764_v11  ;;  %v4684_v35 = vpop.f32.mrb[1].mxu0 }
0x168b   : > { %5287 = vtanh.f32 %v3765_v16 }
0x1695   : > { %v5288_v36 = vpop.eup %5287 }
0x1696   : > { %3769 = vst [vmem:[#allocation21] sm:$0x3] %v5288_v36 }
0x1697 PF: > { %s7041_s1 = sld [smem:[#allocation30_spill]]  ;;  %s5721_s11 = smov [#allocation21]  }
0x1698   : > { %s3777_s20 = sshll.u32 %s5721_s11, 4  ;;  %s3778_s20 = int_to_ptr.vmem [resolvable:$true] %s3777_s20 }
0x1699   : > { %s5615_s4 = scalar_lea.vmem %s3778_s20, 32  ;;  %p5622_p12 = scmp.lt.s32.totalorder %s3778_s20, %s3778_s20 }
0x169a   : > { %p5616_p10 = scmp.ne.s32.totalorder %s3778_s20, %s5615_s4  ;;  %p5623_p0 = scmp.lt.s32.totalorder %s5615_s4, %s5615_s4 }
0x169c   : > { %p5624_p7 = por %p5623_p0, %p5622_p12 }
0x169d   : > { %p5051_p11 = scmp.eq.s32.totalorder %s7041_s1, 1 }
0x169f   : > { %p5617_p2 = pnand %p5616_p10, %p5051_p11 }
0x16a1   : > { %p5618_p1 = pneg %p5617_p2 }
0x16a3   : > { %p5625_p4 = pnand %p5624_p7, %p5618_p1 }
0x16a5   : > { %5628 = shalt.err (!%p5625_p4)
}
0x16a6   : > { %s7042_s29 = sld [smem:[#allocation51_spill]] }
0x16ac   : > { %s5629_s8 = scalar_lea.hbm %s7042_s29, 32 }
0x16ad   : > { %p5630_p9 = scmp.ne.s32.totalorder %s7042_s29, %s5629_s8  ;;  %p5635_p6 = scmp.lt.u32.totalorder %s5629_s8, %s7042_s29 }
0x16af   : > { %p5631_p8 = pnand %p5630_p9, %p5051_p11 }
0x16b1   : > { %p5632_p5 = pneg %p5631_p8 }
0x16b3   : > { %p5637_p13 = pnand %p5635_p6, %p5632_p5 }
0x16b5   : > { %5640 = shalt.err (!%p5637_p13)
}
0x16b6   : > { %5008 = dma.vmem_to_hbm [thread:$0]  (%p5051_p11), %s3778_s20, 32, %s7042_s29, [#allocation5]  }
0x16b7   : > { %5682 = dma.done.wait (%p5051_p11), [#allocation5], 32  }
0x16b8   : > { %5684 = vsyncadd (%p5051_p11), [#allocation5], 4294967264 }
0x16b9 PF: > { %s7043_s24 = sld [smem:[#allocation31_spill]]  ;;  %s7044_s3 = sld [smem:[#allocation29_spill]] }
0x16ba   : > { %s7045_s23 = sld [smem:[#allocation32_spill]]  ;;  %s7046_s1 = smov %s5691_s22 }
0x16bf   : > { %p44_p3 = scmp.ge.s32.totalorder %s7043_s24, 4   ;;  %s7047_s22 = smov %s7044_s3 }
0x16c1   :  { %46 = sbr.rel (!%p44_p3) target bundleno = 33 (0x21), region = 270 }
0x16c8   :  { %3790 = vsyncpa [#allocation4], 1 }
0x16c9   :  { %3792 = vsyncpa [#allocation4 + $0x1], 1 }
0x16ca   :  { %3793 = vsyncpa [#allocation7], 1 }
0x16cb   :  { %3795 = vsyncpa [#allocation7 + $0x1], 1 }
0x16cc   :  { %3796 = vsyncpa [#allocation10], 1 }
0x16cd   :  { %3798 = vsyncpa [#allocation10 + $0x1], 1 }
0x16ce   :  { %3799 = vsyncpa [#allocation13], 1 }
0x16cf   :  { %3801 = vsyncpa [#allocation13 + $0x1], 1 }
0x16d0   :  { %3802 = vsyncpa [#allocation16], 1 }
0x16d1   :  { %3804 = vsyncpa [#allocation16 + $0x1], 1 }
0x16d2   :  { %3805 = vsyncpa [#allocation19], 1 }
0x16d3   :  { %3806 = vsyncpa [#allocation5], 1 }
0x16d4   :  { %3808 = vsyncpa [#allocation5 + $0x1], 1 }

</bundles_post_ra>
